<compile_context>
chip_gen: v5e
topology: v5e:2x2
jax: 0.10.0
libtpu: 0.0.40
codegen_flags: <defaults>
</compile_context>

<pallas_src>
import jax
import jax.numpy as jnp
from jax.experimental import pallas as pl
from jax.experimental.pallas import tpu as pltpu

BN_EPS = 1e-5
LANES = 128


def _conv_bn_relu(src, w_ref, b_ref, g_ref, beta_ref, xpad_ref, patch_ref):
    """One UNet stage: 3x3 conv (pad=1) + BatchNorm2d (batch stats) + ReLU.

    src       : (N, H, W, C) f32 value, C = lane-padded channel count
    w_ref     : (9*C, C)     im2col-laid-out conv weights
    b_ref     : (1, C)       conv bias
    g_ref     : (1, C)       BN gamma
    beta_ref  : (1, C)       BN beta
    xpad_ref  : VMEM scratch (N, H+2, W+2, C), border pre-zeroed
    patch_ref : VMEM scratch (N*H*W, 9*C)  im2col patches
    returns   : (N*H*W, C) f32
    """
    N, H, W, C = src.shape
    M = N * H * W

    # Spatially padded activation (conv padding=1) lives in a VMEM scratch; only the
    # interior is rewritten (border stays zero across both stages).
    xpad_ref[:, 1:H + 1, 1:W + 1, :] = src

    # im2col: stack the 9 shifted taps along the lane axis -> one big MXU matmul.
    for ky in range(3):
        for kx in range(3):
            t = ky * 3 + kx
            patch_ref[:, t * C:(t + 1) * C] = (
                xpad_ref[:, ky:ky + H, kx:kx + W, :].reshape(M, C))

    # Single (M, 9C) x (9C, C) matmul, f32 accumulation on the MXU.
    acc = jnp.dot(patch_ref[...], w_ref[...], preferred_element_type=jnp.float32)
    acc = acc + b_ref[...]

    # BatchNorm2d, training-mode batch statistics (biased variance over N*H*W).
    # Padded channels have zero weights/bias/gamma/beta -> they stay exactly 0.
    mean = jnp.mean(acc, axis=0, keepdims=True)
    var = jnp.mean((acc - mean) ** 2, axis=0, keepdims=True)
    y = (acc - mean) * jax.lax.rsqrt(var + BN_EPS) * g_ref[...] + beta_ref[...]

    return jnp.maximum(y, 0.0)  # ReLU


def downsampling_kernel(x_ref, w1_ref, b1_ref, g1_ref, t1_ref,
                        w2_ref, b2_ref, g2_ref, t2_ref,
                        o_ref, xpad_ref, patch_ref):
    """Fused UNetBlock: two conv+BN+ReLU stages, intermediate kept on-chip."""
    N, Ho, Wo, C = x_ref.shape

    # Zero the padded-activation scratch once; both stages only rewrite the interior.
    xpad_ref[...] = jnp.zeros(xpad_ref.shape, xpad_ref.dtype)

    h = _conv_bn_relu(x_ref[...], w1_ref, b1_ref, g1_ref, t1_ref,
                      xpad_ref, patch_ref)
    y = _conv_bn_relu(h.reshape(N, Ho, Wo, C), w2_ref, b2_ref, g2_ref, t2_ref,
                      xpad_ref, patch_ref)

    o_ref[...] = y.reshape(N, Ho, Wo, C).astype(o_ref.dtype)


def downsampling_forward(x_nchw, params):
    """DownSampling.forward(x): MaxPool2d(2) -> UNetBlock.  NCHW in, NCHW out."""
    N, Cin, H, W = x_nchw.shape
    Cout = params["w2"].shape[-1]
    Ho, Wo = H // 2, W // 2
    M = N * Ho * Wo
    # One lane-padded channel width shared by both stages (lets scratches be reused).
    C = LANES * ((max(Cin, Cout) + LANES - 1) // LANES)

    # --- tiny glue (one XLA fusion): NCHW -> NHWC, MaxPool2d(2), channel pad ---
    x = jnp.transpose(x_nchw, (0, 2, 3, 1))                       # (N, H, W, Cin)
    x = x.reshape(N, Ho, 2, Wo, 2, Cin).max(axis=(2, 4))          # 2x2 max pool
    x = jnp.pad(x, ((0, 0), (0, 0), (0, 0), (0, C - Cin)))        # lane-dense channels

    # --- parameter prep hoisted out of the kernel: pad, im2col layout, f32 ---
    def prep(w, b, g, beta):
        wp = jnp.pad(w.astype(jnp.float32),
                     ((0, 0), (0, 0),
                      (0, C - w.shape[2]), (0, C - w.shape[3])))   # (3,3,C,C) HWIO
        wp = wp.reshape(9 * C, C)                                  # im2col weight slab
        pad1 = lambda v: jnp.pad(v.astype(jnp.float32),
                                 (0, C - v.shape[0])).reshape(1, C)
        return wp, pad1(b), pad1(g), pad1(beta)

    w1, b1, g1, t1 = prep(params["w1"], params["b1"], params["g1"], params["beta1"])
    w2, b2, g2, t2 = prep(params["w2"], params["b2"], params["g2"], params["beta2"])

    vmem = pl.BlockSpec(memory_space=pltpu.MemorySpace.VMEM)
    out = pl.pallas_call(
        downsampling_kernel,
        out_shape=jax.ShapeDtypeStruct((N, Ho, Wo, C), jnp.float32),
        in_specs=[vmem] * 9,
        out_specs=vmem,
        scratch_shapes=[
            pltpu.VMEM((N, Ho + 2, Wo + 2, C), jnp.float32),   # padded activation
            pltpu.VMEM((M, 9 * C), jnp.float32),               # im2col patches
        ],
        compiler_params=pltpu.CompilerParams(vmem_limit_bytes=32 * 1024 * 1024),
    )(x, w1, b1, g1, t1, w2, b2, g2, t2)

    # Drop channel padding, NHWC -> NCHW.
    return jnp.transpose(out[..., :Cout], (0, 3, 1, 2))


def init_params(key, in_chs, out_chs):
    """Deterministic synthetic parameters for UNetBlock(in_chs, out_chs), HWIO weights."""
    k = jax.random.split(key, 8)
    p = {}
    # Conv2d(in_chs, out_chs, k=3, pad=1)
    p["w1"] = 0.1 * jax.random.normal(k[0], (3, 3, in_chs, out_chs), jnp.float32)
    p["b1"] = 0.1 * jax.random.normal(k[1], (out_chs,), jnp.float32)
    # BatchNorm2d(out_chs) affine params
    p["g1"] = 1.0 + 0.1 * jax.random.normal(k[2], (out_chs,), jnp.float32)
    p["beta1"] = 0.1 * jax.random.normal(k[3], (out_chs,), jnp.float32)
    # Conv2d(out_chs, out_chs, k=3, pad=1)
    p["w2"] = 0.1 * jax.random.normal(k[4], (3, 3, out_chs, out_chs), jnp.float32)
    p["b2"] = 0.1 * jax.random.normal(k[5], (out_chs,), jnp.float32)
    p["g2"] = 1.0 + 0.1 * jax.random.normal(k[6], (out_chs,), jnp.float32)
    p["beta2"] = 0.1 * jax.random.normal(k[7], (out_chs,), jnp.float32)
    return p


if __name__ == "__main__":
    key = jax.random.PRNGKey(0)
    kx, kp = jax.random.split(key)

    # DownSampling(in_chs=4, out_chs=8): x (2, 4, 16, 16) NCHW -> (2, 8, 8, 8)
    in_chs, out_chs = 4, 8
    x = jax.random.normal(kx, (2, in_chs, 16, 16), jnp.float32)
    params = init_params(kp, in_chs, out_chs)

    fwd = jax.jit(downsampling_forward)
    out = jax.block_until_ready(fwd(x, params))

    assert out.shape == (2, out_chs, 8, 8), out.shape
    assert bool(jnp.all(jnp.isfinite(out)))
    print("KERNEL_OK")
</pallas_src>

<mosaic_0001>
module attributes {stable_mosaic.version = 11 : i64} {
  func.func @downsampling_kernel(%arg0: memref<2x8x8x128xf32, #tpu.memory_space<vmem>>, %arg1: memref<1152x128xf32, #tpu.memory_space<vmem>>, %arg2: memref<1x128xf32, #tpu.memory_space<vmem>>, %arg3: memref<1x128xf32, #tpu.memory_space<vmem>>, %arg4: memref<1x128xf32, #tpu.memory_space<vmem>>, %arg5: memref<1152x128xf32, #tpu.memory_space<vmem>>, %arg6: memref<1x128xf32, #tpu.memory_space<vmem>>, %arg7: memref<1x128xf32, #tpu.memory_space<vmem>>, %arg8: memref<1x128xf32, #tpu.memory_space<vmem>>, %arg9: memref<2x8x8x128xf32, #tpu.memory_space<vmem>>, %arg10: memref<2x10x10x128xf32, #tpu.memory_space<vmem>>, %arg11: memref<128x1152xf32, #tpu.memory_space<vmem>>) attributes {dimension_semantics = [], scalar_prefetch = 0 : i64, scratch_operands = 2 : i64, tpu.core_type = #tpu.core_type<tc>} {
    %cst = arith.constant 0.000000e+00 : f32
    %0 = vector.broadcast %cst : f32 to vector<2x10x10x128xf32>
    %c0 = arith.constant 0 : index
    %c0_0 = arith.constant 0 : index
    %c0_1 = arith.constant 0 : index
    %c0_2 = arith.constant 0 : index
    %1 = vector.load %arg10[%c0, %c0_0, %c0_1, %c0_2] : memref<2x10x10x128xf32, #tpu.memory_space<vmem>>, vector<2x10x10x128xf32>
    tpu.vector_store %arg10[%c0, %c0_0, %c0_1, %c0_2], %0 {strides = array<i32>} : memref<2x10x10x128xf32, #tpu.memory_space<vmem>>, vector<2x10x10x128xf32>,
    %c0_3 = arith.constant 0 : index
    %c0_4 = arith.constant 0 : index
    %c0_5 = arith.constant 0 : index
    %c0_6 = arith.constant 0 : index
    %2 = vector.load %arg0[%c0_3, %c0_4, %c0_5, %c0_6] : memref<2x8x8x128xf32, #tpu.memory_space<vmem>>, vector<2x8x8x128xf32>
    %c0_7 = arith.constant 0 : index
    %c1 = arith.constant 1 : index
    %c1_8 = arith.constant 1 : index
    %c0_9 = arith.constant 0 : index
    %3 = vector.load %arg10[%c0_7, %c1, %c1_8, %c0_9] : memref<2x10x10x128xf32, #tpu.memory_space<vmem>>, vector<2x8x8x128xf32>
    tpu.vector_store %arg10[%c0_7, %c1, %c1_8, %c0_9], %2 {strides = array<i32>} : memref<2x10x10x128xf32, #tpu.memory_space<vmem>>, vector<2x8x8x128xf32>,
    %c0_10 = arith.constant 0 : index
    %c0_11 = arith.constant 0 : index
    %c0_12 = arith.constant 0 : index
    %c0_13 = arith.constant 0 : index
    %4 = vector.load %arg10[%c0_10, %c0_11, %c0_12, %c0_13] : memref<2x10x10x128xf32, #tpu.memory_space<vmem>>, vector<2x8x8x128xf32>
    %5 = vector.shape_cast %4 : vector<2x8x8x128xf32> to vector<128x128xf32>
    %c0_14 = arith.constant 0 : index
    %c0_15 = arith.constant 0 : index
    %6 = vector.load %arg11[%c0_14, %c0_15] : memref<128x1152xf32, #tpu.memory_space<vmem>>, vector<128x128xf32>
    tpu.vector_store %arg11[%c0_14, %c0_15], %5 {strides = array<i32>} : memref<128x1152xf32, #tpu.memory_space<vmem>>, vector<128x128xf32>,
    %c0_16 = arith.constant 0 : index
    %c0_17 = arith.constant 0 : index
    %c1_18 = arith.constant 1 : index
    %c0_19 = arith.constant 0 : index
    %7 = vector.load %arg10[%c0_16, %c0_17, %c1_18, %c0_19] : memref<2x10x10x128xf32, #tpu.memory_space<vmem>>, vector<2x8x8x128xf32>
    %8 = vector.shape_cast %7 : vector<2x8x8x128xf32> to vector<128x128xf32>
    %c0_20 = arith.constant 0 : index
    %c128 = arith.constant 128 : index
    %9 = vector.load %arg11[%c0_20, %c128] : memref<128x1152xf32, #tpu.memory_space<vmem>>, vector<128x128xf32>
    tpu.vector_store %arg11[%c0_20, %c128], %8 {strides = array<i32>} : memref<128x1152xf32, #tpu.memory_space<vmem>>, vector<128x128xf32>,
    %c0_21 = arith.constant 0 : index
    %c0_22 = arith.constant 0 : index
    %c2 = arith.constant 2 : index
    %c0_23 = arith.constant 0 : index
    %10 = vector.load %arg10[%c0_21, %c0_22, %c2, %c0_23] : memref<2x10x10x128xf32, #tpu.memory_space<vmem>>, vector<2x8x8x128xf32>
    %11 = vector.shape_cast %10 : vector<2x8x8x128xf32> to vector<128x128xf32>
    %c0_24 = arith.constant 0 : index
    %c256 = arith.constant 256 : index
    %12 = vector.load %arg11[%c0_24, %c256] : memref<128x1152xf32, #tpu.memory_space<vmem>>, vector<128x128xf32>
    tpu.vector_store %arg11[%c0_24, %c256], %11 {strides = array<i32>} : memref<128x1152xf32, #tpu.memory_space<vmem>>, vector<128x128xf32>,
    %c0_25 = arith.constant 0 : index
    %c1_26 = arith.constant 1 : index
    %c0_27 = arith.constant 0 : index
    %c0_28 = arith.constant 0 : index
    %13 = vector.load %arg10[%c0_25, %c1_26, %c0_27, %c0_28] : memref<2x10x10x128xf32, #tpu.memory_space<vmem>>, vector<2x8x8x128xf32>
    %14 = vector.shape_cast %13 : vector<2x8x8x128xf32> to vector<128x128xf32>
    %c0_29 = arith.constant 0 : index
    %c384 = arith.constant 384 : index
    %15 = vector.load %arg11[%c0_29, %c384] : memref<128x1152xf32, #tpu.memory_space<vmem>>, vector<128x128xf32>
    tpu.vector_store %arg11[%c0_29, %c384], %14 {strides = array<i32>} : memref<128x1152xf32, #tpu.memory_space<vmem>>, vector<128x128xf32>,
    %c0_30 = arith.constant 0 : index
    %c1_31 = arith.constant 1 : index
    %c1_32 = arith.constant 1 : index
    %c0_33 = arith.constant 0 : index
    %16 = vector.load %arg10[%c0_30, %c1_31, %c1_32, %c0_33] : memref<2x10x10x128xf32, #tpu.memory_space<vmem>>, vector<2x8x8x128xf32>
    %17 = vector.shape_cast %16 : vector<2x8x8x128xf32> to vector<128x128xf32>
    %c0_34 = arith.constant 0 : index
    %c512 = arith.constant 512 : index
    %18 = vector.load %arg11[%c0_34, %c512] : memref<128x1152xf32, #tpu.memory_space<vmem>>, vector<128x128xf32>
    tpu.vector_store %arg11[%c0_34, %c512], %17 {strides = array<i32>} : memref<128x1152xf32, #tpu.memory_space<vmem>>, vector<128x128xf32>,
    %c0_35 = arith.constant 0 : index
    %c1_36 = arith.constant 1 : index
    %c2_37 = arith.constant 2 : index
    %c0_38 = arith.constant 0 : index
    %19 = vector.load %arg10[%c0_35, %c1_36, %c2_37, %c0_38] : memref<2x10x10x128xf32, #tpu.memory_space<vmem>>, vector<2x8x8x128xf32>
    %20 = vector.shape_cast %19 : vector<2x8x8x128xf32> to vector<128x128xf32>
    %c0_39 = arith.constant 0 : index
    %c640 = arith.constant 640 : index
    %21 = vector.load %arg11[%c0_39, %c640] : memref<128x1152xf32, #tpu.memory_space<vmem>>, vector<128x128xf32>
    tpu.vector_store %arg11[%c0_39, %c640], %20 {strides = array<i32>} : memref<128x1152xf32, #tpu.memory_space<vmem>>, vector<128x128xf32>,
    %c0_40 = arith.constant 0 : index
    %c2_41 = arith.constant 2 : index
    %c0_42 = arith.constant 0 : index
    %c0_43 = arith.constant 0 : index
    %22 = vector.load %arg10[%c0_40, %c2_41, %c0_42, %c0_43] : memref<2x10x10x128xf32, #tpu.memory_space<vmem>>, vector<2x8x8x128xf32>
    %23 = vector.shape_cast %22 : vector<2x8x8x128xf32> to vector<128x128xf32>
    %c0_44 = arith.constant 0 : index
    %c768 = arith.constant 768 : index
    %24 = vector.load %arg11[%c0_44, %c768] : memref<128x1152xf32, #tpu.memory_space<vmem>>, vector<128x128xf32>
    tpu.vector_store %arg11[%c0_44, %c768], %23 {strides = array<i32>} : memref<128x1152xf32, #tpu.memory_space<vmem>>, vector<128x128xf32>,
    %c0_45 = arith.constant 0 : index
    %c2_46 = arith.constant 2 : index
    %c1_47 = arith.constant 1 : index
    %c0_48 = arith.constant 0 : index
    %25 = vector.load %arg10[%c0_45, %c2_46, %c1_47, %c0_48] : memref<2x10x10x128xf32, #tpu.memory_space<vmem>>, vector<2x8x8x128xf32>
    %26 = vector.shape_cast %25 : vector<2x8x8x128xf32> to vector<128x128xf32>
    %c0_49 = arith.constant 0 : index
    %c896 = arith.constant 896 : index
    %27 = vector.load %arg11[%c0_49, %c896] : memref<128x1152xf32, #tpu.memory_space<vmem>>, vector<128x128xf32>
    tpu.vector_store %arg11[%c0_49, %c896], %26 {strides = array<i32>} : memref<128x1152xf32, #tpu.memory_space<vmem>>, vector<128x128xf32>,
    %c0_50 = arith.constant 0 : index
    %c2_51 = arith.constant 2 : index
    %c2_52 = arith.constant 2 : index
    %c0_53 = arith.constant 0 : index
    %28 = vector.load %arg10[%c0_50, %c2_51, %c2_52, %c0_53] : memref<2x10x10x128xf32, #tpu.memory_space<vmem>>, vector<2x8x8x128xf32>
    %29 = vector.shape_cast %28 : vector<2x8x8x128xf32> to vector<128x128xf32>
    %c0_54 = arith.constant 0 : index
    %c1024 = arith.constant 1024 : index
    %30 = vector.load %arg11[%c0_54, %c1024] : memref<128x1152xf32, #tpu.memory_space<vmem>>, vector<128x128xf32>
    tpu.vector_store %arg11[%c0_54, %c1024], %29 {strides = array<i32>} : memref<128x1152xf32, #tpu.memory_space<vmem>>, vector<128x128xf32>,
    %c0_55 = arith.constant 0 : index
    %c0_56 = arith.constant 0 : index
    %31 = vector.load %arg11[%c0_55, %c0_56] : memref<128x1152xf32, #tpu.memory_space<vmem>>, vector<128x1152xf32>
    %c0_57 = arith.constant 0 : index
    %c0_58 = arith.constant 0 : index
    %32 = vector.load %arg1[%c0_57, %c0_58] : memref<1152x128xf32, #tpu.memory_space<vmem>>, vector<1152x128xf32>
    %cst_59 = arith.constant dense<0.000000e+00> : vector<128x128xf32>
    %33 = tpu.matmul %31, %32, %cst_59 {dimension_numbers = #tpu.dot_dimension_numbers<[1], [0], [0], [1], [0, 0, 1, 1], [], []>} : vector<128x1152xf32>, vector<1152x128xf32>, vector<128x128xf32> -> vector<128x128xf32>
    %c0_60 = arith.constant 0 : index
    %c0_61 = arith.constant 0 : index
    %34 = vector.load %arg2[%c0_60, %c0_61] : memref<1x128xf32, #tpu.memory_space<vmem>>, vector<1x128xf32>
    %35 = vector.broadcast %34 : vector<1x128xf32> to vector<128x128xf32>
    %36 = arith.addf %33, %35 : vector<128x128xf32>
    %cst_62 = arith.constant dense<0.000000e+00> : vector<128xf32>
    %37 = vector.multi_reduction <add>, %36, %cst_62 [0] : vector<128x128xf32> to vector<128xf32>
    %38 = vector.shape_cast %37 : vector<128xf32> to vector<1x128xf32>
    %cst_63 = arith.constant 1.280000e+02 : f32
    %39 = vector.broadcast %cst_63 : f32 to vector<1x128xf32>
    %40 = arith.divf %38, %39 : vector<1x128xf32>
    %41 = vector.broadcast %40 : vector<1x128xf32> to vector<128x128xf32>
    %42 = arith.subf %36, %41 : vector<128x128xf32>
    %43 = arith.mulf %42, %42 : vector<128x128xf32>
    %cst_64 = arith.constant dense<0.000000e+00> : vector<128xf32>
    %44 = vector.multi_reduction <add>, %43, %cst_64 [0] : vector<128x128xf32> to vector<128xf32>
    %45 = vector.shape_cast %44 : vector<128xf32> to vector<1x128xf32>
    %cst_65 = arith.constant 1.280000e+02 : f32
    %46 = vector.broadcast %cst_65 : f32 to vector<1x128xf32>
    %47 = arith.divf %45, %46 : vector<1x128xf32>
    %48 = vector.broadcast %40 : vector<1x128xf32> to vector<128x128xf32>
    %49 = arith.subf %36, %48 : vector<128x128xf32>
    %cst_66 = arith.constant 9.99999974E-6 : f32
    %50 = vector.broadcast %cst_66 : f32 to vector<1x128xf32>
    %51 = arith.addf %47, %50 : vector<1x128xf32>
    %52 = math.rsqrt %51 : vector<1x128xf32>
    %53 = vector.broadcast %52 : vector<1x128xf32> to vector<128x128xf32>
    %54 = arith.mulf %49, %53 : vector<128x128xf32>
    %c0_67 = arith.constant 0 : index
    %c0_68 = arith.constant 0 : index
    %55 = vector.load %arg3[%c0_67, %c0_68] : memref<1x128xf32, #tpu.memory_space<vmem>>, vector<1x128xf32>
    %56 = vector.broadcast %55 : vector<1x128xf32> to vector<128x128xf32>
    %57 = arith.mulf %54, %56 : vector<128x128xf32>
    %c0_69 = arith.constant 0 : index
    %c0_70 = arith.constant 0 : index
    %58 = vector.load %arg4[%c0_69, %c0_70] : memref<1x128xf32, #tpu.memory_space<vmem>>, vector<1x128xf32>
    %59 = vector.broadcast %58 : vector<1x128xf32> to vector<128x128xf32>
    %60 = arith.addf %57, %59 : vector<128x128xf32>
    %cst_71 = arith.constant 0.000000e+00 : f32
    %61 = vector.broadcast %cst_71 : f32 to vector<128x128xf32>
    %62 = arith.maximumf %60, %61 : vector<128x128xf32>
    %63 = vector.shape_cast %62 : vector<128x128xf32> to vector<2x8x8x128xf32>
    %c0_72 = arith.constant 0 : index
    %c1_73 = arith.constant 1 : index
    %c1_74 = arith.constant 1 : index
    %c0_75 = arith.constant 0 : index
    %64 = vector.load %arg10[%c0_72, %c1_73, %c1_74, %c0_75] : memref<2x10x10x128xf32, #tpu.memory_space<vmem>>, vector<2x8x8x128xf32>
    tpu.vector_store %arg10[%c0_72, %c1_73, %c1_74, %c0_75], %63 {strides = array<i32>} : memref<2x10x10x128xf32, #tpu.memory_space<vmem>>, vector<2x8x8x128xf32>,
    %c0_76 = arith.constant 0 : index
    %c0_77 = arith.constant 0 : index
    %c0_78 = arith.constant 0 : index
    %c0_79 = arith.constant 0 : index
    %65 = vector.load %arg10[%c0_76, %c0_77, %c0_78, %c0_79] : memref<2x10x10x128xf32, #tpu.memory_space<vmem>>, vector<2x8x8x128xf32>
    %66 = vector.shape_cast %65 : vector<2x8x8x128xf32> to vector<128x128xf32>
    %c0_80 = arith.constant 0 : index
    %c0_81 = arith.constant 0 : index
    %67 = vector.load %arg11[%c0_80, %c0_81] : memref<128x1152xf32, #tpu.memory_space<vmem>>, vector<128x128xf32>
    tpu.vector_store %arg11[%c0_80, %c0_81], %66 {strides = array<i32>} : memref<128x1152xf32, #tpu.memory_space<vmem>>, vector<128x128xf32>,
    %c0_82 = arith.constant 0 : index
    %c0_83 = arith.constant 0 : index
    %c1_84 = arith.constant 1 : index
    %c0_85 = arith.constant 0 : index
    %68 = vector.load %arg10[%c0_82, %c0_83, %c1_84, %c0_85] : memref<2x10x10x128xf32, #tpu.memory_space<vmem>>, vector<2x8x8x128xf32>
    %69 = vector.shape_cast %68 : vector<2x8x8x128xf32> to vector<128x128xf32>
    %c0_86 = arith.constant 0 : index
    %c128_87 = arith.constant 128 : index
    %70 = vector.load %arg11[%c0_86, %c128_87] : memref<128x1152xf32, #tpu.memory_space<vmem>>, vector<128x128xf32>
    tpu.vector_store %arg11[%c0_86, %c128_87], %69 {strides = array<i32>} : memref<128x1152xf32, #tpu.memory_space<vmem>>, vector<128x128xf32>,
    %c0_88 = arith.constant 0 : index
    %c0_89 = arith.constant 0 : index
    %c2_90 = arith.constant 2 : index
    %c0_91 = arith.constant 0 : index
    %71 = vector.load %arg10[%c0_88, %c0_89, %c2_90, %c0_91] : memref<2x10x10x128xf32, #tpu.memory_space<vmem>>, vector<2x8x8x128xf32>
    %72 = vector.shape_cast %71 : vector<2x8x8x128xf32> to vector<128x128xf32>
    %c0_92 = arith.constant 0 : index
    %c256_93 = arith.constant 256 : index
    %73 = vector.load %arg11[%c0_92, %c256_93] : memref<128x1152xf32, #tpu.memory_space<vmem>>, vector<128x128xf32>
    tpu.vector_store %arg11[%c0_92, %c256_93], %72 {strides = array<i32>} : memref<128x1152xf32, #tpu.memory_space<vmem>>, vector<128x128xf32>,
    %c0_94 = arith.constant 0 : index
    %c1_95 = arith.constant 1 : index
    %c0_96 = arith.constant 0 : index
    %c0_97 = arith.constant 0 : index
    %74 = vector.load %arg10[%c0_94, %c1_95, %c0_96, %c0_97] : memref<2x10x10x128xf32, #tpu.memory_space<vmem>>, vector<2x8x8x128xf32>
    %75 = vector.shape_cast %74 : vector<2x8x8x128xf32> to vector<128x128xf32>
    %c0_98 = arith.constant 0 : index
    %c384_99 = arith.constant 384 : index
    %76 = vector.load %arg11[%c0_98, %c384_99] : memref<128x1152xf32, #tpu.memory_space<vmem>>, vector<128x128xf32>
    tpu.vector_store %arg11[%c0_98, %c384_99], %75 {strides = array<i32>} : memref<128x1152xf32, #tpu.memory_space<vmem>>, vector<128x128xf32>,
    %c0_100 = arith.constant 0 : index
    %c1_101 = arith.constant 1 : index
    %c1_102 = arith.constant 1 : index
    %c0_103 = arith.constant 0 : index
    %77 = vector.load %arg10[%c0_100, %c1_101, %c1_102, %c0_103] : memref<2x10x10x128xf32, #tpu.memory_space<vmem>>, vector<2x8x8x128xf32>
    %78 = vector.shape_cast %77 : vector<2x8x8x128xf32> to vector<128x128xf32>
    %c0_104 = arith.constant 0 : index
    %c512_105 = arith.constant 512 : index
    %79 = vector.load %arg11[%c0_104, %c512_105] : memref<128x1152xf32, #tpu.memory_space<vmem>>, vector<128x128xf32>
    tpu.vector_store %arg11[%c0_104, %c512_105], %78 {strides = array<i32>} : memref<128x1152xf32, #tpu.memory_space<vmem>>, vector<128x128xf32>,
    %c0_106 = arith.constant 0 : index
    %c1_107 = arith.constant 1 : index
    %c2_108 = arith.constant 2 : index
    %c0_109 = arith.constant 0 : index
    %80 = vector.load %arg10[%c0_106, %c1_107, %c2_108, %c0_109] : memref<2x10x10x128xf32, #tpu.memory_space<vmem>>, vector<2x8x8x128xf32>
    %81 = vector.shape_cast %80 : vector<2x8x8x128xf32> to vector<128x128xf32>
    %c0_110 = arith.constant 0 : index
    %c640_111 = arith.constant 640 : index
    %82 = vector.load %arg11[%c0_110, %c640_111] : memref<128x1152xf32, #tpu.memory_space<vmem>>, vector<128x128xf32>
    tpu.vector_store %arg11[%c0_110, %c640_111], %81 {strides = array<i32>} : memref<128x1152xf32, #tpu.memory_space<vmem>>, vector<128x128xf32>,
    %c0_112 = arith.constant 0 : index
    %c2_113 = arith.constant 2 : index
    %c0_114 = arith.constant 0 : index
    %c0_115 = arith.constant 0 : index
    %83 = vector.load %arg10[%c0_112, %c2_113, %c0_114, %c0_115] : memref<2x10x10x128xf32, #tpu.memory_space<vmem>>, vector<2x8x8x128xf32>
    %84 = vector.shape_cast %83 : vector<2x8x8x128xf32> to vector<128x128xf32>
    %c0_116 = arith.constant 0 : index
    %c768_117 = arith.constant 768 : index
    %85 = vector.load %arg11[%c0_116, %c768_117] : memref<128x1152xf32, #tpu.memory_space<vmem>>, vector<128x128xf32>
    tpu.vector_store %arg11[%c0_116, %c768_117], %84 {strides = array<i32>} : memref<128x1152xf32, #tpu.memory_space<vmem>>, vector<128x128xf32>,
    %c0_118 = arith.constant 0 : index
    %c2_119 = arith.constant 2 : index
    %c1_120 = arith.constant 1 : index
    %c0_121 = arith.constant 0 : index
    %86 = vector.load %arg10[%c0_118, %c2_119, %c1_120, %c0_121] : memref<2x10x10x128xf32, #tpu.memory_space<vmem>>, vector<2x8x8x128xf32>
    %87 = vector.shape_cast %86 : vector<2x8x8x128xf32> to vector<128x128xf32>
    %c0_122 = arith.constant 0 : index
    %c896_123 = arith.constant 896 : index
    %88 = vector.load %arg11[%c0_122, %c896_123] : memref<128x1152xf32, #tpu.memory_space<vmem>>, vector<128x128xf32>
    tpu.vector_store %arg11[%c0_122, %c896_123], %87 {strides = array<i32>} : memref<128x1152xf32, #tpu.memory_space<vmem>>, vector<128x128xf32>,
    %c0_124 = arith.constant 0 : index
    %c2_125 = arith.constant 2 : index
    %c2_126 = arith.constant 2 : index
    %c0_127 = arith.constant 0 : index
    %89 = vector.load %arg10[%c0_124, %c2_125, %c2_126, %c0_127] : memref<2x10x10x128xf32, #tpu.memory_space<vmem>>, vector<2x8x8x128xf32>
    %90 = vector.shape_cast %89 : vector<2x8x8x128xf32> to vector<128x128xf32>
    %c0_128 = arith.constant 0 : index
    %c1024_129 = arith.constant 1024 : index
    %91 = vector.load %arg11[%c0_128, %c1024_129] : memref<128x1152xf32, #tpu.memory_space<vmem>>, vector<128x128xf32>
    tpu.vector_store %arg11[%c0_128, %c1024_129], %90 {strides = array<i32>} : memref<128x1152xf32, #tpu.memory_space<vmem>>, vector<128x128xf32>,
    %c0_130 = arith.constant 0 : index
    %c0_131 = arith.constant 0 : index
    %92 = vector.load %arg11[%c0_130, %c0_131] : memref<128x1152xf32, #tpu.memory_space<vmem>>, vector<128x1152xf32>
    %c0_132 = arith.constant 0 : index
    %c0_133 = arith.constant 0 : index
    %93 = vector.load %arg5[%c0_132, %c0_133] : memref<1152x128xf32, #tpu.memory_space<vmem>>, vector<1152x128xf32>
    %cst_134 = arith.constant dense<0.000000e+00> : vector<128x128xf32>
    %94 = tpu.matmul %92, %93, %cst_134 {dimension_numbers = #tpu.dot_dimension_numbers<[1], [0], [0], [1], [0, 0, 1, 1], [], []>} : vector<128x1152xf32>, vector<1152x128xf32>, vector<128x128xf32> -> vector<128x128xf32>
    %c0_135 = arith.constant 0 : index
    %c0_136 = arith.constant 0 : index
    %95 = vector.load %arg6[%c0_135, %c0_136] : memref<1x128xf32, #tpu.memory_space<vmem>>, vector<1x128xf32>
    %96 = vector.broadcast %95 : vector<1x128xf32> to vector<128x128xf32>
    %97 = arith.addf %94, %96 : vector<128x128xf32>
    %cst_137 = arith.constant dense<0.000000e+00> : vector<128xf32>
    %98 = vector.multi_reduction <add>, %97, %cst_137 [0] : vector<128x128xf32> to vector<128xf32>
    %99 = vector.shape_cast %98 : vector<128xf32> to vector<1x128xf32>
    %cst_138 = arith.constant 1.280000e+02 : f32
    %100 = vector.broadcast %cst_138 : f32 to vector<1x128xf32>
    %101 = arith.divf %99, %100 : vector<1x128xf32>
    %102 = vector.broadcast %101 : vector<1x128xf32> to vector<128x128xf32>
    %103 = arith.subf %97, %102 : vector<128x128xf32>
    %104 = arith.mulf %103, %103 : vector<128x128xf32>
    %cst_139 = arith.constant dense<0.000000e+00> : vector<128xf32>
    %105 = vector.multi_reduction <add>, %104, %cst_139 [0] : vector<128x128xf32> to vector<128xf32>
    %106 = vector.shape_cast %105 : vector<128xf32> to vector<1x128xf32>
    %cst_140 = arith.constant 1.280000e+02 : f32
    %107 = vector.broadcast %cst_140 : f32 to vector<1x128xf32>
    %108 = arith.divf %106, %107 : vector<1x128xf32>
    %109 = vector.broadcast %101 : vector<1x128xf32> to vector<128x128xf32>
    %110 = arith.subf %97, %109 : vector<128x128xf32>
    %cst_141 = arith.constant 9.99999974E-6 : f32
    %111 = vector.broadcast %cst_141 : f32 to vector<1x128xf32>
    %112 = arith.addf %108, %111 : vector<1x128xf32>
    %113 = math.rsqrt %112 : vector<1x128xf32>
    %114 = vector.broadcast %113 : vector<1x128xf32> to vector<128x128xf32>
    %115 = arith.mulf %110, %114 : vector<128x128xf32>
    %c0_142 = arith.constant 0 : index
    %c0_143 = arith.constant 0 : index
    %116 = vector.load %arg7[%c0_142, %c0_143] : memref<1x128xf32, #tpu.memory_space<vmem>>, vector<1x128xf32>
    %117 = vector.broadcast %116 : vector<1x128xf32> to vector<128x128xf32>
    %118 = arith.mulf %115, %117 : vector<128x128xf32>
    %c0_144 = arith.constant 0 : index
    %c0_145 = arith.constant 0 : index
    %119 = vector.load %arg8[%c0_144, %c0_145] : memref<1x128xf32, #tpu.memory_space<vmem>>, vector<1x128xf32>
    %120 = vector.broadcast %119 : vector<1x128xf32> to vector<128x128xf32>
    %121 = arith.addf %118, %120 : vector<128x128xf32>
    %cst_146 = arith.constant 0.000000e+00 : f32
    %122 = vector.broadcast %cst_146 : f32 to vector<128x128xf32>
    %123 = arith.maximumf %121, %122 : vector<128x128xf32>
    %124 = vector.shape_cast %123 : vector<128x128xf32> to vector<2x8x8x128xf32>
    %c0_147 = arith.constant 0 : index
    %c0_148 = arith.constant 0 : index
    %c0_149 = arith.constant 0 : index
    %c0_150 = arith.constant 0 : index
    %125 = vector.load %arg9[%c0_147, %c0_148, %c0_149, %c0_150] : memref<2x8x8x128xf32, #tpu.memory_space<vmem>>, vector<2x8x8x128xf32>
    tpu.vector_store %arg9[%c0_147, %c0_148, %c0_149, %c0_150], %124 {strides = array<i32>} : memref<2x8x8x128xf32, #tpu.memory_space<vmem>>, vector<2x8x8x128xf32>,
    return
  }
}

</mosaic_0001>

<bundles_post_ra>
// kernel: downsampling_forward.1
= control target key start
LH: loop header
LB: loop body
LE: loop exit
PB: predicated region body
PF: predicated region fallthrough
CT: control target
= control target key end

     0   :  { %v2845_v3 = vmov 0.0   ;;  %s4960_s1 = inlined_call_operand.vmem [shape: f32[1152,128], index: 1, kind: input, shape index: {}]   ;;  %s4961_s0 = inlined_call_operand.vmem [shape: f32[2,8,8,128], index: 0, kind: input, shape index: {}]   ;;  %s4962_s2 = inlined_call_operand.vmem [shape: f32[1,128], index: 2, kind: input, shape index: {}]   ;;  %s4963_s3 = inlined_call_operand.vmem [shape: f32[1,128], index: 3, kind: input, shape index: {}]   ;;  %s4964_s4 = inlined_call_operand.vmem [shape: f32[1,128], index: 4, kind: input, shape index: {}]   ;;  %s4965_s5 = inlined_call_operand.vmem [shape: f32[1152,128], index: 5, kind: input, shape index: {}]   ;;  %s4966_s6 = inlined_call_operand.vmem [shape: f32[1,128], index: 6, kind: input, shape index: {}]   ;;  %s4967_s7 = inlined_call_operand.vmem [shape: f32[1,128], index: 7, kind: input, shape index: {}]   ;;  %s4968_s8 = inlined_call_operand.vmem [shape: f32[1,128], index: 8, kind: input, shape index: {}]   ;;  %s4969_s9 = inlined_call_operand.vmem [shape: f32[2,8,8,128], index: 9, kind: output, shape index: {}]  }
   0x1   :  { %v553_v0 = vld [vmem:[%s4960_s1 + $0x78] sm:$0xff]  ;;  %v552_v1 = vld [vmem:[%s4960_s1 + $0x70] sm:$0xff]  ;;  %52 = vst [vmem:[#allocation2 + $0xa0] sm:$0xff] %v2845_v3  ;;  %v551_v5 = vld [vmem:[%s4960_s1 + $0x68] sm:$0xff] }
   0x2   :  { %v569_v2 = vld [vmem:[%s4960_s1 + $0xf8] sm:$0xff]  ;;  %2797 = vmatpush.msra.mxu2 %v553_v0  ;;  %v568_v4 = vld [vmem:[%s4960_s1 + $0xf0] sm:$0xff]  ;;  %32 = vst [vmem:[#allocation2] sm:$0xff] %v2845_v3  ;;  %v567_v6 = vld [vmem:[%s4960_s1 + $0xe8] sm:$0xff]  ;;  %686 = vmatpush.msra.mxu0 %v553_v0 }
   0x3   :  { %2813 = vmatpush.msra.mxu3 %v569_v2  ;;  %751 = vmatpush.msra.mxu1 %v569_v2  ;;  %33 = vst [vmem:[#allocation2 + $0x8] sm:$0x3] %v2845_v3  ;;  %v550_v7 = vld [vmem:[%s4960_s1 + $0x60] sm:$0xff]  ;;  %v549_v9 = vld [vmem:[%s4960_s1 + $0x58] sm:$0xff]  ;;  %v548_v11 = vld [vmem:[%s4960_s1 + $0x50] sm:$0xff] }
   0x4   :  { %2798 = vmatpush.msra.mxu2 %v552_v1  ;;  %34 = vst [vmem:[#allocation2 + $0x10] sm:$0xff] %v2845_v3  ;;  %v566_v8 = vld [vmem:[%s4960_s1 + $0xe0] sm:$0xff]  ;;  %687 = vmatpush.msra.mxu0 %v552_v1  ;;  %v565_v10 = vld [vmem:[%s4960_s1 + $0xd8] sm:$0xff]  ;;  %v564_v12 = vld [vmem:[%s4960_s1 + $0xd0] sm:$0xff] }
   0x5   :  { %2814 = vmatpush.msra.mxu3 %v568_v4  ;;  %752 = vmatpush.msra.mxu1 %v568_v4  ;;  %35 = vst [vmem:[#allocation2 + $0x18] sm:$0x3] %v2845_v3  ;;  %v547_v13 = vld [vmem:[%s4960_s1 + $0x48] sm:$0xff]  ;;  %v546_v15 = vld [vmem:[%s4960_s1 + $0x40] sm:$0xff]  ;;  %v545_v17 = vld [vmem:[%s4960_s1 + $0x38] sm:$0xff] }
   0x6   :  { %2799 = vmatpush.msra.mxu2 %v551_v5  ;;  %36 = vst [vmem:[#allocation2 + $0x20] sm:$0xff] %v2845_v3  ;;  %688 = vmatpush.msra.mxu0 %v551_v5  ;;  %v563_v14 = vld [vmem:[%s4960_s1 + $0xc8] sm:$0xff]  ;;  %v562_v16 = vld [vmem:[%s4960_s1 + $0xc0] sm:$0xff]  ;;  %v561_v18 = vld [vmem:[%s4960_s1 + $0xb8] sm:$0xff] }
   0x7   :  { %2815 = vmatpush.msra.mxu3 %v567_v6  ;;  %753 = vmatpush.msra.mxu1 %v567_v6  ;;  %37 = vst [vmem:[#allocation2 + $0x28] sm:$0x3] %v2845_v3  ;;  %v544_v19 = vld [vmem:[%s4960_s1 + $0x30] sm:$0xff]  ;;  %v543_v21 = vld [vmem:[%s4960_s1 + $0x28] sm:$0xff]  ;;  %v542_v23 = vld [vmem:[%s4960_s1 + $0x20] sm:$0xff] }
   0x8   :  { %2800 = vmatpush.msra.mxu2 %v550_v7  ;;  %38 = vst [vmem:[#allocation2 + $0x30] sm:$0xff] %v2845_v3  ;;  %689 = vmatpush.msra.mxu0 %v550_v7  ;;  %v560_v20 = vld [vmem:[%s4960_s1 + $0xb0] sm:$0xff]  ;;  %v559_v22 = vld [vmem:[%s4960_s1 + $0xa8] sm:$0xff]  ;;  %v558_v24 = vld [vmem:[%s4960_s1 + $0xa0] sm:$0xff] }
   0x9   :  { %2816 = vmatpush.msra.mxu3 %v566_v8  ;;  %754 = vmatpush.msra.mxu1 %v566_v8  ;;  %39 = vst [vmem:[#allocation2 + $0x38] sm:$0x3] %v2845_v3  ;;  %v541_v25 = vld [vmem:[%s4960_s1 + $0x18] sm:$0xff]  ;;  %v540_v27 = vld [vmem:[%s4960_s1 + $0x10] sm:$0xff]  ;;  %v539_v29 = vld [vmem:[%s4960_s1 + $0x8] sm:$0xff] }
   0xa   :  { %2801 = vmatpush.msra.mxu2 %v549_v9  ;;  %40 = vst [vmem:[#allocation2 + $0x40] sm:$0xff] %v2845_v3  ;;  %690 = vmatpush.msra.mxu0 %v549_v9  ;;  %v557_v26 = vld [vmem:[%s4960_s1 + $0x98] sm:$0xff]  ;;  %v556_v28 = vld [vmem:[%s4960_s1 + $0x90] sm:$0xff]  ;;  %v555_v30 = vld [vmem:[%s4960_s1 + $0x88] sm:$0xff] }
   0xb   :  { %2817 = vmatpush.msra.mxu3 %v565_v10  ;;  %755 = vmatpush.msra.mxu1 %v565_v10  ;;  %41 = vst [vmem:[#allocation2 + $0x48] sm:$0x3] %v2845_v3  ;;  %v538_v31 = vld [vmem:[%s4960_s1] sm:$0xff]  ;;  %v585_v34 = vld [vmem:[%s4960_s1 + $0x178] sm:$0xff]  ;;  %v584_v36 = vld [vmem:[%s4960_s1 + $0x170] sm:$0xff] }
   0xc   :  { %2802 = vmatpush.msra.mxu2 %v548_v11  ;;  %42 = vst [vmem:[#allocation2 + $0x50] sm:$0xff] %v2845_v3  ;;  %691 = vmatpush.msra.mxu0 %v548_v11  ;;  %v554_v32 = vld [vmem:[%s4960_s1 + $0x80] sm:$0xff]  ;;  %v601_v35 = vld [vmem:[%s4960_s1 + $0x1f8] sm:$0xff]  ;;  %v600_v37 = vld [vmem:[%s4960_s1 + $0x1f0] sm:$0xff] }
   0xd   :  { %2818 = vmatpush.msra.mxu3 %v564_v12  ;;  %756 = vmatpush.msra.mxu1 %v564_v12  ;;  %43 = vst [vmem:[#allocation2 + $0x58] sm:$0x3] %v2845_v3  ;;  %v137_v38 = vld [vmem:[#allocation2 + $0x1] sm:$0xff]  ;;  %v617_v41 = vld [vmem:[%s4960_s1 + $0x278] sm:$0xff]  ;;  %v616_v45 = vld [vmem:[%s4960_s1 + $0x270] sm:$0xff] }
   0xe   :  { %2803 = vmatpush.msra.mxu2 %v547_v13  ;;  %44 = vst [vmem:[#allocation2 + $0x60] sm:$0xff] %v2845_v3  ;;  %692 = vmatpush.msra.mxu0 %v547_v13  ;;  %v583_v39 = vld [vmem:[%s4960_s1 + $0x168] sm:$0xff]  ;;  %v582_v42 = vld [vmem:[%s4960_s1 + $0x160] sm:$0xff]  ;;  %v581_v47 = vld [vmem:[%s4960_s1 + $0x158] sm:$0xff] }
   0xf   :  { %2819 = vmatpush.msra.mxu3 %v563_v14  ;;  %757 = vmatpush.msra.mxu1 %v563_v14  ;;  %45 = vst [vmem:[#allocation2 + $0x68] sm:$0x3] %v2845_v3  ;;  %v599_v40 = vld [vmem:[%s4960_s1 + $0x1e8] sm:$0xff]  ;;  %v598_v43 = vld [vmem:[%s4960_s1 + $0x1e0] sm:$0xff]  ;;  %v597_v48 = vld [vmem:[%s4960_s1 + $0x1d8] sm:$0xff] }
  0x10   :  { %2804 = vmatpush.msra.mxu2 %v546_v15  ;;  %46 = vst [vmem:[#allocation2 + $0x70] sm:$0xff] %v2845_v3  ;;  %693 = vmatpush.msra.mxu0 %v546_v15  ;;  %v3063_v44 = vld [vmem:[%s4961_s0 + $0x40] sm:$0xff]  ;;  %v3072_v46 = vld [vmem:[%s4961_s0 + $0x48] sm:$0xff]  ;;  %v580_v51 = vld [vmem:[%s4960_s1 + $0x150] sm:$0xff] }
  0x11   :  { %2820 = vmatpush.msra.mxu3 %v562_v16  ;;  %758 = vmatpush.msra.mxu1 %v562_v16  ;;  %47 = vst [vmem:[#allocation2 + $0x78] sm:$0x3] %v2845_v3  ;;  %v3084_v49 = vld [vmem:[%s4961_s0] sm:$0xff]  ;;  %v615_v50 = vld [vmem:[%s4960_s1 + $0x268] sm:$0xff]  ;;  %v596_v52 = vld [vmem:[%s4960_s1 + $0x1d0] sm:$0xff] }
  0x12   :  { %2805 = vmatpush.msra.mxu2 %v545_v17  ;;  %48 = vst [vmem:[#allocation2 + $0x80] sm:$0xff] %v2845_v3  ;;  %694 = vmatpush.msra.mxu0 %v545_v17  ;;  %v3100_v53 = vld [vmem:[%s4961_s0 + $0x50] sm:$0xff]  ;;  %v614_v54 = vld [vmem:[%s4960_s1 + $0x260] sm:$0xff]  ;;  %v3109_v55 = vld [vmem:[%s4961_s0 + $0x8] sm:$0xff] }
  0x13   :  { %2821 = vmatpush.msra.mxu3 %v561_v18  ;;  %759 = vmatpush.msra.mxu1 %v561_v18  ;;  %49 = vst [vmem:[#allocation2 + $0x88] sm:$0x3] %v2845_v3  ;;  %v3114_v56 = vld [vmem:[%s4961_s0 + $0x58] sm:$0xff]  ;;  %v579_v57 = vld [vmem:[%s4960_s1 + $0x148] sm:$0xff]  ;;  %v3130_v60 = vld [vmem:[%s4961_s0 + $0x10] sm:$0xff] }
  0x14   :  { %2806 = vmatpush.msra.mxu2 %v544_v19  ;;  %50 = vst [vmem:[#allocation2 + $0x90] sm:$0xff] %v2845_v3  ;;  %695 = vmatpush.msra.mxu0 %v544_v19  ;;  %v595_v58 = vld [vmem:[%s4960_s1 + $0x1c8] sm:$0xff]  ;;  %v613_v59 = vld [vmem:[%s4960_s1 + $0x258] sm:$0xff]  ;;  %v578_v61 = vld [vmem:[%s4960_s1 + $0x140] sm:$0xff] }
  0x15   :  { %2822 = vmatpush.msra.mxu3 %v560_v20  ;;  %760 = vmatpush.msra.mxu1 %v560_v20  ;;  %51 = vst [vmem:[#allocation2 + $0x98] sm:$0x3] %v2845_v3  ;;  %v594_v62 = vld [vmem:[%s4960_s1 + $0x1c0] sm:$0xff]  ;;  %v3149_v0 = vld [vmem:[%s4961_s0 + $0x18] sm:$0xff]  ;;  %v612_v1 = vld [vmem:[%s4960_s1 + $0x250] sm:$0xff] }
  0x16   :  { %2807 = vmatpush.msra.mxu2 %v543_v21  ;;  %53 = vst [vmem:[#allocation2 + $0xa8] sm:$0x3] %v2845_v3  ;;  %696 = vmatpush.msra.mxu0 %v543_v21  ;;  %v3143_v63 = vld [vmem:[%s4961_s0 + $0x60] sm:$0xff]  ;;  %v577_v2 = vld [vmem:[%s4960_s1 + $0x138] sm:$0xff]  ;;  %v3167_v5 = vld [vmem:[%s4961_s0 + $0x68] sm:$0xff] }
  0x17   :  { %2823 = vmatpush.msra.mxu3 %v559_v22  ;;  %54 = vst [vmem:[#allocation2 + $0xb0] sm:$0xff] %v2845_v3  ;;  %761 = vmatpush.msra.mxu1 %v559_v22  ;;  %v593_v4 = vld [vmem:[%s4960_s1 + $0x1b8] sm:$0xff]  ;;  %v611_v6 = vld [vmem:[%s4960_s1 + $0x248] sm:$0xff]  ;;  %v576_v7 = vld [vmem:[%s4960_s1 + $0x130] sm:$0xff] }
  0x18   :  { %2808 = vmatpush.msra.mxu2 %v542_v23  ;;  %55 = vst [vmem:[#allocation2 + $0xb8] sm:$0x3] %v2845_v3  ;;  %697 = vmatpush.msra.mxu0 %v542_v23  ;;  %v592_v9 = vld [vmem:[%s4960_s1 + $0x1b0] sm:$0xff]  ;;  %v610_v10 = vld [vmem:[%s4960_s1 + $0x240] sm:$0xff]  ;;  %v575_v11 = vld [vmem:[%s4960_s1 + $0x128] sm:$0xff] }
  0x19   :  { %2824 = vmatpush.msra.mxu3 %v558_v24  ;;  %56 = vst [vmem:[#allocation2 + $0xc0] sm:$0xff] %v2845_v3  ;;  %762 = vmatpush.msra.mxu1 %v558_v24  ;;  %v591_v12 = vld [vmem:[%s4960_s1 + $0x1a8] sm:$0xff]  ;;  %v633_v13 = vld [vmem:[%s4960_s1 + $0x2f8] sm:$0xff]  ;;  %v574_v15 = vld [vmem:[%s4960_s1 + $0x120] sm:$0xff] }
  0x1a   :  { %2809 = vmatpush.msra.mxu2 %v541_v25  ;;  %57 = vst [vmem:[#allocation2 + $0xc8] sm:$0x3] %v2845_v3  ;;  %698 = vmatpush.msra.mxu0 %v541_v25  ;;  %v609_v14 = vld [vmem:[%s4960_s1 + $0x238] sm:$0xff]  ;;  %v3207_v16 = vld [vmem:[%s4961_s0 + $0x20] sm:$0xff]  ;;  %v608_v19 = vld [vmem:[%s4960_s1 + $0x230] sm:$0xff] }
  0x1b   :  { %2825 = vmatpush.msra.mxu3 %v557_v26  ;;  %58 = vst [vmem:[#allocation2 + $0xd0] sm:$0xff] %v2845_v3  ;;  %763 = vmatpush.msra.mxu1 %v557_v26  ;;  %v590_v18 = vld [vmem:[%s4960_s1 + $0x1a0] sm:$0xff]  ;;  %v632_v21 = vld [vmem:[%s4960_s1 + $0x2f0] sm:$0xff]  ;;  %v573_v23 = vld [vmem:[%s4960_s1 + $0x118] sm:$0xff] }
  0x1c   :  { %2810 = vmatpush.msra.mxu2 %v540_v27  ;;  %59 = vst [vmem:[#allocation2 + $0xd8] sm:$0x3] %v2845_v3  ;;  %699 = vmatpush.msra.mxu0 %v540_v27  ;;  %v3226_v22 = vld [vmem:[%s4961_s0 + $0x70] sm:$0xff]  ;;  %v589_v24 = vld [vmem:[%s4960_s1 + $0x198] sm:$0xff]  ;;  %v607_v25 = vld [vmem:[%s4960_s1 + $0x228] sm:$0xff] }
  0x1d   :  { %2826 = vmatpush.msra.mxu3 %v556_v28  ;;  %60 = vst [vmem:[#allocation2 + $0xe0] sm:$0xff] %v2845_v3  ;;  %764 = vmatpush.msra.mxu1 %v556_v28  ;;  %v145_v33 = vld [vmem:[#allocation2 + $0xa1] sm:$0xff]  ;;  %v572_v27 = vld [vmem:[%s4960_s1 + $0x110] sm:$0xff] }
  0x1e   :  { %2811 = vmatpush.msra.mxu2 %v539_v29  ;;  %61 = vst [vmem:[#allocation2 + $0xe8] sm:$0x3] %v2845_v3  ;;  %700 = vmatpush.msra.mxu0 %v539_v29  ;;  %v631_v26 = vld [vmem:[%s4960_s1 + $0x2e8] sm:$0xff]  ;;  %v588_v28 = vld [vmem:[%s4960_s1 + $0x190] sm:$0xff]  ;;  %v606_v29 = vld [vmem:[%s4960_s1 + $0x220] sm:$0xff] }
  0x1f   :  { %2827 = vmatpush.msra.mxu3 %v555_v30  ;;  %62 = vst [vmem:[#allocation2 + $0xf0] sm:$0xff] %v2845_v3  ;;  %765 = vmatpush.msra.mxu1 %v555_v30  ;;  %v3256_v30 = vld [vmem:[%s4961_s0 + $0x28] sm:$0xff] }
  0x20   :  { %2812 = vmatpush.msra.mxu2 %v538_v31  ;;  %63 = vst [vmem:[#allocation2 + $0xf8] sm:$0x3] %v2845_v3  ;;  %701 = vmatpush.msra.mxu0 %v538_v31  ;;  %v630_v31 = vld [vmem:[%s4960_s1 + $0x2e0] sm:$0xff] }
  0x21   :  { %2828 = vmatpush.msra.mxu3 %v554_v32  ;;  %726 = vmatmul.f32.vlgmr.msra.gmra.mxu2 %v2845_v3  ;;  %64 = vst [vmem:[#allocation2 + $0x100] sm:$0xff] %v2845_v3 }
  0x22   :  { %791 = vmatmul.f32.vlgmr.msra.gmra.mxu3 %v145_v33  ;;  %65 = vst [vmem:[#allocation2 + $0x108] sm:$0x3] %v2845_v3  ;;  %816 = vmatpush.msrb.mxu2 %v585_v34  ;;  %v629_v33 = vld [vmem:[%s4960_s1 + $0x2d8] sm:$0xff] }
  0x23   :  { %881 = vmatpush.msrb.mxu3 %v601_v35  ;;  %66 = vst [vmem:[#allocation2 + $0x110] sm:$0xff] %v2845_v3  ;;  %766 = vmatpush.msra.mxu1 %v554_v32  ;;  %v628_v35 = vld [vmem:[%s4960_s1 + $0x2d0] sm:$0xff] }
  0x24   :  { %67 = vst [vmem:[#allocation2 + $0x118] sm:$0x3] %v2845_v3  ;;  %817 = vmatpush.msrb.mxu2 %v584_v36  ;;  %702 = vmatmul.f32.vlgmr.msra.gmra.mxu0 %v2845_v3  ;;  %v571_v36 = vld [vmem:[%s4960_s1 + $0x108] sm:$0xff] }
  0x25   :  { %882 = vmatpush.msrb.mxu3 %v600_v37  ;;  %68 = vst [vmem:[#allocation2 + $0x120] sm:$0xff] %v2845_v3  ;;  %767 = vmatmul.f32.vlgmr.msra.gmra.mxu1 %v137_v38  ;;  %v587_v37 = vld [vmem:[%s4960_s1 + $0x188] sm:$0xff]  ;;  %v605_v38 = vld [vmem:[%s4960_s1 + $0x218] sm:$0xff] }
  0x26   :  { %69 = vst [vmem:[#allocation2 + $0x128] sm:$0x3] %v2845_v3  ;;  %818 = vmatpush.msrb.mxu2 %v583_v39  ;;  %946 = vmatpush.msrb.mxu0 %v617_v41  ;;  %v570_v39 = vld [vmem:[%s4960_s1 + $0x100] sm:$0xff] }
  0x27   :  { %883 = vmatpush.msrb.mxu3 %v599_v40  ;;  %70 = vst [vmem:[#allocation2 + $0x130] sm:$0xff] %v2845_v3  ;;  %1011 = vmatpush.msrb.mxu1 %v633_v13  ;;  %v627_v40 = vld [vmem:[%s4960_s1 + $0x2c8] sm:$0xff]  ;;  %v586_v41 = vld [vmem:[%s4960_s1 + $0x180] sm:$0xff] }
  0x28   :  { %71 = vst [vmem:[#allocation2 + $0x138] sm:$0x3] %v2845_v3  ;;  %819 = vmatpush.msrb.mxu2 %v582_v42  ;;  %947 = vmatpush.msrb.mxu0 %v616_v45  ;;  %v604_v42 = vld [vmem:[%s4960_s1 + $0x210] sm:$0xff] }
  0x29   :  { %884 = vmatpush.msrb.mxu3 %v598_v43  ;;  %97 = vst [vmem:[#allocation2 + $0xb1] sm:$0xff] %v3063_v44  ;;  %1012 = vmatpush.msrb.mxu1 %v632_v21  ;;  %v626_v43 = vld [vmem:[%s4960_s1 + $0x2c0] sm:$0xff]  ;;  %v3304_v45 = vld [vmem:[%s4961_s0 + $0x30] sm:$0xff] }
  0x2a   :  { %794 = vmatmul.f32.gmra.mxu3 %v3063_v44  ;;  %98 = vst [vmem:[#allocation2 + $0xc1] sm:$0xff] %v3072_v46  ;;  %820 = vmatpush.msrb.mxu2 %v581_v47 }
  0x2b   :  { %885 = vmatpush.msrb.mxu3 %v597_v48  ;;  %89 = vst [vmem:[#allocation2 + $0x11] sm:$0xff] %v3084_v49  ;;  %948 = vmatpush.msrb.mxu0 %v615_v50  ;;  %v625_v48 = vld [vmem:[%s4960_s1 + $0x2b8] sm:$0xff] }
  0x2c   :  { %821 = vmatpush.msrb.mxu2 %v580_v51  ;;  %99 = vst [vmem:[#allocation2 + $0xd1] sm:$0xff] %v3100_v53  ;;  %1013 = vmatpush.msrb.mxu1 %v631_v26  ;;  %v624_v51 = vld [vmem:[%s4960_s1 + $0x2b0] sm:$0xff] }
  0x2d   :  { %886 = vmatpush.msrb.mxu3 %v596_v52  ;;  %770 = vmatmul.f32.gmra.mxu1 %v3084_v49  ;;  %90 = vst [vmem:[#allocation2 + $0x21] sm:$0xff] %v3109_v55  ;;  %v649_v52 = vld [vmem:[%s4960_s1 + $0x378] sm:$0xff] }
  0x2e   :  { %949 = vmatpush.msrb.mxu0 %v614_v54  ;;  %822 = vmatpush.msrb.mxu2 %v579_v57  ;;  %100 = vst [vmem:[#allocation2 + $0xe1] sm:$0xff] %v3114_v56  ;;  %v603_v54 = vld [vmem:[%s4960_s1 + $0x208] sm:$0xff]  ;;  %v665_v57 = vld [vmem:[%s4960_s1 + $0x3f8] sm:$0xff] }
  0x2f   :  { %887 = vmatpush.msrb.mxu3 %v595_v58  ;;  %91 = vst [vmem:[#allocation2 + $0x31] sm:$0xff] %v3130_v60  ;;  %1014 = vmatpush.msrb.mxu1 %v630_v31  ;;  %v623_v58 = vld [vmem:[%s4960_s1 + $0x2a8] sm:$0xff] }
  0x30   :  { %950 = vmatpush.msrb.mxu0 %v613_v59  ;;  %v3158_v3 = vld [vmem:[#allocation2 + $0xb0] sm:$0xff]  ;;  %823 = vmatpush.msrb.mxu2 %v578_v61  ;;  %101 = vst [vmem:[#allocation2 + $0xf1] sm:$0xff] %v3143_v63  ;;  %v602_v59 = vld [vmem:[%s4960_s1 + $0x200] sm:$0xff] }
  0x31   :  { %888 = vmatpush.msrb.mxu3 %v594_v62  ;;  %729 = vmatmul.f32.gmra.mxu2 %v3158_v3  ;;  %92 = vst [vmem:[#allocation2 + $0x41] sm:$0xff] %v3149_v0  ;;  %v3209_v17 = vld [vmem:[#allocation2 + $0xc0] sm:$0xff] }
  0x32   :  { %797 = vmatmul.f32.gmra.mxu3 %v3072_v46  ;;  %v3178_v8 = vld [vmem:[#allocation2 + $0x10] sm:$0xff]  ;;  %951 = vmatpush.msrb.mxu0 %v612_v1  ;;  %102 = vst [vmem:[#allocation2 + $0x101] sm:$0xff] %v3167_v5  ;;  %v622_v61 = vld [vmem:[%s4960_s1 + $0x2a0] sm:$0xff]  ;;  %v621_v1 = vld [vmem:[%s4960_s1 + $0x298] sm:$0xff] }
  0x33   :  { %824 = vmatpush.msrb.mxu2 %v577_v2  ;;  %705 = vmatmul.f32.gmra.mxu0 %v3178_v8  ;;  %93 = vst [vmem:[#allocation2 + $0x51] sm:$0xff] %v3207_v16  ;;  %v3263_v32 = vld [vmem:[#allocation2 + $0xd0] sm:$0xff] }
  0x34   :  { %889 = vmatpush.msrb.mxu3 %v593_v4  ;;  %952 = vmatpush.msrb.mxu0 %v611_v6  ;;  %v3218_v20 = vld [vmem:[#allocation2 + $0x20] sm:$0xff]  ;;  %103 = vst [vmem:[#allocation2 + $0x111] sm:$0xff] %v3226_v22  ;;  %v620_v4 = vld [vmem:[%s4960_s1 + $0x290] sm:$0xff] }
  0x35   :  { %825 = vmatpush.msrb.mxu2 %v576_v7  ;;  %773 = vmatmul.f32.gmra.mxu1 %v3109_v55  ;;  %94 = vst [vmem:[#allocation2 + $0x61] sm:$0xff] %v3256_v30  ;;  %v3306_v47 = vld [vmem:[#allocation2 + $0xe0] sm:$0xff]  ;;  %v648_v6 = vld [vmem:[%s4960_s1 + $0x370] sm:$0xff] }
  0x36   :  { %890 = vmatpush.msrb.mxu3 %v592_v9  ;;  %953 = vmatpush.msrb.mxu0 %v610_v10  ;;  %v3268_v34 = vld [vmem:[#allocation2 + $0x30] sm:$0xff]  ;;  %95 = vst [vmem:[#allocation2 + $0x71] sm:$0xff] %v3304_v45  ;;  %v681_v9 = vld [vmem:[%s4960_s1 + $0x478] sm:$0xff]  ;;  %v619_v10 = vld [vmem:[%s4960_s1 + $0x288] sm:$0xff] }
  0x37   :  { %826 = vmatpush.msrb.mxu2 %v575_v11  ;;  %1015 = vmatpush.msrb.mxu1 %v629_v33  ;;  %v3339_v62 = vld [vmem:[#allocation2 + $0xf0] sm:$0xff]  ;;  %v618_v11 = vld [vmem:[%s4960_s1 + $0x280] sm:$0xff] }
  0x38   :  { %891 = vmatpush.msrb.mxu3 %v591_v12  ;;  %954 = vmatpush.msrb.mxu0 %v609_v14  ;;  %v3312_v50 = vld [vmem:[#allocation2 + $0x40] sm:$0xff]  ;;  %v664_v7 = vld [vmem:[%s4960_s1 + $0x3f0] sm:$0xff]  ;;  %v647_v14 = vld [vmem:[%s4960_s1 + $0x368] sm:$0xff] }
  0x39   :  { %827 = vmatpush.msrb.mxu2 %v574_v15  ;;  %1016 = vmatpush.msrb.mxu1 %v628_v35  ;;  %v3368_v12 = vld [vmem:[#allocation2 + $0x100] sm:$0xff]  ;;  %v663_v15 = vld [vmem:[%s4960_s1 + $0x3e8] sm:$0xff]  ;;  %v170_v26 = vld [vmem:[#allocation2 + $0x12] sm:$0xff] }
  0x3a   :  { %732 = vmatmul.f32.gmra.mxu2 %v3209_v17  ;;  %800 = vmatmul.f32.gmra.mxu3 %v3100_v53  ;;  %v3344_v2 = vld [vmem:[#allocation2 + $0x50] sm:$0xff]  ;;  %v3412_v31 = vld [vmem:[#allocation2 + $0x22] sm:$0xff] }
  0x3b   :  { %892 = vmatpush.msrb.mxu3 %v590_v18  ;;  %955 = vmatpush.msrb.mxu0 %v608_v19  ;;  %v680_v18 = vld [vmem:[%s4960_s1 + $0x470] sm:$0xff] }
  0x3c   :  { %708 = vmatmul.f32.gmra.mxu0 %v3218_v20  ;;  %828 = vmatpush.msrb.mxu2 %v573_v23  ;;  %v3370_v13 = vld [vmem:[#allocation2 + $0x60] sm:$0xff]  ;;  %v3385_v19 = vld [vmem:[#allocation2 + $0x110] sm:$0xff] }
  0x3d   :  { %893 = vmatpush.msrb.mxu3 %v589_v24  ;;  %776 = vmatmul.f32.gmra.mxu1 %v3130_v60  ;;  %v3387_v21 = vld [vmem:[#allocation2 + $0x70] sm:$0xff]  ;;  %v646_v23 = vld [vmem:[%s4960_s1 + $0x360] sm:$0xff] }
  0x3e   :  { %956 = vmatpush.msrb.mxu0 %v607_v25  ;;  %829 = vmatpush.msrb.mxu2 %v572_v27  ;;  %v662_v24 = vld [vmem:[%s4960_s1 + $0x3e0] sm:$0xff]  ;;  %v679_v25 = vld [vmem:[%s4960_s1 + $0x468] sm:$0xff]  ;;  %v645_v27 = vld [vmem:[%s4960_s1 + $0x358] sm:$0xff] }
  0x3f   :  { %894 = vmatpush.msrb.mxu3 %v588_v28  ;;  %1017 = vmatpush.msrb.mxu1 %v627_v40  ;;  %v661_v28 = vld [vmem:[%s4960_s1 + $0x3d8] sm:$0xff]  ;;  %v644_v33 = vld [vmem:[%s4960_s1 + $0x350] sm:$0xff] }
  0x40   :  { %957 = vmatpush.msrb.mxu0 %v606_v29  ;;  %830 = vmatpush.msrb.mxu2 %v571_v36  ;;  %v678_v29 = vld [vmem:[%s4960_s1 + $0x460] sm:$0xff]  ;;  %v660_v35 = vld [vmem:[%s4960_s1 + $0x3d0] sm:$0xff]  ;;  %v3443_v40 = vld [vmem:[%s4961_s0 + $0x38] sm:$0xff] }
  0x41   :  { %895 = vmatpush.msrb.mxu3 %v587_v37  ;;  %1018 = vmatpush.msrb.mxu1 %v626_v43  ;;  %v3426_v36 = vld [vmem:[#allocation2 + $0x32] sm:$0xff]  ;;  %v643_v37 = vld [vmem:[%s4960_s1 + $0x348] sm:$0xff]  ;;  %96 = vst [vmem:[#allocation2 + $0x81] sm:$0xff] %v3443_v40  ;;  %v658_v43 = vld [vmem:[%s4960_s1 + $0x3c0] sm:$0xff] }
  0x42   :  { %735 = vmatmul.f32.gmra.mxu2 %v3263_v32  ;;  %803 = vmatmul.f32.gmra.mxu3 %v3114_v56 }
  0x43   :  { %958 = vmatpush.msrb.mxu0 %v605_v38  ;;  %831 = vmatpush.msrb.mxu2 %v570_v39  ;;  %v659_v38 = vld [vmem:[%s4960_s1 + $0x3c8] sm:$0xff]  ;;  %v676_v39 = vld [vmem:[%s4960_s1 + $0x450] sm:$0xff] }
  0x44   :  { %711 = vmatmul.f32.gmra.mxu0 %v3268_v34  ;;  %896 = vmatpush.msrb.mxu3 %v586_v41  ;;  %v3447_v41 = vld [vmem:[#allocation2 + $0x42] sm:$0xff] }
  0x45   :  { %779 = vmatmul.f32.gmra.mxu1 %v3149_v0  ;;  %959 = vmatpush.msrb.mxu0 %v604_v42  ;;  %v642_v42 = vld [vmem:[%s4960_s1 + $0x340] sm:$0xff] }
  0x46   :  { %1019 = vmatpush.msrb.mxu1 %v625_v48  ;;  %1076 = vmatpush.msra.mxu2 %v649_v52  ;;  %v675_v48 = vld [vmem:[%s4960_s1 + $0x448] sm:$0xff]  ;;  %v641_v52 = vld [vmem:[%s4960_s1 + $0x338] sm:$0xff] }
  0x47   :  { %1141 = vmatpush.msra.mxu3 %v665_v57  ;;  %960 = vmatpush.msrb.mxu0 %v603_v54  ;;  %v657_v54 = vld [vmem:[%s4960_s1 + $0x3b8] sm:$0xff]  ;;  %v674_v57 = vld [vmem:[%s4960_s1 + $0x440] sm:$0xff] }
  0x48   :  { %1020 = vmatpush.msrb.mxu1 %v624_v51  ;;  %1077 = vmatpush.msra.mxu2 %v648_v6  ;;  %v3462_v51 = vld [vmem:[#allocation2 + $0x52] sm:$0xff]  ;;  %v3495_v6 = vld [vmem:[#allocation2 + $0x80] sm:$0xff] }
  0x49   :  { %961 = vmatpush.msrb.mxu0 %v602_v59  ;;  %1142 = vmatpush.msra.mxu3 %v664_v7  ;;  %v640_v59 = vld [vmem:[%s4960_s1 + $0x330] sm:$0xff]  ;;  %v639_v7 = vld [vmem:[%s4960_s1 + $0x328] sm:$0xff] }
  0x4a   :  { %738 = vmatmul.f32.gmra.mxu2 %v3306_v47  ;;  %806 = vmatmul.f32.gmra.mxu3 %v3143_v63 }
  0x4b   :  { %1021 = vmatpush.msrb.mxu1 %v623_v58  ;;  %1206 = vmatpush.msra.mxu0 %v681_v9  ;;  %v3477_v58 = vld [vmem:[#allocation2 + $0x62] sm:$0xff] }
  0x4c   :  { %714 = vmatmul.f32.gmra.mxu0 %v3312_v50  ;;  %1078 = vmatpush.msra.mxu2 %v647_v14  ;;  %v655_v9 = vld [vmem:[%s4960_s1 + $0x3a8] sm:$0xff]  ;;  %v638_v14 = vld [vmem:[%s4960_s1 + $0x320] sm:$0xff] }
  0x4d   :  { %782 = vmatmul.f32.gmra.mxu1 %v3207_v16  ;;  %1143 = vmatpush.msra.mxu3 %v663_v15  ;;  %v654_v15 = vld [vmem:[%s4960_s1 + $0x3a0] sm:$0xff] }
  0x4e   :  { %1022 = vmatpush.msrb.mxu1 %v622_v61  ;;  %1207 = vmatpush.msra.mxu0 %v680_v18  ;;  %v656_v61 = vld [vmem:[%s4960_s1 + $0x3b0] sm:$0xff]  ;;  %v671_v18 = vld [vmem:[%s4960_s1 + $0x428] sm:$0xff] }
  0x4f   :  { %1079 = vmatpush.msra.mxu2 %v646_v23  ;;  %1144 = vmatpush.msra.mxu3 %v662_v24  ;;  %v178_v24 = vld [vmem:[#allocation2 + $0xb2] sm:$0xff] }
  0x50   :  { %1023 = vmatpush.msrb.mxu1 %v621_v1  ;;  %1208 = vmatpush.msra.mxu0 %v679_v25  ;;  %v673_v1 = vld [vmem:[%s4960_s1 + $0x438] sm:$0xff] }
  0x51   :  { %1080 = vmatpush.msra.mxu2 %v645_v27  ;;  %1145 = vmatpush.msra.mxu3 %v661_v28  ;;  %v670_v27 = vld [vmem:[%s4960_s1 + $0x420] sm:$0xff] }
  0x52   :  { %741 = vmatmul.f32.gmra.mxu2 %v3339_v62  ;;  %809 = vmatmul.f32.gmra.mxu3 %v3167_v5 }
  0x53   :  { %1024 = vmatpush.msrb.mxu1 %v620_v4  ;;  %1209 = vmatpush.msra.mxu0 %v678_v29  ;;  %v3492_v4 = vld [vmem:[#allocation2 + $0x72] sm:$0xff] }
  0x54   :  { %717 = vmatmul.f32.gmra.mxu0 %v3344_v2  ;;  %1081 = vmatpush.msra.mxu2 %v644_v33 }
  0x55   :  { %785 = vmatmul.f32.gmra.mxu1 %v3256_v30  ;;  %1146 = vmatpush.msra.mxu3 %v660_v35  ;;  %v636_v35 = vld [vmem:[%s4960_s1 + $0x310] sm:$0xff] }
  0x56   :  { %1025 = vmatpush.msrb.mxu1 %v619_v10  ;;  %1082 = vmatpush.msra.mxu2 %v643_v37  ;;  %v672_v10 = vld [vmem:[%s4960_s1 + $0x430] sm:$0xff]  ;;  %v3559_v37 = vld [vmem:[%s4962_s2] ss:$0 sm:$0xff] }
  0x57   :  { %1147 = vmatpush.msra.mxu3 %v659_v38 }
  0x58   :  { %1026 = vmatpush.msrb.mxu1 %v618_v11  ;;  %1083 = vmatpush.msra.mxu2 %v642_v42  ;;  %v3508_v11 = vld [vmem:[#allocation2 + $0x82] sm:$0xff] }
  0x59   :  { %1148 = vmatpush.msra.mxu3 %v658_v43 }
  0x5a   :  { %744 = vmatmul.f32.gmra.mxu2 %v3368_v12  ;;  %812 = vmatmul.f32.gmra.mxu3 %v3226_v22 }
  0x5b   :  { %1084 = vmatpush.msra.mxu2 %v641_v52  ;;  %1149 = vmatpush.msra.mxu3 %v657_v54  ;;  %v651_v52 = vld [vmem:[%s4960_s1 + $0x388] sm:$0xff]  ;;  %v668_v54 = vld [vmem:[%s4960_s1 + $0x410] sm:$0xff] }
  0x5c   :  { %720 = vmatmul.f32.gmra.mxu0 %v3370_v13 }
  0x5d   :  { %788 = vmatmul.f32.gmra.mxu1 %v3304_v45  ;;  %1085 = vmatpush.msra.mxu2 %v640_v59 }
  0x5e   :  { %1150 = vmatpush.msra.mxu3 %v656_v61  ;;  %v3588_v61 = vld [vmem:[#allocation2 + $0xe2] sm:$0xff] }
  0x5f   :  { %1086 = vmatpush.msra.mxu2 %v639_v7 }
  0x60   :  { %1151 = vmatpush.msra.mxu3 %v655_v9 }
  0x61   :  { %1087 = vmatpush.msra.mxu2 %v638_v14  ;;  %v667_v14 = vld [vmem:[%s4960_s1 + $0x408] sm:$0xff] }
  0x62   :  { %747 = vmatmul.f32.gmra.mxu2 %v3385_v19  ;;  %897 = vmatmul.f32.vlgmr.msrb.gmra.mxu3 %v3178_v8  ;;  %v169_v8 = vld [vmem:[#allocation2 + $0x2] sm:$0xff] }
  0x63   :  { %1152 = vmatpush.msra.mxu3 %v654_v15 }
  0x64   :  { %723 = vmatmul.f32.gmra.mxu0 %v3387_v21 }
  0x65   :  { %1027 = vmatmul.f32.vlgmr.msrb.gmra.mxu1 %v170_v26 }
  0x6a   :  { %832 = vmatmul.f32.vlgmr.msrb.gmra.mxu2 %v169_v8  ;;  %900 = vmatmul.f32.gmra.mxu3 %v3218_v20  ;;  %v653_v8 = vld [vmem:[%s4960_s1 + $0x398] sm:$0xff] }
  0x6b   :  { %1153 = vmatpush.msra.mxu3 %v653_v8 }
  0x6c   :  { %962 = vmatmul.f32.vlgmr.msrb.gmra.mxu0 %v3084_v49  ;;  %v677_v49 = vld [vmem:[%s4960_s1 + $0x458] sm:$0xff] }
  0x6d   :  { %1030 = vmatmul.f32.gmra.mxu1 %v3412_v31  ;;  %1210 = vmatpush.msra.mxu0 %v677_v49  ;;  %v652_v49 = vld [vmem:[%s4960_s1 + $0x390] sm:$0xff] }
  0x6e   :  { %1154 = vmatpush.msra.mxu3 %v652_v49 }
  0x6f   :  { %1211 = vmatpush.msra.mxu0 %v676_v39  ;;  %v3562_v39 = vld [vmem:[#allocation2 + $0xd2] sm:$0xff] }
  0x70   :  { %1155 = vmatpush.msra.mxu3 %v651_v52 }
  0x71   :  { %1212 = vmatpush.msra.mxu0 %v675_v48 }
  0x72   :  { %835 = vmatmul.f32.gmra.mxu2 %v170_v26  ;;  %903 = vmatmul.f32.gmra.mxu3 %v3268_v34  ;;  %v637_v26 = vld [vmem:[%s4960_s1 + $0x318] sm:$0xff] }
  0x73   :  { %1213 = vmatpush.msra.mxu0 %v674_v57  ;;  %1088 = vmatpush.msra.mxu2 %v637_v26  ;;  %v3584_v57 = vld [vmem:[%s4961_s0 + $0x78] sm:$0xff] }
  0x74   :  { %965 = vmatmul.f32.gmra.mxu0 %v3109_v55  ;;  %104 = vst [vmem:[#allocation2 + $0x121] sm:$0xff] %v3584_v57 }
  0x75   :  { %1033 = vmatmul.f32.gmra.mxu1 %v3426_v36  ;;  %1214 = vmatpush.msra.mxu0 %v673_v1 }
  0x76   :  { %1089 = vmatpush.msra.mxu2 %v636_v35 }
  0x77   :  { %1215 = vmatpush.msra.mxu0 %v672_v10  ;;  %v650_v10 = vld [vmem:[%s4960_s1 + $0x380] sm:$0xff] }
  0x78   :  { %1156 = vmatpush.msra.mxu3 %v650_v10 }
  0x79   :  { %1216 = vmatpush.msra.mxu0 %v671_v18 }
  0x7a   :  { %838 = vmatmul.f32.gmra.mxu2 %v3412_v31  ;;  %906 = vmatmul.f32.gmra.mxu3 %v3312_v50 }
  0x7b   :  { %1217 = vmatpush.msra.mxu0 %v670_v27 }
  0x7c   :  { %968 = vmatmul.f32.gmra.mxu0 %v3130_v60 }
  0x7d   :  { %1036 = vmatmul.f32.gmra.mxu1 %v3447_v41 }
  0x82   :  { %841 = vmatmul.f32.gmra.mxu2 %v3426_v36  ;;  %909 = vmatmul.f32.gmra.mxu3 %v3344_v2 }
  0x84   :  { %971 = vmatmul.f32.gmra.mxu0 %v3149_v0 }
  0x85   :  { %1039 = vmatmul.f32.gmra.mxu1 %v3462_v51 }
  0x8a   :  { %844 = vmatmul.f32.gmra.mxu2 %v3447_v41  ;;  %912 = vmatmul.f32.gmra.mxu3 %v3370_v13 }
  0x8c   :  { %974 = vmatmul.f32.gmra.mxu0 %v3207_v16 }
  0x8d   :  { %1042 = vmatmul.f32.gmra.mxu1 %v3477_v58 }
  0x92   :  { %847 = vmatmul.f32.gmra.mxu2 %v3462_v51  ;;  %915 = vmatmul.f32.gmra.mxu3 %v3387_v21 }
  0x94   :  { %977 = vmatmul.f32.gmra.mxu0 %v3256_v30 }
  0x95   :  { %1045 = vmatmul.f32.gmra.mxu1 %v3492_v4 }
  0x9a   :  { %850 = vmatmul.f32.gmra.mxu2 %v3477_v58  ;;  %918 = vmatmul.f32.gmra.mxu3 %v3495_v6 }
  0x9c   :  { %980 = vmatmul.f32.gmra.mxu0 %v3304_v45 }
  0x9d   :  { %1048 = vmatmul.f32.gmra.mxu1 %v3508_v11 }
  0xa1   :  { %v3526_v25 = vpop.f32.mrf.mxu0 }
  0xa2   :  { %853 = vmatmul.f32.gmra.mxu2 %v3492_v4  ;;  %921 = vmatmul.f32.gmra.mxu3 %v3158_v3  ;;  %v177_v3 = vld [vmem:[#allocation2 + $0xa2] sm:$0xff] }
  0xa4   :  { %983 = vmatmul.f32.gmra.mxu0 %v3443_v40  ;;  %v3538_v28 = vpop.f32.mrf.mxu2 }
  0xa5   :  { %v3524_v23 = vpop.f32.mrf.mxu3  ;;  %1051 = vmatmul.f32.gmra.mxu1 %v178_v24 }
  0xaa   :  { %856 = vmatmul.f32.gmra.mxu2 %v177_v3  ;;  %924 = vmatmul.f32.gmra.mxu3 %v3209_v17  ;;  %v3541_v17 = vld [vmem:[#allocation2 + $0xc2] sm:$0xff] }
  0xac   :  { %986 = vmatmul.f32.gmra.mxu0 %v3063_v44  ;;  %v669_v44 = vld [vmem:[%s4960_s1 + $0x418] sm:$0xff] }
  0xad   :  { %v795_v29 = vpop.f32.mrf.mxu3  ;;  %1054 = vmatmul.f32.gmra.mxu1 %v3541_v17  ;;  %1218 = vmatpush.msra.mxu0 %v669_v44 }
  0xaf   :  { %1219 = vmatpush.msra.mxu0 %v668_v54  ;;  %v768_v54 = vpop.f32.mrf.mxu1 }
  0xb0   :  { %v3544_v33 = vpop.f32.mrf.mxu0 }
  0xb1   :  { %1220 = vmatpush.msra.mxu0 %v667_v14 }
  0xb2   :  { %859 = vmatmul.f32.gmra.mxu2 %v178_v24  ;;  %927 = vmatmul.f32.gmra.mxu3 %v3263_v32  ;;  %v3608_v24 = vld [vmem:[#allocation2 + $0xf2] sm:$0xff] }
  0xb4   :  { %989 = vmatmul.f32.gmra.mxu0 %v3072_v46  ;;  %v730_v32 = vpop.f32.mrf.mxu2  ;;  %v635_v46 = vld [vmem:[%s4960_s1 + $0x308] sm:$0xff] }
  0xb5   :  { %v798_v38 = vpop.f32.mrf.mxu3  ;;  %v731_v42 = vadd.f32 %v3559_v37, %v730_v32  ;;  %1057 = vmatmul.f32.gmra.mxu1 %v3562_v39  ;;  %1090 = vmatpush.msra.mxu2 %v635_v46  ;;  %v3633_v32 = vld [vmem:[#allocation2 + $0x112] sm:$0xff] }
  0xb7   :  { %v3566_v43 = vadd.f32 %v795_v29, %v731_v42  ;;  %v3622_v29 = vld [vmem:[#allocation2 + $0x102] sm:$0xff]  ;;  %v771_v10 = vpop.f32.mrf.mxu1 }
  0xb8   :  { %v3637_v42 = vld [vmem:[#allocation2 + $0x120] sm:$0xff] }
  0xb9   :  { %v3568_v48 = vpop.f32.mrf.mxu0 }
  0xba   :  { %862 = vmatmul.f32.gmra.mxu2 %v3541_v17  ;;  %930 = vmatmul.f32.gmra.mxu3 %v3306_v47 }
  0xbc   :  { %992 = vmatmul.f32.gmra.mxu0 %v3100_v53  ;;  %v634_v53 = vld [vmem:[%s4960_s1 + $0x300] sm:$0xff] }
  0xbd   :  { %v733_v47 = vpop.f32.mrf.mxu2  ;;  %v801_v59 = vpop.f32.mrf.mxu3  ;;  %1060 = vmatmul.f32.gmra.mxu1 %v3588_v61  ;;  %1091 = vmatpush.msra.mxu2 %v634_v53 }
  0xbe   :  { %v734_v1 = vadd.f32 %v3559_v37, %v733_v47 }
  0xc0   :  { %v3592_v7 = vadd.f32 %v798_v38, %v734_v1 }
  0xc1   :  { %v3594_v9 = vpop.f32.mrf.mxu0 }
  0xc2   :  { %865 = vmatmul.f32.gmra.mxu2 %v3562_v39  ;;  %933 = vmatmul.f32.gmra.mxu3 %v3339_v62 }
  0xc4   :  { %995 = vmatmul.f32.gmra.mxu0 %v3114_v56  ;;  %v666_v56 = vld [vmem:[%s4960_s1 + $0x400] sm:$0xff] }
  0xc5   :  { %v736_v15 = vpop.f32.mrf.mxu2  ;;  %v804_v18 = vpop.f32.mrf.mxu3  ;;  %1063 = vmatmul.f32.gmra.mxu1 %v3608_v24  ;;  %1221 = vmatpush.msra.mxu0 %v666_v56 }
  0xc6   :  { %v737_v62 = vadd.f32 %v3559_v37, %v736_v15 }
  0xc8   :  { %v3612_v3 = vadd.f32 %v801_v59, %v737_v62 }
  0xc9   :  { %v3614_v26 = vpop.f32.mrf.mxu0 }
  0xca   :  { %868 = vmatmul.f32.gmra.mxu2 %v3588_v61  ;;  %936 = vmatmul.f32.gmra.mxu3 %v3368_v12 }
  0xcc   :  { %998 = vmatmul.f32.gmra.mxu0 %v3143_v63 }
  0xcd   :  { %v739_v8 = vpop.f32.mrf.mxu2  ;;  %v807_v27 = vpop.f32.mrf.mxu3  ;;  %1066 = vmatmul.f32.gmra.mxu1 %v3622_v29 }
  0xce   :  { %v740_v35 = vadd.f32 %v3559_v37, %v739_v8 }
  0xd0   :  { %v3626_v49 = vadd.f32 %v804_v18, %v740_v35  ;;  %v704_v18 = vadd.f32 %v3559_v37, %v3526_v25  ;;  %v774_v35 = vpop.f32.mrf.mxu1 }
  0xd1   :  { %v3628_v44 = vpop.f32.mrf.mxu0 }
  0xd2   :  { %871 = vmatmul.f32.gmra.mxu2 %v3608_v24  ;;  %939 = vmatmul.f32.gmra.mxu3 %v3385_v19  ;;  %v769_v8 = vadd.f32 %v768_v54, %v704_v18 }
  0xd4   :  { %1001 = vmatmul.f32.gmra.mxu0 %v3167_v5  ;;  %v3645_v5 = vld [vmem:[#allocation2 + $0x122] sm:$0xff] }
  0xd5   :  { %v742_v12 = vpop.f32.mrf.mxu2  ;;  %v810_v63 = vpop.f32.mrf.mxu3  ;;  %1069 = vmatmul.f32.gmra.mxu1 %v3633_v32 }
  0xd6   :  { %v743_v38 = vadd.f32 %v3559_v37, %v742_v12 }
  0xd8   :  { %v3639_v46 = vadd.f32 %v807_v27, %v743_v38 }
  0xd9   :  { %v3641_v52 = vpop.f32.mrf.mxu0 }
  0xda   :  { %874 = vmatmul.f32.gmra.mxu2 %v3622_v29  ;;  %942 = vmatmul.f32.gmra.mxu3 %v3637_v42 }
  0xdc   :  { %1004 = vmatmul.f32.gmra.mxu0 %v3226_v22 }
  0xdd   :  { %v745_v19 = vpop.f32.mrf.mxu2  ;;  %v813_v47 = vpop.f32.mrf.mxu3  ;;  %1072 = vmatmul.f32.gmra.mxu1 %v3645_v5 }
  0xde   :  { %v746_v59 = vadd.f32 %v3559_v37, %v745_v19 }
  0xe0   :  { %v3650_v1 = vadd.f32 %v810_v63, %v746_v59  ;;  %v707_v63 = vadd.f32 %v3559_v37, %v3544_v33  ;;  %v777_v59 = vpop.f32.mrf.mxu1 }
  0xe1   :  { %v3652_v53 = vpop.f32.mrf.mxu0 }
  0xe2   :  { %877 = vmatmul.f32.gmra.mxu2 %v3633_v32  ;;  %1157 = vmatmul.f32.vlgmr.msra.gmra.mxu3 %v3109_v55 }
  0xe4   :  { %1007 = vmatmul.f32.gmra.mxu0 %v3584_v57 }
  0xe5   :  { %v748_v14 = vpop.f32.mrf.mxu2  ;;  %v898_v15 = vpop.f32.mrf.mxu3 }
  0xe6   :  { %v749_v22 = vadd.f32 %v3559_v37, %v748_v14 }
  0xe8   :  { %v3660_v62 = vadd.f32 %v813_v47, %v749_v22  ;;  %v710_v47 = vadd.f32 %v3559_v37, %v3568_v48  ;;  %v713_v22 = vadd.f32 %v3559_v37, %v3594_v9 }
  0xe9   :  { %v963_v56 = vpop.f32.mrf.mxu0 }
  0xea   :  { %1092 = vmatmul.f32.vlgmr.msra.gmra.mxu2 %v3218_v20  ;;  %1160 = vmatmul.f32.gmra.mxu3 %v3130_v60  ;;  %v772_v20 = vadd.f32 %v771_v10, %v707_v63 }
  0xec   :  { %1222 = vmatmul.f32.vlgmr.msra.gmra.mxu0 %v3412_v31 }
  0xed   :  { %v833_v55 = vpop.f32.mrf.mxu2  ;;  %v901_v27 = vpop.f32.mrf.mxu3 }
  0xee   :  { %v834_v12 = vadd.f32 %v833_v55, %v769_v8 }
  0xf0   :  { %v899_v38 = vadd.f32 %v898_v15, %v834_v12 }
  0xf1   :  { %v966_v19 = vpop.f32.mrf.mxu0 }
  0xf2   :  { %v3667_v25 = vadd.f32 %v963_v56, %v899_v38  ;;  %1095 = vmatmul.f32.gmra.mxu2 %v3268_v34  ;;  %1163 = vmatmul.f32.gmra.mxu3 %v3149_v0  ;;  %v775_v34 = vadd.f32 %v774_v35, %v710_v47  ;;  %v780_v56 = vpop.f32.mrf.mxu1  ;;  %v337_v47 = vld [vmem:[#allocation2 + $0x91] sm:$0xff] }
  0xf4   :  { %1225 = vmatmul.f32.gmra.mxu0 %v3426_v36 }
  0xf5   :  { %v836_v60 = vpop.f32.mrf.mxu2  ;;  %v904_v31 = vpop.f32.mrf.mxu3 }
  0xf6   :  { %v837_v54 = vadd.f32 %v836_v60, %v772_v20 }
  0xf8   :  { %v902_v14 = vadd.f32 %v901_v27, %v837_v54  ;;  %v716_v27 = vadd.f32 %v3559_v37, %v3614_v26 }
  0xf9   :  { %v969_v33 = vpop.f32.mrf.mxu0 }
  0xfa   :  { %v3674_v15 = vadd.f32 %v966_v19, %v902_v14  ;;  %1098 = vmatmul.f32.gmra.mxu2 %v3312_v50  ;;  %1166 = vmatmul.f32.gmra.mxu3 %v3207_v16  ;;  %v778_v50 = vadd.f32 %v777_v59, %v713_v22  ;;  %v783_v63 = vpop.f32.mrf.mxu1  ;;  %v719_v19 = vadd.f32 %v3559_v37, %v3628_v44 }
  0xfb   :  { %v722_v59 = vadd.f32 %v3559_v37, %v3641_v52 }
  0xfc   :  { %1228 = vmatmul.f32.gmra.mxu0 %v3447_v41 }
  0xfd   :  { %v839_v0 = vpop.f32.mrf.mxu2  ;;  %v907_v36 = vpop.f32.mrf.mxu3 }
  0xfe   :  { %v840_v10 = vadd.f32 %v839_v0, %v775_v34  ;;  %v338_v0 = vld [vmem:[#allocation2 + $0xc1] sm:$0xff] }
 0x100   :  { %v905_v18 = vadd.f32 %v904_v31, %v840_v10 }
 0x101   :  { %v972_v48 = vpop.f32.mrf.mxu0 }
 0x102   :  { %v3681_v8 = vadd.f32 %v969_v33, %v905_v18  ;;  %1101 = vmatmul.f32.gmra.mxu2 %v3344_v2  ;;  %1169 = vmatmul.f32.gmra.mxu3 %v3256_v30  ;;  %v781_v2 = vadd.f32 %v780_v56, %v716_v27  ;;  %v786_v54 = vpop.f32.mrf.mxu1  ;;  %v369_v18 = vld [vmem:[#allocation2 + $0x92] sm:$0xff]  ;;  %v3710_v56 = vld [vmem:[#allocation2 + $0xa0] sm:$0xff] }
 0x103   :  { %4971 = vst [vmem:[#allocation4_spill] sm:$0xff] %v3710_v56 }
 0x104   :  { %1231 = vmatmul.f32.gmra.mxu0 %v3462_v51 }
 0x105   :  { %v842_v16 = vpop.f32.mrf.mxu2  ;;  %v910_v41 = vpop.f32.mrf.mxu3 }
 0x106   :  { %v843_v55 = vadd.f32 %v842_v16, %v778_v50 }
 0x108   :  { %v908_v35 = vadd.f32 %v907_v36, %v843_v55  ;;  %v725_v36 = vadd.f32 %v3559_v37, %v3652_v53  ;;  %v339_v55 = vld [vmem:[#allocation2 + $0xd1] sm:$0xff] }
 0x109   :  { %v975_v9 = vpop.f32.mrf.mxu0 }
 0x10a   :  { %v3688_v12 = vadd.f32 %v972_v48, %v908_v35  ;;  %1104 = vmatmul.f32.gmra.mxu2 %v3370_v13  ;;  %1172 = vmatmul.f32.gmra.mxu3 %v3304_v45  ;;  %v784_v13 = vadd.f32 %v783_v63, %v719_v19  ;;  %v789_v22 = vpop.f32.mrf.mxu1  ;;  %v307_v63 = vld [vmem:[#allocation2 + $0xd0] sm:$0xff] }
 0x10c   :  { %1234 = vmatmul.f32.gmra.mxu0 %v3477_v58 }
 0x10d   :  { %v845_v30 = vpop.f32.mrf.mxu2  ;;  %v913_v51 = vpop.f32.mrf.mxu3 }
 0x10e   :  { %v846_v38 = vadd.f32 %v845_v30, %v781_v2  ;;  %v340_v30 = vld [vmem:[#allocation2 + $0xe1] sm:$0xff] }
 0x110   :  { %v911_v20 = vadd.f32 %v910_v41, %v846_v38  ;;  %v306_v41 = vld [vmem:[#allocation2 + $0xc0] sm:$0xff] }
 0x111   :  { %v978_v26 = vpop.f32.mrf.mxu0 }
 0x112   :  { %v3695_v60 = vadd.f32 %v975_v9, %v911_v20  ;;  %1107 = vmatmul.f32.gmra.mxu2 %v3387_v21  ;;  %1175 = vmatmul.f32.gmra.mxu3 %v3443_v40  ;;  %v787_v21 = vadd.f32 %v786_v54, %v722_v59  ;;  %v308_v20 = vld [vmem:[#allocation2 + $0xe0] sm:$0xff] }
 0x113   :  { %v310_v59 = vld [vmem:[#allocation2 + $0x100] sm:$0xff] }
 0x114   :  { %1237 = vmatmul.f32.gmra.mxu0 %v3492_v4 }
 0x115   :  { %v848_v45 = vpop.f32.mrf.mxu2  ;;  %v916_v31 = vpop.f32.mrf.mxu3 }
 0x116   :  { %v849_v58 = vadd.f32 %v848_v45, %v784_v13 }
 0x118   :  { %v914_v44 = vadd.f32 %v913_v51, %v849_v58  ;;  %v342_v58 = vld [vmem:[#allocation2 + $0x101] sm:$0xff] }
 0x119   :  { %v981_v14 = vpop.f32.mrf.mxu0 }
 0x11a   :  { %v3702_v33 = vadd.f32 %v978_v26, %v914_v44  ;;  %1110 = vmatmul.f32.gmra.mxu2 %v3495_v6  ;;  %1178 = vmatmul.f32.gmra.mxu3 %v337_v47  ;;  %v790_v6 = vadd.f32 %v789_v22, %v725_v36  ;;  %v341_v26 = vld [vmem:[#allocation2 + $0xf1] sm:$0xff] }
 0x11b   :  { %v343_v44 = vld [vmem:[#allocation2 + $0x111] sm:$0xff] }
 0x11c   :  { %1240 = vmatmul.f32.gmra.mxu0 %v3508_v11 }
 0x11d   :  { %v851_v40 = vpop.f32.mrf.mxu2  ;;  %v919_v4 = vpop.f32.mrf.mxu3 }
 0x11e   :  { %v852_v34 = vadd.f32 %v851_v40, %v787_v21 }
 0x120   :  { %v917_v10 = vadd.f32 %v916_v31, %v852_v34  ;;  %v309_v31 = vld [vmem:[#allocation2 + $0xf0] sm:$0xff] }
 0x121   :  { %v984_v52 = vpop.f32.mrf.mxu0 }
 0x122   :  { %v3708_v48 = vadd.f32 %v981_v14, %v917_v10  ;;  %1113 = vmatmul.f32.gmra.mxu2 %v3710_v56  ;;  %1181 = vmatmul.f32.gmra.mxu3 %v338_v0  ;;  %v345_v10 = vld [vmem:[#allocation2 + $0x131] sm:$0xff] }
 0x124   :  { %1243 = vmatmul.f32.gmra.mxu0 %v369_v18 }
 0x125   :  { %v854_v11 = vpop.f32.mrf.mxu2  ;;  %v3713_v50 = vpop.f32.mrf.mxu3 }
 0x126   :  { %v855_v16 = vadd.f32 %v854_v11, %v790_v6 }
 0x128   :  { %v920_v53 = vadd.f32 %v919_v4, %v855_v16  ;;  %v311_v4 = vld [vmem:[#allocation2 + $0x110] sm:$0xff] }
 0x129   :  { %v3715_v27 = vpop.f32.mrf.mxu0 }
 0x12a   :  { %v3717_v35 = vadd.f32 %v984_v52, %v920_v53  ;;  %1116 = vmatmul.f32.gmra.mxu2 %v306_v41  ;;  %1184 = vmatmul.f32.gmra.mxu3 %v339_v55 }
 0x12c   :  { %1246 = vmatmul.f32.gmra.mxu0 %v3541_v17 }
 0x12d   :  { %v3720_v9 = vpop.f32.mrf.mxu2  ;;  %v3722_v2 = vpop.f32.mrf.mxu3 }
 0x131   :  { %v3724_v51 = vpop.f32.mrf.mxu0 }
 0x132   :  { %1119 = vmatmul.f32.gmra.mxu2 %v307_v63  ;;  %1187 = vmatmul.f32.gmra.mxu3 %v340_v30 }
 0x134   :  { %1249 = vmatmul.f32.gmra.mxu0 %v3562_v39 }
 0x135   :  { %v3727_v38 = vpop.f32.mrf.mxu2  ;;  %v3729_v19 = vpop.f32.mrf.mxu3 }
 0x139   :  { %v3731_v13 = vpop.f32.mrf.mxu0 }
 0x13a   :  { %1122 = vmatmul.f32.gmra.mxu2 %v308_v20  ;;  %1190 = vmatmul.f32.gmra.mxu3 %v341_v26 }
 0x13c   :  { %1252 = vmatmul.f32.gmra.mxu0 %v3588_v61  ;;  %v1028_v61 = vpop.f32.mrf.mxu1 }
 0x13d   :  { %v3734_v17 = vpop.f32.mrf.mxu2  ;;  %v3736_v45 = vpop.f32.mrf.mxu3 }
 0x141   :  { %v3738_v54 = vpop.f32.mrf.mxu0 }
 0x142   :  { %1125 = vmatmul.f32.gmra.mxu2 %v309_v31  ;;  %1193 = vmatmul.f32.gmra.mxu3 %v342_v58 }
 0x144   :  { %1255 = vmatmul.f32.gmra.mxu0 %v3608_v24  ;;  %v1031_v24 = vpop.f32.mrf.mxu1 }
 0x145   :  { %v3741_v39 = vpop.f32.mrf.mxu2  ;;  %v3743_v47 = vpop.f32.mrf.mxu3  ;;  %v1032_v20 = vadd.f32 %v1031_v24, %v3674_v15 }
 0x149   :  { %v3745_v14 = vpop.f32.mrf.mxu0 }
 0x14a   :  { %1128 = vmatmul.f32.gmra.mxu2 %v310_v59  ;;  %1196 = vmatmul.f32.gmra.mxu3 %v343_v44 }
 0x14c   :  { %1258 = vmatmul.f32.gmra.mxu0 %v3622_v29 }
 0x14d   :  { %v3748_v21 = vpop.f32.mrf.mxu2  ;;  %v3750_v40 = vpop.f32.mrf.mxu3 }
 0x151   :  { %v3752_v34 = vpop.f32.mrf.mxu0 }
 0x152   :  { %1131 = vmatmul.f32.gmra.mxu2 %v311_v4  ;;  %1199 = vmatmul.f32.gmra.mxu3 %v3584_v57  ;;  %v1034_v57 = vpop.f32.mrf.mxu1 }
 0x154   :  { %1261 = vmatmul.f32.gmra.mxu0 %v3633_v32  ;;  %v377_v32 = vld [vmem:[#allocation2 + $0x132] sm:$0xff] }
 0x155   :  { %v3756_v0 = vpop.f32.mrf.mxu2  ;;  %v3758_v36 = vpop.f32.mrf.mxu3 }
 0x159   :  { %v3760_v22 = vpop.f32.mrf.mxu0 }
 0x15a   :  { %1134 = vmatmul.f32.gmra.mxu2 %v3637_v42  ;;  %1202 = vmatmul.f32.gmra.mxu3 %v345_v10  ;;  %v1037_v16 = vpop.f32.mrf.mxu1 }
 0x15c   :  { %1264 = vmatmul.f32.gmra.mxu0 %v3645_v5  ;;  %v1029_v5 = vadd.f32 %v1028_v61, %v3667_v25 }
 0x15d   :  { %v3764_v29 = vpop.f32.mrf.mxu2  ;;  %v3766_v52 = vpop.f32.mrf.mxu3 }
 0x15e   :  { %4972 = vst [vmem:[#allocation5_spill] sm:$0xff] %v3766_v52 }
 0x161   :  { %v3768_v18 = vpop.f32.mrf.mxu0 }
 0x162   :  { %4973 = vst [vmem:[#allocation6_spill] sm:$0xff] %v3768_v18  ;;  %1137 = vmatmul.f32.gmra.mxu2 %v3710_v56  ;;  %v1040_v63 = vpop.f32.mrf.mxu1  ;;  %v1035_v56 = vadd.f32 %v1034_v57, %v3681_v8 }
 0x164   :  { %1267 = vmatmul.f32.gmra.mxu0 %v377_v32 }
 0x165   :  { %v3771_v6 = vpop.f32.mrf.mxu2  ;;  %v1158_v11 = vpop.f32.mrf.mxu3 }
 0x169   :  { %v1223_v41 = vpop.f32.mrf.mxu0 }
 0x16a   :  { %v1043_v18 = vpop.f32.mrf.mxu1 }
 0x16d   :  { %v1093_v42 = vpop.f32.mrf.mxu2  ;;  %v1161_v55 = vpop.f32.mrf.mxu3 }
 0x16e   :  { %v1094_v30 = vadd.f32 %v1093_v42, %v1029_v5 }
 0x170   :  { %v1159_v58 = vadd.f32 %v1158_v11, %v1094_v30  ;;  %v1038_v11 = vadd.f32 %v1037_v16, %v3688_v12 }
 0x171   :  { %v1226_v53 = vpop.f32.mrf.mxu0 }
 0x172   :  { %v3775_v10 = vadd.f32 %v1223_v41, %v1159_v58  ;;  %v1046_v30 = vpop.f32.mrf.mxu1  ;;  %v1041_v58 = vadd.f32 %v1040_v63, %v3695_v60  ;;  %v728_v60 = vadd.f32 %v3559_v37, %v3538_v28 }
 0x175   :  { %v1096_v26 = vpop.f32.mrf.mxu2  ;;  %v1164_v31 = vpop.f32.mrf.mxu3 }
 0x176   :  { %v1097_v59 = vadd.f32 %v1096_v26, %v1032_v20 }
 0x178   :  { %v1162_v44 = vadd.f32 %v1161_v55, %v1097_v59 }
 0x179   :  { %v1229_v4 = vpop.f32.mrf.mxu0 }
 0x17a   :  { %v3777_v32 = vadd.f32 %v1226_v53, %v1162_v44 }
 0x17c   :  { %v1271_v25 = vadd.f32 %v3777_v32, %v3775_v10 }
 0x17d   :  { %v1099_v61 = vpop.f32.mrf.mxu2  ;;  %v1167_v42 = vpop.f32.mrf.mxu3 }
 0x17e   :  { %v1100_v5 = vadd.f32 %v1099_v61, %v1035_v56 }
 0x180   :  { %v1165_v15 = vadd.f32 %v1164_v31, %v1100_v5 }
 0x181   :  { %v1232_v24 = vpop.f32.mrf.mxu0 }
 0x182   :  { %v3782_v52 = vadd.f32 %v1229_v4, %v1165_v15  ;;  %v1049_v4 = vpop.f32.mrf.mxu1 }
 0x183   :  { %v1050_v28 = vadd.f32 %v1049_v4, %v3717_v35 }
 0x184   :  { %v1272_v41 = vadd.f32 %v1271_v25, %v3782_v52  ;;  %v1044_v25 = vadd.f32 %v1043_v18, %v3702_v33  ;;  %v793_v33 = vadd.f32 %v3524_v23, %v728_v60  ;;  %v861_v23 = vadd.f32 %v3727_v38, %v3566_v43 }
 0x185   :  { %v1102_v55 = vpop.f32.mrf.mxu2  ;;  %v1170_v53 = vpop.f32.mrf.mxu3  ;;  %v864_v38 = vadd.f32 %v3734_v17, %v3592_v7  ;;  %v867_v7 = vadd.f32 %v3741_v39, %v3612_v3  ;;  %v870_v39 = vadd.f32 %v3748_v21, %v3626_v49  ;;  %v873_v21 = vadd.f32 %v3756_v0, %v3639_v46 }
 0x186   :  { %v1103_v20 = vadd.f32 %v1102_v55, %v1038_v11  ;;  %v926_v4 = vadd.f32 %v3722_v2, %v861_v23  ;;  %v876_v46 = vadd.f32 %v3764_v29, %v3650_v1  ;;  %v4974_v29 = vld [vmem:[#allocation5_spill] sm:$0xff] }
 0x188   :  { %v1168_v8 = vadd.f32 %v1167_v42, %v1103_v20  ;;  %v991_v43 = vadd.f32 %v3724_v51, %v926_v4 }
 0x189   :  { %v1235_v57 = vpop.f32.mrf.mxu0 }
 0x18a   :  { %v3786_v26 = vadd.f32 %v1232_v24, %v1168_v8  ;;  %v1052_v63 = vpop.f32.mrf.mxu1 }
 0x18c   :  { %v1273_v56 = vadd.f32 %v1272_v41, %v3786_v26 }
 0x18d   :  { %v1105_v31 = vpop.f32.mrf.mxu2  ;;  %v1173_v59 = vpop.f32.mrf.mxu3 }
 0x18e   :  { %v1106_v44 = vadd.f32 %v1105_v31, %v1041_v58  ;;  %v858_v58 = vadd.f32 %v3720_v9, %v793_v33 }
 0x190   :  { %v1171_v61 = vadd.f32 %v1170_v53, %v1106_v44  ;;  %v1047_v53 = vadd.f32 %v1046_v30, %v3708_v48  ;;  %v923_v37 = vadd.f32 %v3713_v50, %v858_v58 }
 0x191   :  { %v1238_v12 = vpop.f32.mrf.mxu0 }
 0x192   :  { %v3790_v16 = vadd.f32 %v1235_v57, %v1171_v61  ;;  %v1055_v44 = vpop.f32.mrf.mxu1 }
 0x193   :  { %v1056_v2 = vadd.f32 %v1055_v44, %v991_v43  ;;  %v932_v44 = vadd.f32 %v3736_v45, %v867_v7  ;;  %v938_v43 = vadd.f32 %v3750_v40, %v873_v21 }
 0x194   :  { %v1274_v5 = vadd.f32 %v1273_v56, %v3790_v16 }
 0x195   :  { %v1108_v42 = vpop.f32.mrf.mxu2  ;;  %v1176_v15 = vpop.f32.mrf.mxu3  ;;  %v997_v3 = vadd.f32 %v3738_v54, %v932_v44 }
 0x196   :  { %v1109_v24 = vadd.f32 %v1108_v42, %v1044_v25  ;;  %v988_v25 = vadd.f32 %v3715_v27, %v923_v37 }
 0x198   :  { %v1174_v11 = vadd.f32 %v1173_v59, %v1109_v24  ;;  %v1053_v50 = vadd.f32 %v1052_v63, %v988_v25  ;;  %v1897_v25 = vld [vmem:[%s4965_s5 + $0x60] sm:$0xff] }
 0x199   :  { %v1241_v55 = vpop.f32.mrf.mxu0 }
 0x19a   :  { %v3796_v41 = vadd.f32 %v1238_v12, %v1174_v11 }
 0x19c   :  { %v1275_v20 = vadd.f32 %v1274_v5, %v3796_v41  ;;  %v1900_v5 = vld [vmem:[%s4965_s5 + $0x78] sm:$0xff] }
 0x19d   :  { %v1111_v8 = vpop.f32.mrf.mxu2  ;;  %v1179_v57 = vpop.f32.mrf.mxu3  ;;  %2033 = vmatpush.msra.mxu1 %v1900_v5 }
 0x19e   :  { %v1112_v18 = vadd.f32 %v1111_v8, %v1047_v53  ;;  %v1899_v53 = vld [vmem:[%s4965_s5 + $0x70] sm:$0xff]  ;;  %v929_v8 = vadd.f32 %v3729_v19, %v864_v38 }
 0x19f   :  { %2034 = vmatpush.msra.mxu1 %v1899_v53 }
 0x1a0   :  { %v1177_v56 = vadd.f32 %v1176_v15, %v1112_v18  ;;  %v994_v58 = vadd.f32 %v3731_v13, %v929_v8 }
 0x1a1   :  { %v1244_v31 = vpop.f32.mrf.mxu0 }
 0x1a2   :  { %v3802_v59 = vadd.f32 %v1241_v55, %v1177_v56  ;;  %v1058_v55 = vpop.f32.mrf.mxu1  ;;  %v1898_v56 = vld [vmem:[%s4965_s5 + $0x68] sm:$0xff] }
 0x1a3   :  { %2035 = vmatpush.msra.mxu1 %v1898_v56  ;;  %v1059_v19 = vadd.f32 %v1058_v55, %v994_v58  ;;  %v879_v56 = vadd.f32 %v3771_v6, %v3660_v62 }
 0x1a4   :  { %v1276_v48 = vadd.f32 %v1275_v20, %v3802_v59 }
 0x1a5   :  { %v1114_v30 = vpop.f32.mrf.mxu2  ;;  %v1182_v61 = vpop.f32.mrf.mxu3  ;;  %2036 = vmatpush.msra.mxu1 %v1897_v25 }
 0x1a6   :  { %v1115_v12 = vadd.f32 %v1114_v30, %v1050_v28 }
 0x1a8   :  { %v1180_v9 = vadd.f32 %v1179_v57, %v1115_v12 }
 0x1a9   :  { %v1247_v42 = vpop.f32.mrf.mxu0 }
 0x1aa   :  { %v3813_v35 = vadd.f32 %v1244_v31, %v1180_v9  ;;  %v1061_v31 = vpop.f32.mrf.mxu1 }
 0x1ab   :  { %v1062_v5 = vadd.f32 %v1061_v31, %v997_v3 }
 0x1ac   :  { %v1277_v15 = vadd.f32 %v1276_v48, %v3813_v35 }
 0x1ad   :  { %v1117_v24 = vpop.f32.mrf.mxu2  ;;  %v1185_v11 = vpop.f32.mrf.mxu3 }
 0x1ae   :  { %v1118_v27 = vadd.f32 %v1117_v24, %v1053_v50 }
 0x1b0   :  { %v1183_v60 = vadd.f32 %v1182_v61, %v1118_v27 }
 0x1b1   :  { %v1250_v20 = vpop.f32.mrf.mxu0 }
 0x1b2   :  { %v3823_v63 = vadd.f32 %v1247_v42, %v1183_v60  ;;  %v1064_v45 = vpop.f32.mrf.mxu1  ;;  %v935_v42 = vadd.f32 %v3743_v47, %v870_v39 }
 0x1b4   :  { %v1278_v57 = vadd.f32 %v1277_v15, %v3823_v63  ;;  %v1000_v49 = vadd.f32 %v3745_v14, %v935_v42 }
 0x1b5   :  { %v1120_v33 = vpop.f32.mrf.mxu2  ;;  %v1188_v18 = vpop.f32.mrf.mxu3 }
 0x1b6   :  { %v1121_v51 = vadd.f32 %v1120_v33, %v1056_v2  ;;  %v1065_v47 = vadd.f32 %v1064_v45, %v1000_v49 }
 0x1b8   :  { %v1186_v17 = vadd.f32 %v1185_v11, %v1121_v51  ;;  %v1896_v11 = vld [vmem:[%s4965_s5 + $0x58] sm:$0xff] }
 0x1b9   :  { %v1253_v28 = vpop.f32.mrf.mxu0  ;;  %2037 = vmatpush.msra.mxu1 %v1896_v11 }
 0x1ba   :  { %v3833_v37 = vadd.f32 %v1250_v20, %v1186_v17  ;;  %v1067_v60 = vpop.f32.mrf.mxu1  ;;  %v1003_v20 = vadd.f32 %v3752_v34, %v938_v43 }
 0x1bc   :  { %v1279_v48 = vadd.f32 %v1278_v57, %v3833_v37  ;;  %v1068_v33 = vadd.f32 %v1067_v60, %v1003_v20 }
 0x1bd   :  { %v1123_v30 = vpop.f32.mrf.mxu2  ;;  %v1191_v13 = vpop.f32.mrf.mxu3 }
 0x1be   :  { %v1124_v61 = vadd.f32 %v1123_v30, %v1059_v19  ;;  %v944_v19 = vadd.f32 %v4974_v29, %v879_v56 }
 0x1c0   :  { %v1189_v12 = vadd.f32 %v1188_v18, %v1124_v61  ;;  %v941_v18 = vadd.f32 %v3758_v36, %v876_v46  ;;  %v2846_v36 = vmov 128.0   ;;  %v4975_v61 = vld [vmem:[#allocation6_spill] sm:$0xff] }
 0x1c1   :  { %v1256_v23 = vpop.f32.mrf.mxu0  ;;  %2837 = vrcp.f32 %v2846_v36  ;;  %v1009_v3 = vadd.f32 %v4975_v61, %v944_v19 }
 0x1c2   :  { %v3843_v9 = vadd.f32 %v1253_v28, %v1189_v12  ;;  %v1070_v7 = vpop.f32.mrf.mxu1  ;;  %v1006_v17 = vadd.f32 %v3760_v22, %v941_v18 }
 0x1c4   :  { %v1280_v50 = vadd.f32 %v1279_v48, %v3843_v9  ;;  %v1071_v1 = vadd.f32 %v1070_v7, %v1006_v17 }
 0x1c5   :  { %v1126_v4 = vpop.f32.mrf.mxu2  ;;  %v1194_v15 = vpop.f32.mrf.mxu3 }
 0x1c6   :  { %v1127_v54 = vadd.f32 %v1126_v4, %v1062_v5 }
 0x1c7   :  { %v2838_v25 = vpop.eup %2837 }
 0x1c8   :  { %v1192_v24 = vadd.f32 %v1191_v13, %v1127_v54  ;;  %vm1297_vm0 = vweird.f32 %v2838_v25 }
 0x1c9   :  { %v1259_v27 = vpop.f32.mrf.mxu0 }
 0x1ca   :  { %v3853_v55 = vadd.f32 %v1256_v23, %v1192_v24  ;;  %v1073_v12 = vpop.f32.mrf.mxu1 }
 0x1cb   :  { %v1074_v23 = vadd.f32 %v1073_v12, %v1009_v3  ;;  %v1916_v12 = vld [vmem:[%s4965_s5 + $0xf8] sm:$0xff] }
 0x1cc   :  { %v1281_v38 = vadd.f32 %v1280_v50, %v3853_v55  ;;  %v1293_v50 = vmul.f32 128.0, %v2838_v25  ;;  %2098 = vmatpush.msrb.mxu2 %v1916_v12  ;;  %v1891_v12 = vld [vmem:[%s4965_s5 + $0x30] sm:$0xff] }
 0x1cd   :  { %v1129_v53 = vpop.f32.mrf.mxu2  ;;  %v1197_v2 = vpop.f32.mrf.mxu3 }
 0x1ce   :  { %v1130_v14 = vadd.f32 %v1129_v53, %v1065_v47 }
 0x1d0   :  { %v1195_v0 = vadd.f32 %v1194_v15, %v1130_v14  ;;  %v1294_v15 = vsub.f32 1.0, %v1293_v50  ;;  %v1932_v50 = vld [vmem:[%s4965_s5 + $0x178] sm:$0xff] }
 0x1d1   :  { %v1262_v57 = vpop.f32.mrf.mxu0  ;;  %2163 = vmatpush.msrb.mxu3 %v1932_v50  ;;  %v1920_v50 = vld [vmem:[%s4965_s5 + $0x118] sm:$0xff] }
 0x1d2   :  { %v1260_v8 = vadd.f32 %v1259_v27, %v1195_v0  ;;  %v1295_v24 = vmul.f32 %v2838_v25, %v1294_v15  ;;  %v1931_v15 = vld [vmem:[%s4965_s5 + $0x170] sm:$0xff] }
 0x1d3   :  { %2164 = vmatpush.msrb.mxu3 %v1931_v15  ;;  %v1901_v15 = vld [vmem:[%s4965_s5 + $0x80] sm:$0xff] }
 0x1d4   :  { %v1282_v51 = vadd.f32 %v1281_v38, %v1260_v8  ;;  %v1296_v47 = vadd.f32 %v2838_v25, %v1295_v24  ;;  %v1930_v24 = vld [vmem:[%s4965_s5 + $0x168] sm:$0xff] }
 0x1d5   :  { %v1132_v58 = vpop.f32.mrf.mxu2  ;;  %v1200_v28 = vpop.f32.mrf.mxu3  ;;  %2165 = vmatpush.msrb.mxu3 %v1930_v24  ;;  %v1888_v24 = vld [vmem:[%s4965_s5 + $0x18] sm:$0xff] }
 0x1d6   :  { %v1133_v40 = vadd.f32 %v1132_v58, %v1068_v33  ;;  %v3866_v60 = vsel %vm1297_vm0, %v2838_v25, %v1296_v47  ;;  %v1929_v47 = vld [vmem:[%s4965_s5 + $0x160] sm:$0xff] }
 0x1d7   :  { %2166 = vmatpush.msrb.mxu3 %v1929_v47 }
 0x1d8   :  { %v1198_v34 = vadd.f32 %v1197_v2, %v1133_v40 }
 0x1d9   :  { %v1265_v30 = vpop.f32.mrf.mxu0 }
 0x1da   :  { %v1263_v31 = vadd.f32 %v1262_v57, %v1198_v34 }
 0x1dc   :  { %v1283_v44 = vadd.f32 %v1282_v51, %v1263_v31 }
 0x1dd   :  { %v1135_v48 = vpop.f32.mrf.mxu2  ;;  %v1203_v45 = vpop.f32.mrf.mxu3 }
 0x1de   :  { %v1136_v13 = vadd.f32 %v1135_v48, %v1071_v1 }
 0x1e0   :  { %v1201_v39 = vadd.f32 %v1200_v28, %v1136_v13 }
 0x1e1   :  { %v1268_v42 = vpop.f32.mrf.mxu0 }
 0x1e2   :  { %v1266_v22 = vadd.f32 %v1265_v30, %v1201_v39 }
 0x1e4   :  { %v1284_v62 = vadd.f32 %v1283_v44, %v1266_v22 }
 0x1e5   :  { %v1138_v6 = vpop.f32.mrf.mxu2 }
 0x1e6   :  { %v1139_v5 = vadd.f32 %v1138_v6, %v1074_v23  ;;  %v1915_v23 = vld [vmem:[%s4965_s5 + $0xf0] sm:$0xff] }
 0x1e7   :  { %2099 = vmatpush.msrb.mxu2 %v1915_v23  ;;  %v1903_v23 = vld [vmem:[%s4965_s5 + $0x90] sm:$0xff] }
 0x1e8   :  { %v1204_v4 = vadd.f32 %v1203_v45, %v1139_v5  ;;  %v1914_v45 = vld [vmem:[%s4965_s5 + $0xe8] sm:$0xff] }
 0x1e9   :  { %2100 = vmatpush.msrb.mxu2 %v1914_v45  ;;  %v1942_v45 = vld [vmem:[%s4965_s5 + $0x1c8] sm:$0xff] }
 0x1ea   :  { %v1269_v54 = vadd.f32 %v1268_v42, %v1204_v4  ;;  %v1913_v4 = vld [vmem:[%s4965_s5 + $0xe0] sm:$0xff] }
 0x1eb   :  { %2101 = vmatpush.msrb.mxu2 %v1913_v4  ;;  %v1941_v4 = vld [vmem:[%s4965_s5 + $0x1c0] sm:$0xff] }
 0x1ec   :  { %v1285_v49 = vadd.f32 %v1284_v62, %v1269_v54 }
 0x1ee   :  { %v1286_v21 = vrot.slane %v1285_v49, 4 }
 0x1f0   :  { %v1287_v11 = vadd.f32 %v1286_v21, %v1285_v49  ;;  %v1912_v49 = vld [vmem:[%s4965_s5 + $0xd8] sm:$0xff] }
 0x1f1   :  { %2102 = vmatpush.msrb.mxu2 %v1912_v49  ;;  %v1485_v49 = vld [vmem:[#allocation2 + $0x1] sm:$0xff] }
 0x1f2   :  { %v1288_v27 = vrot.slane %v1287_v11, 2 }
 0x1f4   :  { %v1289_v43 = vadd.f32 %v1288_v27, %v1287_v11  ;;  %v1911_v11 = vld [vmem:[%s4965_s5 + $0xd0] sm:$0xff] }
 0x1f5   :  { %2103 = vmatpush.msrb.mxu2 %v1911_v11  ;;  %v1919_v11 = vld [vmem:[%s4965_s5 + $0x110] sm:$0xff] }
 0x1f6   :  { %v1290_v38 = vrot.slane %v1289_v43, 1 }
 0x1f8   :  { %v1291_v53 = vadd.f32 %v1290_v38, %v1289_v43  ;;  %v1910_v43 = vld [vmem:[%s4965_s5 + $0xc8] sm:$0xff] }
 0x1f9   :  { %2104 = vmatpush.msrb.mxu2 %v1910_v43  ;;  %v1887_v43 = vld [vmem:[%s4965_s5 + $0x10] sm:$0xff] }
 0x1fa   :  { %v1299_v14 = vmul.f32 %v3866_v60, %v1291_v53  ;;  %v1928_v53 = vld [vmem:[%s4965_s5 + $0x158] sm:$0xff] }
 0x1fb   :  { %2167 = vmatpush.msrb.mxu3 %v1928_v53  ;;  %v1939_v53 = vld [vmem:[%s4965_s5 + $0x1b0] sm:$0xff] }
 0x1fc   :  { %v3870_v20 = vsub.f32 %v3775_v10, %v1299_v14  ;;  %v3873_v46 = vsub.f32 %v3777_v32, %v1299_v14  ;;  %v3876_v0 = vsub.f32 %v3782_v52, %v1299_v14  ;;  %v3879_v2 = vsub.f32 %v3786_v26, %v1299_v14 }
 0x1fd   :  { %v3882_v57 = vsub.f32 %v3790_v16, %v1299_v14  ;;  %v3885_v33 = vsub.f32 %v3796_v41, %v1299_v14  ;;  %v3888_v18 = vsub.f32 %v3802_v59, %v1299_v14  ;;  %v3891_v10 = vsub.f32 %v3813_v35, %v1299_v14 }
 0x1fe   :  { %v3894_v32 = vsub.f32 %v3823_v63, %v1299_v14  ;;  %v3897_v52 = vsub.f32 %v3833_v37, %v1299_v14  ;;  %v3900_v26 = vsub.f32 %v3843_v9, %v1299_v14  ;;  %v3903_v16 = vsub.f32 %v3853_v55, %v1299_v14 }
 0x1ff   :  { %v3905_v41 = vsub.f32 %v1260_v8, %v1299_v14  ;;  %v3907_v51 = vsub.f32 %v1263_v31, %v1299_v14  ;;  %v3909_v59 = vsub.f32 %v1266_v22, %v1299_v14  ;;  %v3911_v35 = vsub.f32 %v1269_v54, %v1299_v14  ;;  %v1909_v14 = vld [vmem:[%s4965_s5 + $0xc0] sm:$0xff] }
 0x200   :  { %v1316_v63 = vmul.f32 %v3870_v20, %v3870_v20  ;;  %v1317_v37 = vmul.f32 %v3873_v46, %v3873_v46  ;;  %v1318_v9 = vmul.f32 %v3876_v0, %v3876_v0  ;;  %v1319_v55 = vmul.f32 %v3879_v2, %v3879_v2  ;;  %2105 = vmatpush.msrb.mxu2 %v1909_v14 }
 0x201   :  { %v1320_v40 = vmul.f32 %v3882_v57, %v3882_v57  ;;  %v1321_v17 = vmul.f32 %v3885_v33, %v3885_v33  ;;  %v1322_v34 = vmul.f32 %v3888_v18, %v3888_v18  ;;  %v1323_v28 = vmul.f32 %v3891_v10, %v3891_v10 }
 0x202   :  { %v1332_v58 = vadd.f32 %v1317_v37, %v1316_v63  ;;  %v1324_v29 = vmul.f32 %v3894_v32, %v3894_v32  ;;  %v1325_v44 = vmul.f32 %v3897_v52, %v3897_v52  ;;  %v1326_v30 = vmul.f32 %v3900_v26, %v3900_v26  ;;  %v1927_v37 = vld [vmem:[%s4965_s5 + $0x150] sm:$0xff] }
 0x203   :  { %v1327_v36 = vmul.f32 %v3903_v16, %v3903_v16  ;;  %v1328_v3 = vmul.f32 %v3905_v41, %v3905_v41  ;;  %v1329_v22 = vmul.f32 %v3907_v51, %v3907_v51  ;;  %v1330_v62 = vmul.f32 %v3909_v59, %v3909_v59  ;;  %2168 = vmatpush.msrb.mxu3 %v1927_v37  ;;  %v1917_v37 = vld [vmem:[%s4965_s5 + $0x100] sm:$0xff] }
 0x204   :  { %v1333_v8 = vadd.f32 %v1332_v58, %v1318_v9  ;;  %v1331_v5 = vmul.f32 %v3911_v35, %v3911_v35  ;;  %v1948_v9 = vld [vmem:[%s4965_s5 + $0x1f8] sm:$0xff] }
 0x205   :  { %v1908_v58 = vld [vmem:[%s4965_s5 + $0xb8] sm:$0xff]  ;;  %2228 = vmatpush.msrb.mxu0 %v1948_v9  ;;  %v1938_v9 = vld [vmem:[%s4965_s5 + $0x1a8] sm:$0xff] }
 0x206   :  { %v1334_v7 = vadd.f32 %v1333_v8, %v1319_v55  ;;  %v1895_v8 = vld [vmem:[%s4965_s5 + $0x50] sm:$0xff]  ;;  %2106 = vmatpush.msrb.mxu2 %v1908_v58  ;;  %v1517_v58 = vld [vmem:[#allocation2 + $0x2] sm:$0xff] }
 0x207   :  { %2038 = vmatpush.msra.mxu1 %v1895_v8  ;;  %v1885_v8 = vld [vmem:[%s4965_s5] sm:$0xff] }
 0x208   :  { %v1335_v56 = vadd.f32 %v1334_v7, %v1320_v40  ;;  %v1926_v40 = vld [vmem:[%s4965_s5 + $0x148] sm:$0xff] }
 0x209   :  { %2169 = vmatpush.msrb.mxu3 %v1926_v40  ;;  %v1937_v40 = vld [vmem:[%s4965_s5 + $0x1a0] sm:$0xff] }
 0x20a   :  { %v1336_v31 = vadd.f32 %v1335_v56, %v1321_v17  ;;  %v1947_v17 = vld [vmem:[%s4965_s5 + $0x1f0] sm:$0xff] }
 0x20b   :  { %v1907_v56 = vld [vmem:[%s4965_s5 + $0xb0] sm:$0xff]  ;;  %2229 = vmatpush.msrb.mxu0 %v1947_v17  ;;  %v4976_v17 = vld [vmem:[#allocation4_spill] sm:$0xff] }
 0x20c   :  { %v1337_v1 = vadd.f32 %v1336_v31, %v1322_v34  ;;  %v1894_v34 = vld [vmem:[%s4965_s5 + $0x48] sm:$0xff]  ;;  %v1925_v31 = vld [vmem:[%s4965_s5 + $0x140] sm:$0xff]  ;;  %2107 = vmatpush.msrb.mxu2 %v1907_v56  ;;  %v1964_v56 = vld [vmem:[%s4965_s5 + $0x278] sm:$0xff] }
 0x20d   :  { %2039 = vmatpush.msra.mxu1 %v1894_v34  ;;  %2170 = vmatpush.msrb.mxu3 %v1925_v31  ;;  %v1936_v34 = vld [vmem:[%s4965_s5 + $0x198] sm:$0xff]  ;;  %v1935_v31 = vld [vmem:[%s4965_s5 + $0x190] sm:$0xff] }
 0x20e   :  { %v1338_v19 = vadd.f32 %v1337_v1, %v1323_v28  ;;  %v1946_v28 = vld [vmem:[%s4965_s5 + $0x1e8] sm:$0xff] }
 0x20f   :  { %2230 = vmatpush.msrb.mxu0 %v1946_v28  ;;  %v1963_v28 = vld [vmem:[%s4965_s5 + $0x270] sm:$0xff] }
 0x210   :  { %v1339_v48 = vadd.f32 %v1338_v19, %v1324_v29  ;;  %v1906_v29 = vld [vmem:[%s4965_s5 + $0xa8] sm:$0xff]  ;;  %v1893_v19 = vld [vmem:[%s4965_s5 + $0x40] sm:$0xff] }
 0x211   :  { %2108 = vmatpush.msrb.mxu2 %v1906_v29  ;;  %2040 = vmatpush.msra.mxu1 %v1893_v19  ;;  %v1962_v29 = vld [vmem:[%s4965_s5 + $0x268] sm:$0xff] }
 0x212   :  { %v1340_v13 = vadd.f32 %v1339_v48, %v1325_v44  ;;  %v1924_v44 = vld [vmem:[%s4965_s5 + $0x138] sm:$0xff]  ;;  %v1945_v48 = vld [vmem:[%s4965_s5 + $0x1e0] sm:$0xff] }
 0x213   :  { %2171 = vmatpush.msrb.mxu3 %v1924_v44  ;;  %2231 = vmatpush.msrb.mxu0 %v1945_v48 }
 0x214   :  { %v1341_v61 = vadd.f32 %v1340_v13, %v1326_v30  ;;  %v1905_v13 = vld [vmem:[%s4965_s5 + $0xa0] sm:$0xff] }
 0x215   :  { %2109 = vmatpush.msrb.mxu2 %v1905_v13  ;;  %v4139_v13 = vld [vmem:[%s4963_s3] ss:$0 sm:$0xff] }
 0x216   :  { %v1342_v39 = vadd.f32 %v1341_v61, %v1327_v36  ;;  %v1892_v36 = vld [vmem:[%s4965_s5 + $0x38] sm:$0xff]  ;;  %v1923_v61 = vld [vmem:[%s4965_s5 + $0x130] sm:$0xff] }
 0x217   :  { %2041 = vmatpush.msra.mxu1 %v1892_v36  ;;  %2172 = vmatpush.msrb.mxu3 %v1923_v61  ;;  %v1934_v36 = vld [vmem:[%s4965_s5 + $0x188] sm:$0xff] }
 0x218   :  { %v1343_v25 = vadd.f32 %v1342_v39, %v1328_v3  ;;  %v1944_v3 = vld [vmem:[%s4965_s5 + $0x1d8] sm:$0xff] }
 0x219   :  { %v1904_v39 = vld [vmem:[%s4965_s5 + $0x98] sm:$0xff]  ;;  %2232 = vmatpush.msrb.mxu0 %v1944_v3  ;;  %2042 = vmatpush.msra.mxu1 %v1891_v12 }
 0x21a   :  { %v1344_v6 = vadd.f32 %v1343_v25, %v1329_v22  ;;  %v1922_v22 = vld [vmem:[%s4965_s5 + $0x128] sm:$0xff]  ;;  %v1943_v25 = vld [vmem:[%s4965_s5 + $0x1d0] sm:$0xff]  ;;  %2110 = vmatpush.msrb.mxu2 %v1904_v39 }
 0x21b   :  { %2173 = vmatpush.msrb.mxu3 %v1922_v22  ;;  %2233 = vmatpush.msrb.mxu0 %v1943_v25  ;;  %v1933_v22 = vld [vmem:[%s4965_s5 + $0x180] sm:$0xff] }
 0x21c   :  { %v1345_v42 = vadd.f32 %v1344_v6, %v1330_v62  ;;  %v1890_v62 = vld [vmem:[%s4965_s5 + $0x28] sm:$0xff]  ;;  %v1921_v6 = vld [vmem:[%s4965_s5 + $0x120] sm:$0xff]  ;;  %2111 = vmatpush.msrb.mxu2 %v1903_v23 }
 0x21d   :  { %2043 = vmatpush.msra.mxu1 %v1890_v62  ;;  %2174 = vmatpush.msrb.mxu3 %v1921_v6 }
 0x21e   :  { %v1346_v54 = vadd.f32 %v1345_v42, %v1331_v5  ;;  %v1902_v5 = vld [vmem:[%s4965_s5 + $0x88] sm:$0xff]  ;;  %v1889_v42 = vld [vmem:[%s4965_s5 + $0x20] sm:$0xff]  ;;  %2234 = vmatpush.msrb.mxu0 %v1942_v45 }
 0x21f   :  { %2112 = vmatpush.msrb.mxu2 %v1902_v5  ;;  %2044 = vmatpush.msra.mxu1 %v1889_v42 }
 0x220   :  { %v1347_v21 = vrot.slane %v1346_v54, 4  ;;  %2175 = vmatpush.msrb.mxu3 %v1920_v50  ;;  %2235 = vmatpush.msrb.mxu0 %v1941_v4 }
 0x221   :  { %2113 = vmatpush.msrb.mxu2 %v1901_v15  ;;  %2045 = vmatpush.msra.mxu1 %v1888_v24 }
 0x222   :  { %v1348_v27 = vadd.f32 %v1347_v21, %v1346_v54  ;;  %2176 = vmatpush.msrb.mxu3 %v1919_v11  ;;  %2114 = vmatmul.f32.vlgmr.msrb.gmra.mxu2 %v1485_v49 }
 0x223   :  { %2046 = vmatpush.msra.mxu1 %v1887_v43 }
 0x224   :  { %v1349_v38 = vrot.slane %v1348_v27, 2 }
 0x226   :  { %v1350_v63 = vadd.f32 %v1349_v38, %v1348_v27  ;;  %v1940_v27 = vld [vmem:[%s4965_s5 + $0x1b8] sm:$0xff]  ;;  %v1918_v38 = vld [vmem:[%s4965_s5 + $0x108] sm:$0xff] }
 0x227   :  { %2236 = vmatpush.msrb.mxu0 %v1940_v27  ;;  %2177 = vmatpush.msrb.mxu3 %v1918_v38 }
 0x228   :  { %v1351_v55 = vrot.slane %v1350_v63, 1 }
 0x229   :  { %2237 = vmatpush.msrb.mxu0 %v1939_v53  ;;  %2178 = vmatpush.msrb.mxu3 %v1917_v37 }
 0x22a   :  { %v1352_v7 = vadd.f32 %v1351_v55, %v1350_v63  ;;  %v1886_v63 = vld [vmem:[%s4965_s5 + $0x8] sm:$0xff]  ;;  %2179 = vmatmul.f32.vlgmr.msrb.gmra.mxu3 %v1517_v58  ;;  %v1960_v58 = vld [vmem:[%s4965_s5 + $0x258] sm:$0xff] }
 0x22b   :  { %2047 = vmatpush.msra.mxu1 %v1886_v63  ;;  %2238 = vmatpush.msrb.mxu0 %v1938_v9 }
 0x22c   :  { %v1353_v1 = vmul.f32 %v1352_v7, %v3866_v60 }
 0x22d   :  { %2048 = vmatpush.msra.mxu1 %v1885_v8  ;;  %2239 = vmatpush.msrb.mxu0 %v1937_v40 }
 0x22e   :  { %v4027_v30 = vadd.f32 1e-05, %v1353_v1  ;;  %2049 = vmatmul.f32.vlgmr.msra.gmra.mxu1 %v4976_v17 }
 0x22f   :  { %2293 = vmatpush.msrb.mxu1 %v1964_v56  ;;  %2240 = vmatpush.msrb.mxu0 %v1936_v34 }
 0x230   :  { %2839 = vrsqrt.f32 %v4027_v30  ;;  %vm1361_vm2 = vweird.f32 %v4027_v30 }
 0x231   :  { %2294 = vmatpush.msrb.mxu1 %v1963_v28  ;;  %2241 = vmatpush.msrb.mxu0 %v1935_v31 }
 0x233   :  { %2295 = vmatpush.msrb.mxu1 %v1962_v29  ;;  %2242 = vmatpush.msrb.mxu0 %v1934_v36 }
 0x235   :  { %2243 = vmatpush.msrb.mxu0 %v1933_v22 }
 0x236   :  { %v2840_v54 = vpop.eup %2839 }
 0x237   :  { %v1356_v21 = vmul.f32 %v2840_v54, %v4027_v30  ;;  %vm1362_vm1 = vweird.f32 %v2840_v54 }
 0x238   :  { %vm1363_vm3 = vmor %vm1361_vm2, %vm1362_vm1 }
 0x239   :  { %v1357_v47 = vmul.f32 %v2840_v54, %v1356_v21 }
 0x23b   :  { %v1358_v14 = vmul.f32 0.5, %v1357_v47 }
 0x23d   :  { %v1359_v55 = vsub.f32 1.5, %v1358_v14 }
 0x23f   :  { %v1360_v7 = vmul.f32 %v2840_v54, %v1359_v55 }
 0x241   :  { %v1364_v1 = vsel %vm1363_vm3, %v2840_v54, %v1360_v7 }
 0x242   :  { %v1365_v19 = vmul.f32 %v1364_v1, %v3870_v20  ;;  %v1366_v44 = vmul.f32 %v1364_v1, %v3873_v46  ;;  %v1367_v48 = vmul.f32 %v1364_v1, %v3876_v0  ;;  %v1368_v30 = vmul.f32 %v1364_v1, %v3879_v2 }
 0x243   :  { %v1369_v61 = vmul.f32 %v1364_v1, %v3882_v57  ;;  %v1370_v20 = vmul.f32 %v1364_v1, %v3885_v33  ;;  %v1371_v46 = vmul.f32 %v1364_v1, %v3888_v18  ;;  %v1372_v0 = vmul.f32 %v1364_v1, %v3891_v10 }
 0x244   :  { %v1373_v2 = vmul.f32 %v1364_v1, %v3894_v32  ;;  %v1374_v3 = vmul.f32 %v1364_v1, %v3897_v52  ;;  %v1375_v39 = vmul.f32 %v1364_v1, %v3900_v26  ;;  %v1376_v12 = vmul.f32 %v1364_v1, %v3903_v16  ;;  %v2833_v16 = vld [vmem:[%s4964_s4] ss:$0 sm:$0xff] }
 0x245   :  { %v1377_v57 = vmul.f32 %v1364_v1, %v3905_v41  ;;  %v1378_v33 = vmul.f32 %v1364_v1, %v3907_v51  ;;  %v1379_v18 = vmul.f32 %v1364_v1, %v3909_v59  ;;  %v1380_v10 = vmul.f32 %v1364_v1, %v3911_v35  ;;  %v1961_v59 = vld [vmem:[%s4965_s5 + $0x260] sm:$0xff] }
 0x246   :  { %v1385_v32 = vmul.f32 %v4139_v13, %v1365_v19  ;;  %v1386_v52 = vmul.f32 %v4139_v13, %v1366_v44  ;;  %v1387_v26 = vmul.f32 %v4139_v13, %v1367_v48  ;;  %v1388_v25 = vmul.f32 %v4139_v13, %v1368_v30  ;;  %2296 = vmatpush.msrb.mxu1 %v1961_v59 }
 0x247   :  { %v1389_v41 = vmul.f32 %v4139_v13, %v1369_v61  ;;  %v1390_v51 = vmul.f32 %v4139_v13, %v1370_v20  ;;  %v1391_v35 = vmul.f32 %v4139_v13, %v1371_v46  ;;  %v1392_v45 = vmul.f32 %v4139_v13, %v1372_v0  ;;  %v1959_v20 = vld [vmem:[%s4965_s5 + $0x250] sm:$0xff] }
 0x248   :  { %v1405_v23 = vadd.f32 %v2833_v16, %v1385_v32  ;;  %v1406_v62 = vadd.f32 %v2833_v16, %v1386_v52  ;;  %v1407_v6 = vadd.f32 %v2833_v16, %v1387_v26  ;;  %v1408_v5 = vadd.f32 %v2833_v16, %v1388_v25  ;;  %2297 = vmatpush.msrb.mxu1 %v1960_v58  ;;  %v1955_v26 = vld [vmem:[%s4965_s5 + $0x230] sm:$0xff] }
 0x249   :  { %v1393_v42 = vmul.f32 %v4139_v13, %v1373_v2  ;;  %v1409_v50 = vadd.f32 %v2833_v16, %v1389_v41  ;;  %v1394_v4 = vmul.f32 %v4139_v13, %v1374_v3  ;;  %v1395_v54 = vmul.f32 %v4139_v13, %v1375_v39  ;;  %v1958_v39 = vld [vmem:[%s4965_s5 + $0x248] sm:$0xff]  ;;  %v1951_v58 = vld [vmem:[%s4965_s5 + $0x210] sm:$0xff] }
 0x24a   :  { %v1410_v15 = vadd.f32 %v2833_v16, %v1390_v51  ;;  %v1411_v49 = vadd.f32 %v2833_v16, %v1391_v35  ;;  %v4176_v21 = vmax.f32 %v1405_v23, 0.0  ;;  %v4178_v24 = vmax.f32 %v1406_v62, 0.0  ;;  %2298 = vmatpush.msrb.mxu1 %v1959_v20  ;;  %v1954_v41 = vld [vmem:[%s4965_s5 + $0x228] sm:$0xff]  ;;  %v1953_v23 = vld [vmem:[%s4965_s5 + $0x220] sm:$0xff] }
 0x24b   :  { %v4180_v11 = vmax.f32 %v1407_v6, 0.0  ;;  %v1396_v27 = vmul.f32 %v4139_v13, %v1376_v12  ;;  %v4183_v47 = vadd.f32 %v2833_v16, %v1392_v45  ;;  %v4185_v43 = vmax.f32 %v1408_v5, 0.0  ;;  %v1493_v51 = vld [vmem:[#allocation2 + $0xa1] sm:$0xff]  ;;  %v1952_v5 = vld [vmem:[%s4965_s5 + $0x218] sm:$0xff] }
 0x24c   :  { %v1397_v38 = vmul.f32 %v4139_v13, %v1377_v57  ;;  %v4188_v53 = vadd.f32 %v2833_v16, %v1393_v42  ;;  %v4190_v14 = vmax.f32 %v1409_v50, 0.0  ;;  %1437 = vst [vmem:[#allocation2 + $0x11] sm:$0xff] %v4176_v21  ;;  %2117 = vmatmul.f32.gmra.mxu2 %v4176_v21  ;;  %v1398_v63 = vmul.f32 %v4139_v13, %v1378_v33  ;;  %v1957_v57 = vld [vmem:[%s4965_s5 + $0x240] sm:$0xff]  ;;  %v1980_v42 = vld [vmem:[%s4965_s5 + $0x2f8] sm:$0xff] }
 0x24d   :  { %v4195_v37 = vadd.f32 %v2833_v16, %v1394_v4  ;;  %v4197_v9 = vmax.f32 %v1410_v15, 0.0  ;;  %1438 = vst [vmem:[#allocation2 + $0x21] sm:$0xff] %v4178_v24  ;;  %v1399_v55 = vmul.f32 %v4139_v13, %v1379_v18  ;;  %v4204_v8 = vadd.f32 %v2833_v16, %v1395_v54  ;;  %2299 = vmatpush.msrb.mxu1 %v1958_v39  ;;  %v1525_v62 = vld [vmem:[#allocation2 + $0xa2] sm:$0xff]  ;;  %v1996_v50 = vld [vmem:[%s4965_s5 + $0x378] sm:$0xff]  ;;  %v1979_v4 = vld [vmem:[%s4965_s5 + $0x2f0] sm:$0xff] }
 0x24e   :  { %v4206_v40 = vmax.f32 %v1411_v49, 0.0  ;;  %1439 = vst [vmem:[#allocation2 + $0x31] sm:$0xff] %v4180_v11  ;;  %v1400_v7 = vmul.f32 %v4139_v13, %v1380_v10  ;;  %v4210_v17 = vadd.f32 %v2833_v16, %v1396_v27  ;;  %v1428_v56 = vmax.f32 %v4183_v47, 0.0  ;;  %v1956_v10 = vld [vmem:[%s4965_s5 + $0x238] sm:$0xff]  ;;  %v4318_v6 = vld [vmem:[#allocation2 + $0xa0] sm:$0xff]  ;;  %2358 = vmatpush.msra.mxu2 %v1980_v42  ;;  %v1995_v54 = vld [vmem:[%s4965_s5 + $0x370] sm:$0xff]  ;;  %2423 = vmatpush.msra.mxu3 %v1996_v50 }
 0x24f   :  { %1440 = vst [vmem:[#allocation2 + $0x41] sm:$0xff] %v4185_v43  ;;  %v4214_v34 = vadd.f32 %v2833_v16, %v1397_v38  ;;  %v1429_v31 = vmax.f32 %v4188_v53, 0.0  ;;  %v4218_v28 = vadd.f32 %v2833_v16, %v1398_v63  ;;  %v1430_v1 = vmax.f32 %v4195_v37, 0.0  ;;  %2300 = vmatpush.msrb.mxu1 %v1957_v57  ;;  %v1978_v15 = vld [vmem:[%s4965_s5 + $0x2e8] sm:$0xff]  ;;  %v1977_v53 = vld [vmem:[%s4965_s5 + $0x2e0] sm:$0xff]  ;;  %v1975_v37 = vld [vmem:[%s4965_s5 + $0x2d0] sm:$0xff] }
 0x250   :  { %1441 = vst [vmem:[#allocation2 + $0x51] sm:$0xff] %v4190_v14  ;;  %v4222_v29 = vadd.f32 %v2833_v16, %v1399_v55  ;;  %v1431_v19 = vmax.f32 %v4204_v8, 0.0  ;;  %v1420_v44 = vadd.f32 %v2833_v16, %v1400_v7  ;;  %v1432_v48 = vmax.f32 %v4210_v17, 0.0  ;;  %2359 = vmatpush.msra.mxu2 %v1979_v4  ;;  %v1994_v49 = vld [vmem:[%s4965_s5 + $0x368] sm:$0xff]  ;;  %2424 = vmatpush.msra.mxu3 %v1995_v54  ;;  %v1993_v63 = vld [vmem:[%s4965_s5 + $0x360] sm:$0xff]  ;;  %v1976_v55 = vld [vmem:[%s4965_s5 + $0x2d8] sm:$0xff] }
 0x251   :  { %1442 = vst [vmem:[#allocation2 + $0x61] sm:$0xff] %v4197_v9  ;;  %v1433_v36 = vmax.f32 %v4214_v34, 0.0  ;;  %v1434_v61 = vmax.f32 %v4218_v28, 0.0  ;;  %2301 = vmatpush.msrb.mxu1 %v1956_v10  ;;  %v1992_v7 = vld [vmem:[%s4965_s5 + $0x358] sm:$0xff]  ;;  %v1974_v39 = vld [vmem:[%s4965_s5 + $0x2c8] sm:$0xff]  ;;  %v2009_v10 = vld [vmem:[%s4965_s5 + $0x3e0] sm:$0xff] }
 0x252   :  { %1443 = vst [vmem:[#allocation2 + $0x71] sm:$0xff] %v4206_v40  ;;  %v1435_v46 = vmax.f32 %v4222_v29, 0.0  ;;  %v1436_v0 = vmax.f32 %v1420_v44, 0.0  ;;  %2360 = vmatpush.msra.mxu2 %v1978_v15  ;;  %2425 = vmatpush.msra.mxu3 %v1994_v49  ;;  %v2011_v44 = vld [vmem:[%s4965_s5 + $0x3f0] sm:$0xff]  ;;  %v1990_v57 = vld [vmem:[%s4965_s5 + $0x348] sm:$0xff]  ;;  %v1972_v8 = vld [vmem:[%s4965_s5 + $0x2b8] sm:$0xff] }
 0x253   :  { %1444 = vst [vmem:[#allocation2 + $0x81] sm:$0xff] %v1428_v56  ;;  %v1454_v30 = vld [vmem:[#allocation2 + $0x10] sm:$0xff]  ;;  %2302 = vmatpush.msrb.mxu1 %v1955_v26  ;;  %v1973_v26 = vld [vmem:[%s4965_s5 + $0x2c0] sm:$0xff]  ;;  %v2006_v54 = vld [vmem:[%s4965_s5 + $0x3c8] sm:$0xff] }
 0x254   :  { %v4229_v13 = vld [vmem:[#allocation2 + $0x12] sm:$0xff]  ;;  %1445 = vst [vmem:[#allocation2 + $0xb1] sm:$0xff] %v1429_v31  ;;  %2052 = vmatmul.f32.gmra.mxu1 %v1454_v30  ;;  %2244 = vmatmul.f32.vlgmr.msrb.gmra.mxu0 %v1454_v30  ;;  %v4253_v2 = vld [vmem:[#allocation2 + $0x20] sm:$0xff]  ;;  %v2010_v30 = vld [vmem:[%s4965_s5 + $0x3e8] sm:$0xff] }
 0x255   :  { %2182 = vmatmul.f32.gmra.mxu3 %v4229_v13  ;;  %1446 = vst [vmem:[#allocation2 + $0xc1] sm:$0xff] %v1430_v1  ;;  %2120 = vmatmul.f32.gmra.mxu2 %v4178_v24  ;;  %v4255_v3 = vld [vmem:[#allocation2 + $0x22] sm:$0xff]  ;;  %v4264_v12 = vld [vmem:[#allocation2 + $0x30] sm:$0xff] }
 0x256   :  { %1447 = vst [vmem:[#allocation2 + $0xd1] sm:$0xff] %v1431_v19  ;;  %v4266_v22 = vld [vmem:[#allocation2 + $0x32] sm:$0xff]  ;;  %v4275_v33 = vld [vmem:[#allocation2 + $0x40] sm:$0xff]  ;;  %2303 = vmatpush.msrb.mxu1 %v1954_v41  ;;  %2361 = vmatpush.msra.mxu2 %v1977_v53  ;;  %v1970_v15 = vld [vmem:[%s4965_s5 + $0x2a8] sm:$0xff] }
 0x257   :  { %1448 = vst [vmem:[#allocation2 + $0xe1] sm:$0xff] %v1432_v48  ;;  %v4277_v18 = vld [vmem:[#allocation2 + $0x42] sm:$0xff]  ;;  %v4286_v32 = vld [vmem:[#allocation2 + $0x50] sm:$0xff]  ;;  %2426 = vmatpush.msra.mxu3 %v1993_v63  ;;  %v2004_v63 = vld [vmem:[%s4965_s5 + $0x3b8] sm:$0xff] }
 0x258   :  { %1449 = vst [vmem:[#allocation2 + $0xf1] sm:$0xff] %v1433_v36  ;;  %v4288_v52 = vld [vmem:[#allocation2 + $0x52] sm:$0xff]  ;;  %v4297_v16 = vld [vmem:[#allocation2 + $0x60] sm:$0xff]  ;;  %2304 = vmatpush.msrb.mxu1 %v1953_v23  ;;  %2362 = vmatpush.msra.mxu2 %v1976_v55  ;;  %v1986_v49 = vld [vmem:[%s4965_s5 + $0x328] sm:$0xff] }
 0x259   :  { %1450 = vst [vmem:[#allocation2 + $0x101] sm:$0xff] %v1434_v61  ;;  %v4299_v25 = vld [vmem:[#allocation2 + $0x62] sm:$0xff]  ;;  %v4308_v59 = vld [vmem:[#allocation2 + $0x70] sm:$0xff]  ;;  %2427 = vmatpush.msra.mxu3 %v1992_v7  ;;  %v2008_v23 = vld [vmem:[%s4965_s5 + $0x3d8] sm:$0xff] }
 0x25a   :  { %1451 = vst [vmem:[#allocation2 + $0x111] sm:$0xff] %v1435_v46  ;;  %v4310_v35 = vld [vmem:[#allocation2 + $0x72] sm:$0xff]  ;;  %v4321_v45 = vld [vmem:[#allocation2 + $0x80] sm:$0xff]  ;;  %2305 = vmatpush.msrb.mxu1 %v1952_v5  ;;  %2363 = vmatpush.msra.mxu2 %v1975_v37  ;;  %v1966_v34 = vld [vmem:[%s4965_s5 + $0x288] sm:$0xff] }
 0x25b   :  { %1452 = vst [vmem:[#allocation2 + $0x121] sm:$0xff] %v1436_v0  ;;  %v1462_v27 = vld [vmem:[#allocation2 + $0xb0] sm:$0xff]  ;;  %v1989_v41 = vld [vmem:[%s4965_s5 + $0x340] sm:$0xff]  ;;  %v1968_v7 = vld [vmem:[%s4965_s5 + $0x298] sm:$0xff] }
 0x25c   :  { %2055 = vmatmul.f32.gmra.mxu1 %v4253_v2  ;;  %2247 = vmatmul.f32.gmra.mxu0 %v4253_v2  ;;  %v4347_v38 = vld [vmem:[#allocation2 + $0xb2] sm:$0xff]  ;;  %v4382_v20 = vld [vmem:[#allocation2 + $0xc0] sm:$0xff] }
 0x25d   :  { %2185 = vmatmul.f32.gmra.mxu3 %v4255_v3  ;;  %2123 = vmatmul.f32.gmra.mxu2 %v4180_v11  ;;  %v4384_v0 = vld [vmem:[#allocation2 + $0xc2] sm:$0xff]  ;;  %v4421_v5 = vld [vmem:[#allocation2 + $0xd0] sm:$0xff] }
 0x25e   :  { %2306 = vmatpush.msrb.mxu1 %v1951_v58  ;;  %2364 = vmatpush.msra.mxu2 %v1974_v39  ;;  %v4423_v42 = vld [vmem:[#allocation2 + $0xd2] sm:$0xff]  ;;  %v2005_v53 = vld [vmem:[%s4965_s5 + $0x3c0] sm:$0xff]  ;;  %v2002_v39 = vld [vmem:[%s4965_s5 + $0x3a8] sm:$0xff] }
 0x25f   :  { %v1971_v50 = vld [vmem:[%s4965_s5 + $0x2b0] sm:$0xff]  ;;  %v1969_v17 = vld [vmem:[%s4965_s5 + $0x2a0] sm:$0xff] }
 0x260   :  { %2365 = vmatpush.msra.mxu2 %v1973_v26  ;;  %v1987_v4 = vld [vmem:[%s4965_s5 + $0x330] sm:$0xff]  ;;  %v4460_v58 = vld [vmem:[#allocation2 + $0xe0] sm:$0xff] }
 0x261   :  { %v4462_v55 = vld [vmem:[#allocation2 + $0xe2] sm:$0xff]  ;;  %v2003_v37 = vld [vmem:[%s4965_s5 + $0x3b0] sm:$0xff] }
 0x262   :  { %2366 = vmatpush.msra.mxu2 %v1972_v8  ;;  %v4501_v26 = vld [vmem:[#allocation2 + $0xf2] sm:$0xff]  ;;  %v4528_v28 = vld [vmem:[#allocation2 + $0x102] sm:$0xff] }
 0x263   :  { %v2027_v8 = vld [vmem:[%s4965_s5 + $0x470] sm:$0xff]  ;;  %v2025_v29 = vld [vmem:[%s4965_s5 + $0x460] sm:$0xff] }
 0x264   :  { %2058 = vmatmul.f32.gmra.mxu1 %v4264_v12  ;;  %2250 = vmatmul.f32.gmra.mxu0 %v4264_v12 }
 0x265   :  { %2188 = vmatmul.f32.gmra.mxu3 %v4266_v22  ;;  %2126 = vmatmul.f32.gmra.mxu2 %v4185_v43 }
 0x266   :  { %2367 = vmatpush.msra.mxu2 %v1971_v50  ;;  %v4526_v50 = vld [vmem:[#allocation2 + $0x100] sm:$0xff] }
 0x268   :  { %2368 = vmatpush.msra.mxu2 %v1970_v15  ;;  %v4543_v15 = vld [vmem:[#allocation2 + $0x112] sm:$0xff] }
 0x26a   :  { %2369 = vmatpush.msra.mxu2 %v1969_v17 }
 0x26c   :  { %2061 = vmatmul.f32.gmra.mxu1 %v4275_v33  ;;  %2253 = vmatmul.f32.gmra.mxu0 %v4275_v33 }
 0x26d   :  { %2191 = vmatmul.f32.gmra.mxu3 %v4277_v18  ;;  %2129 = vmatmul.f32.gmra.mxu2 %v4190_v14 }
 0x26e   :  { %2370 = vmatpush.msra.mxu2 %v1968_v7 }
 0x274   :  { %2064 = vmatmul.f32.gmra.mxu1 %v4286_v32  ;;  %2256 = vmatmul.f32.gmra.mxu0 %v4286_v32 }
 0x275   :  { %2194 = vmatmul.f32.gmra.mxu3 %v4288_v52  ;;  %2132 = vmatmul.f32.gmra.mxu2 %v4197_v9 }
 0x27c   :  { %2067 = vmatmul.f32.gmra.mxu1 %v4297_v16  ;;  %2259 = vmatmul.f32.gmra.mxu0 %v4297_v16 }
 0x27d   :  { %2197 = vmatmul.f32.gmra.mxu3 %v4299_v25  ;;  %2135 = vmatmul.f32.gmra.mxu2 %v4206_v40 }
 0x284   :  { %2070 = vmatmul.f32.gmra.mxu1 %v4308_v59  ;;  %2262 = vmatmul.f32.gmra.mxu0 %v4308_v59 }
 0x285   :  { %2200 = vmatmul.f32.gmra.mxu3 %v4310_v35  ;;  %2138 = vmatmul.f32.gmra.mxu2 %v1493_v51  ;;  %v1950_v51 = vld [vmem:[%s4965_s5 + $0x208] sm:$0xff] }
 0x286   :  { %2307 = vmatpush.msrb.mxu1 %v1950_v51  ;;  %v1981_v51 = vld [vmem:[%s4965_s5 + $0x300] sm:$0xff] }
 0x28c   :  { %2073 = vmatmul.f32.gmra.mxu1 %v4318_v6  ;;  %2265 = vmatmul.f32.gmra.mxu0 %v4321_v45 }
 0x28d   :  { %2203 = vmatmul.f32.gmra.mxu3 %v1525_v62  ;;  %2141 = vmatmul.f32.gmra.mxu2 %v1429_v31  ;;  %v2012_v31 = vld [vmem:[%s4965_s5 + $0x3f8] sm:$0xff]  ;;  %v2007_v62 = vld [vmem:[%s4965_s5 + $0x3d0] sm:$0xff] }
 0x28e   :  { %2488 = vmatpush.msra.mxu0 %v2012_v31  ;;  %v1984_v31 = vld [vmem:[%s4965_s5 + $0x318] sm:$0xff] }
 0x290   :  { %2489 = vmatpush.msra.mxu0 %v2011_v44  ;;  %v1983_v44 = vld [vmem:[%s4965_s5 + $0x310] sm:$0xff] }
 0x292   :  { %2490 = vmatpush.msra.mxu0 %v2010_v30  ;;  %v2028_v30 = vld [vmem:[%s4965_s5 + $0x478] sm:$0xff] }
 0x294   :  { %2076 = vmatmul.f32.gmra.mxu1 %v1462_v27  ;;  %2268 = vmatmul.f32.gmra.mxu0 %v1462_v27  ;;  %v1949_v27 = vld [vmem:[%s4965_s5 + $0x200] sm:$0xff] }
 0x295   :  { %2206 = vmatmul.f32.gmra.mxu3 %v4347_v38  ;;  %2144 = vmatmul.f32.gmra.mxu2 %v1430_v1  ;;  %v1991_v1 = vld [vmem:[%s4965_s5 + $0x350] sm:$0xff] }
 0x296   :  { %2428 = vmatpush.msra.mxu3 %v1991_v1  ;;  %2491 = vmatpush.msra.mxu0 %v2009_v10  ;;  %v1967_v1 = vld [vmem:[%s4965_s5 + $0x290] sm:$0xff] }
 0x297   :  { %2308 = vmatpush.msrb.mxu1 %v1949_v27  ;;  %2371 = vmatpush.msra.mxu2 %v1967_v1  ;;  %v4499_v10 = vld [vmem:[#allocation2 + $0xf0] sm:$0xff]  ;;  %v4556_v27 = vld [vmem:[#allocation2 + $0x120] sm:$0xff] }
 0x298   :  { %2429 = vmatpush.msra.mxu3 %v1990_v57  ;;  %2492 = vmatpush.msra.mxu0 %v2008_v23  ;;  %v2001_v57 = vld [vmem:[%s4965_s5 + $0x3a0] sm:$0xff]  ;;  %v2000_v23 = vld [vmem:[%s4965_s5 + $0x398] sm:$0xff] }
 0x299   :  { %2553 = vmatpush.msra.mxu1 %v2028_v30  ;;  %2372 = vmatpush.msra.mxu2 %v1966_v34 }
 0x29a   :  { %2430 = vmatpush.msra.mxu3 %v1989_v41  ;;  %2493 = vmatpush.msra.mxu0 %v2007_v62  ;;  %v1965_v41 = vld [vmem:[%s4965_s5 + $0x280] sm:$0xff]  ;;  %v1998_v62 = vld [vmem:[%s4965_s5 + $0x388] sm:$0xff] }
 0x29b   :  { %2373 = vmatpush.msra.mxu2 %v1965_v41  ;;  %2554 = vmatpush.msra.mxu1 %v2027_v8 }
 0x29c   :  { %2079 = vmatmul.f32.gmra.mxu1 %v4382_v20  ;;  %2271 = vmatmul.f32.gmra.mxu0 %v4382_v20 }
 0x29d   :  { %2209 = vmatmul.f32.gmra.mxu3 %v4384_v0  ;;  %2147 = vmatmul.f32.gmra.mxu2 %v1431_v19  ;;  %v1988_v19 = vld [vmem:[%s4965_s5 + $0x338] sm:$0xff] }
 0x29e   :  { %2431 = vmatpush.msra.mxu3 %v1988_v19  ;;  %2494 = vmatpush.msra.mxu0 %v2006_v54  ;;  %v1999_v19 = vld [vmem:[%s4965_s5 + $0x390] sm:$0xff] }
 0x29f   :  { %v4541_v54 = vld [vmem:[#allocation2 + $0x110] sm:$0xff] }
 0x2a0   :  { %2432 = vmatpush.msra.mxu3 %v1987_v4  ;;  %2495 = vmatpush.msra.mxu0 %v2005_v53  ;;  %v2026_v4 = vld [vmem:[%s4965_s5 + $0x468] sm:$0xff] }
 0x2a1   :  { %2555 = vmatpush.msra.mxu1 %v2026_v4 }
 0x2a2   :  { %2433 = vmatpush.msra.mxu3 %v1986_v49  ;;  %2496 = vmatpush.msra.mxu0 %v2004_v63 }
 0x2a3   :  { %2556 = vmatpush.msra.mxu1 %v2025_v29 }
 0x2a4   :  { %2082 = vmatmul.f32.gmra.mxu1 %v4421_v5  ;;  %2274 = vmatmul.f32.gmra.mxu0 %v4421_v5 }
 0x2a5   :  { %2212 = vmatmul.f32.gmra.mxu3 %v4423_v42  ;;  %2150 = vmatmul.f32.gmra.mxu2 %v1432_v48  ;;  %v1985_v48 = vld [vmem:[%s4965_s5 + $0x320] sm:$0xff]  ;;  %v4548_v49 = vpop.f32.mrf.mxu2 }
 0x2a6   :  { %2434 = vmatpush.msra.mxu3 %v1985_v48  ;;  %2497 = vmatpush.msra.mxu0 %v2003_v37  ;;  %v4570_v48 = vld [vmem:[%s4966_s6] ss:$0 sm:$0xff] }
 0x2a8   :  { %2435 = vmatpush.msra.mxu3 %v1984_v31  ;;  %2498 = vmatpush.msra.mxu0 %v2002_v39 }
 0x2aa   :  { %2436 = vmatpush.msra.mxu3 %v1983_v44  ;;  %2499 = vmatpush.msra.mxu0 %v2001_v57 }
 0x2ac   :  { %2085 = vmatmul.f32.gmra.mxu1 %v4460_v58  ;;  %2277 = vmatmul.f32.gmra.mxu0 %v4460_v58 }
 0x2ad   :  { %2215 = vmatmul.f32.gmra.mxu3 %v4462_v55  ;;  %2153 = vmatmul.f32.gmra.mxu2 %v1433_v36  ;;  %v1982_v36 = vld [vmem:[%s4965_s5 + $0x308] sm:$0xff]  ;;  %v4565_v53 = vpop.f32.mrf.mxu3 }
 0x2ae   :  { %2437 = vmatpush.msra.mxu3 %v1982_v36  ;;  %2500 = vmatpush.msra.mxu0 %v2000_v23 }
 0x2b0   :  { %2438 = vmatpush.msra.mxu3 %v1981_v51  ;;  %2501 = vmatpush.msra.mxu0 %v1999_v19 }
 0x2b2   :  { %2502 = vmatpush.msra.mxu0 %v1998_v62 }
 0x2b4   :  { %2088 = vmatmul.f32.gmra.mxu1 %v4499_v10  ;;  %2280 = vmatmul.f32.gmra.mxu0 %v4499_v10 }
 0x2b5   :  { %2218 = vmatmul.f32.gmra.mxu3 %v4501_v26  ;;  %2156 = vmatmul.f32.gmra.mxu2 %v1434_v61  ;;  %v1997_v61 = vld [vmem:[%s4965_s5 + $0x380] sm:$0xff] }
 0x2b6   :  { %2503 = vmatpush.msra.mxu0 %v1997_v61 }
 0x2bc   :  { %2091 = vmatmul.f32.gmra.mxu1 %v4526_v50  ;;  %2283 = vmatmul.f32.gmra.mxu0 %v4526_v50 }
 0x2bd   :  { %2221 = vmatmul.f32.gmra.mxu3 %v4528_v28  ;;  %2159 = vmatmul.f32.gmra.mxu2 %v1435_v46  ;;  %v4554_v46 = vpop.f32.mrf.mxu1 }
 0x2c4   :  { %2094 = vmatmul.f32.gmra.mxu1 %v4541_v54  ;;  %2286 = vmatmul.f32.gmra.mxu0 %v4541_v54 }
 0x2c5   :  { %2224 = vmatmul.f32.gmra.mxu3 %v4543_v15  ;;  %2374 = vmatmul.f32.vlgmr.msra.gmra.mxu2 %v4229_v13  ;;  %v2024_v13 = vld [vmem:[%s4965_s5 + $0x458] sm:$0xff] }
 0x2c6   :  { %2557 = vmatpush.msra.mxu1 %v2024_v13 }
 0x2cc   :  { %2309 = vmatmul.f32.vlgmr.msrb.gmra.mxu1 %v4176_v21  ;;  %2289 = vmatmul.f32.gmra.mxu0 %v4556_v27 }
 0x2cd   :  { %2439 = vmatmul.f32.vlgmr.msra.gmra.mxu3 %v4253_v2  ;;  %2377 = vmatmul.f32.gmra.mxu2 %v4255_v3  ;;  %v2023_v3 = vld [vmem:[%s4965_s5 + $0x450] sm:$0xff] }
 0x2ce   :  { %2558 = vmatpush.msra.mxu1 %v2023_v3 }
 0x2cf   :  { %v2118_v17 = vpop.f32.mrf.mxu2 }
 0x2d1   :  { %v2053_v21 = vpop.f32.mrf.mxu1  ;;  %v4573_v63 = vpop.f32.mrf.mxu0 }
 0x2d2   :  { %v2054_v2 = vadd.f32 %v4570_v48, %v2053_v21 }
 0x2d4   :  { %2312 = vmatmul.f32.gmra.mxu1 %v4178_v24  ;;  %2504 = vmatmul.f32.vlgmr.msra.gmra.mxu0 %v4178_v24  ;;  %v2119_v7 = vadd.f32 %v2118_v17, %v2054_v2  ;;  %v2022_v24 = vld [vmem:[%s4965_s5 + $0x448] sm:$0xff] }
 0x2d5   :  { %2442 = vmatmul.f32.gmra.mxu3 %v4264_v12  ;;  %2380 = vmatmul.f32.gmra.mxu2 %v4266_v22 }
 0x2d6   :  { %2559 = vmatpush.msra.mxu1 %v2022_v24 }
 0x2d8   :  { %v2183_v31 = vpop.f32.mrf.mxu3  ;;  %v2121_v1 = vpop.f32.mrf.mxu2 }
 0x2d9   :  { %v4582_v37 = vadd.f32 %v2183_v31, %v2119_v7  ;;  %v2056_v44 = vpop.f32.mrf.mxu1  ;;  %v4585_v39 = vpop.f32.mrf.mxu0 }
 0x2da   :  { %v2057_v30 = vadd.f32 %v4570_v48, %v2056_v44 }
 0x2dc   :  { %2315 = vmatmul.f32.gmra.mxu1 %v4180_v11  ;;  %2507 = vmatmul.f32.gmra.mxu0 %v4180_v11  ;;  %v2122_v12 = vadd.f32 %v2121_v1, %v2057_v30  ;;  %v2021_v11 = vld [vmem:[%s4965_s5 + $0x440] sm:$0xff] }
 0x2dd   :  { %2445 = vmatmul.f32.gmra.mxu3 %v4275_v33  ;;  %2383 = vmatmul.f32.gmra.mxu2 %v4277_v18 }
 0x2de   :  { %2560 = vmatpush.msra.mxu1 %v2021_v11 }
 0x2e0   :  { %v2186_v22 = vpop.f32.mrf.mxu3  ;;  %v2124_v36 = vpop.f32.mrf.mxu2 }
 0x2e1   :  { %v4594_v34 = vadd.f32 %v2186_v22, %v2122_v12  ;;  %v2059_v57 = vpop.f32.mrf.mxu1  ;;  %v4597_v51 = vpop.f32.mrf.mxu0 }
 0x2e2   :  { %v2060_v41 = vadd.f32 %v4570_v48, %v2059_v57 }
 0x2e4   :  { %2318 = vmatmul.f32.gmra.mxu1 %v4185_v43  ;;  %2510 = vmatmul.f32.gmra.mxu0 %v4185_v43  ;;  %v2125_v33 = vadd.f32 %v2124_v36, %v2060_v41  ;;  %v2020_v43 = vld [vmem:[%s4965_s5 + $0x438] sm:$0xff]  ;;  %v2017_v36 = vld [vmem:[%s4965_s5 + $0x420] sm:$0xff] }
 0x2e5   :  { %2448 = vmatmul.f32.gmra.mxu3 %v4286_v32  ;;  %2386 = vmatmul.f32.gmra.mxu2 %v4288_v52 }
 0x2e6   :  { %2561 = vmatpush.msra.mxu1 %v2020_v43 }
 0x2e8   :  { %v2189_v18 = vpop.f32.mrf.mxu3  ;;  %v2127_v8 = vpop.f32.mrf.mxu2 }
 0x2e9   :  { %v4606_v23 = vadd.f32 %v2189_v18, %v2125_v33  ;;  %v2062_v19 = vpop.f32.mrf.mxu1  ;;  %v4609_v61 = vpop.f32.mrf.mxu0 }
 0x2ea   :  { %v2063_v62 = vadd.f32 %v4570_v48, %v2062_v19  ;;  %v1589_v19 = vld [vmem:[#allocation2 + $0xb1] sm:$0xff] }
 0x2ec   :  { %2321 = vmatmul.f32.gmra.mxu1 %v4190_v14  ;;  %2513 = vmatmul.f32.gmra.mxu0 %v4190_v14  ;;  %v2128_v32 = vadd.f32 %v2127_v8, %v2063_v62  ;;  %v2019_v14 = vld [vmem:[%s4965_s5 + $0x430] sm:$0xff] }
 0x2ed   :  { %2451 = vmatmul.f32.gmra.mxu3 %v4297_v16  ;;  %2389 = vmatmul.f32.gmra.mxu2 %v4299_v25  ;;  %v1684_v8 = vld [vmem:[#allocation2 + $0x91] sm:$0xff] }
 0x2ee   :  { %2562 = vmatpush.msra.mxu1 %v2019_v14 }
 0x2f0   :  { %v2192_v52 = vpop.f32.mrf.mxu3  ;;  %v2130_v29 = vpop.f32.mrf.mxu2 }
 0x2f1   :  { %v4618_v4 = vadd.f32 %v2192_v52, %v2128_v32  ;;  %v2065_v13 = vpop.f32.mrf.mxu1  ;;  %v4621_v21 = vpop.f32.mrf.mxu0 }
 0x2f2   :  { %v2066_v17 = vadd.f32 %v4570_v48, %v2065_v13 }
 0x2f4   :  { %2324 = vmatmul.f32.gmra.mxu1 %v4197_v9  ;;  %2516 = vmatmul.f32.gmra.mxu0 %v4197_v9  ;;  %v2131_v16 = vadd.f32 %v2130_v29, %v2066_v17  ;;  %v4637_v9 = vld [vmem:[#allocation2 + $0x82] sm:$0xff] }
 0x2f5   :  { %2454 = vmatmul.f32.gmra.mxu3 %v4308_v59  ;;  %2392 = vmatmul.f32.gmra.mxu2 %v4310_v35  ;;  %v2018_v59 = vld [vmem:[%s4965_s5 + $0x428] sm:$0xff] }
 0x2f6   :  { %2563 = vmatpush.msra.mxu1 %v2018_v59 }
 0x2f8   :  { %v2195_v25 = vpop.f32.mrf.mxu3  ;;  %v2133_v3 = vpop.f32.mrf.mxu2  ;;  %2564 = vmatpush.msra.mxu1 %v2017_v36 }
 0x2f9   :  { %v4630_v2 = vadd.f32 %v2195_v25, %v2131_v16  ;;  %v2068_v7 = vpop.f32.mrf.mxu1  ;;  %v4633_v1 = vpop.f32.mrf.mxu0  ;;  %v1590_v16 = vld [vmem:[#allocation2 + $0xc1] sm:$0xff] }
 0x2fa   :  { %v2069_v31 = vadd.f32 %v4570_v48, %v2068_v7 }
 0x2fc   :  { %2327 = vmatmul.f32.gmra.mxu1 %v4206_v40  ;;  %2519 = vmatmul.f32.gmra.mxu0 %v4206_v40  ;;  %v2134_v35 = vadd.f32 %v2133_v3, %v2069_v31  ;;  %v1683_v40 = vld [vmem:[#allocation2 + $0x81] sm:$0xff] }
 0x2fd   :  { %2457 = vmatmul.f32.gmra.mxu3 %v4321_v45  ;;  %2395 = vmatmul.f32.gmra.mxu2 %v4637_v9 }
 0x300   :  { %v2198_v44 = vpop.f32.mrf.mxu3  ;;  %v2136_v24 = vpop.f32.mrf.mxu2 }
 0x301   :  { %v4644_v30 = vadd.f32 %v2198_v44, %v2134_v35  ;;  %v2071_v12 = vpop.f32.mrf.mxu1  ;;  %v4647_v45 = vpop.f32.mrf.mxu0 }
 0x302   :  { %v2072_v22 = vadd.f32 %v4570_v48, %v2071_v12 }
 0x304   :  { %2330 = vmatmul.f32.gmra.mxu1 %v1428_v56  ;;  %2522 = vmatmul.f32.gmra.mxu0 %v1683_v40  ;;  %v2137_v57 = vadd.f32 %v2136_v24, %v2072_v22  ;;  %v1591_v24 = vld [vmem:[#allocation2 + $0xd1] sm:$0xff] }
 0x305   :  { %2460 = vmatmul.f32.gmra.mxu3 %v4318_v6  ;;  %2398 = vmatmul.f32.gmra.mxu2 %v4347_v38  ;;  %v2016_v38 = vld [vmem:[%s4965_s5 + $0x418] sm:$0xff] }
 0x306   :  { %2565 = vmatpush.msra.mxu1 %v2016_v38 }
 0x308   :  { %v2201_v41 = vpop.f32.mrf.mxu3  ;;  %v2139_v33 = vpop.f32.mrf.mxu2 }
 0x309   :  { %v4656_v11 = vadd.f32 %v2201_v41, %v2137_v57  ;;  %v2074_v18 = vpop.f32.mrf.mxu1  ;;  %v4659_v56 = vpop.f32.mrf.mxu0 }
 0x30a   :  { %v2075_v47 = vadd.f32 %v4570_v48, %v2074_v18  ;;  %v1592_v18 = vld [vmem:[#allocation2 + $0xe1] sm:$0xff] }
 0x30c   :  { %2333 = vmatmul.f32.gmra.mxu1 %v1589_v19  ;;  %2525 = vmatmul.f32.gmra.mxu0 %v1684_v8  ;;  %v2140_v62 = vadd.f32 %v2139_v33, %v2075_v47 }
 0x30d   :  { %2463 = vmatmul.f32.gmra.mxu3 %v4382_v20  ;;  %2401 = vmatmul.f32.gmra.mxu2 %v4384_v0  ;;  %v2015_v20 = vld [vmem:[%s4965_s5 + $0x410] sm:$0xff] }
 0x30e   :  { %2566 = vmatpush.msra.mxu1 %v2015_v20 }
 0x310   :  { %v2204_v43 = vpop.f32.mrf.mxu3  ;;  %v2142_v52 = vpop.f32.mrf.mxu2 }
 0x311   :  { %v2205_v32 = vadd.f32 %v2204_v43, %v2140_v62  ;;  %v2077_v29 = vpop.f32.mrf.mxu1  ;;  %v2269_v17 = vpop.f32.mrf.mxu0 }
 0x312   :  { %v2078_v13 = vadd.f32 %v4570_v48, %v2077_v29 }
 0x313   :  { %v4667_v14 = vadd.f32 %v2269_v17, %v2205_v32 }
 0x314   :  { %2336 = vmatmul.f32.gmra.mxu1 %v1590_v16  ;;  %2528 = vmatmul.f32.gmra.mxu0 %v1590_v16  ;;  %v2143_v0 = vadd.f32 %v2142_v52, %v2078_v13  ;;  %v1593_v52 = vld [vmem:[#allocation2 + $0xf1] sm:$0xff] }
 0x315   :  { %2466 = vmatmul.f32.gmra.mxu3 %v4421_v5  ;;  %2404 = vmatmul.f32.gmra.mxu2 %v4423_v42  ;;  %v2014_v5 = vld [vmem:[%s4965_s5 + $0x408] sm:$0xff] }
 0x316   :  { %2567 = vmatpush.msra.mxu1 %v2014_v5 }
 0x318   :  { %v2207_v25 = vpop.f32.mrf.mxu3  ;;  %v2145_v7 = vpop.f32.mrf.mxu2 }
 0x319   :  { %v2208_v3 = vadd.f32 %v2207_v25, %v2143_v0  ;;  %v2080_v31 = vpop.f32.mrf.mxu1  ;;  %v2272_v35 = vpop.f32.mrf.mxu0 }
 0x31a   :  { %v2081_v59 = vadd.f32 %v4570_v48, %v2080_v31 }
 0x31b   :  { %v4675_v44 = vadd.f32 %v2272_v35, %v2208_v3  ;;  %v1594_v3 = vld [vmem:[#allocation2 + $0x101] sm:$0xff] }
 0x31c   :  { %2339 = vmatmul.f32.gmra.mxu1 %v1591_v24  ;;  %2531 = vmatmul.f32.gmra.mxu0 %v1591_v24  ;;  %v2146_v42 = vadd.f32 %v2145_v7, %v2081_v59 }
 0x31d   :  { %2469 = vmatmul.f32.gmra.mxu3 %v4460_v58  ;;  %2407 = vmatmul.f32.gmra.mxu2 %v4462_v55  ;;  %v2013_v58 = vld [vmem:[%s4965_s5 + $0x400] sm:$0xff] }
 0x31e   :  { %2568 = vmatpush.msra.mxu1 %v2013_v58 }
 0x320   :  { %v2210_v12 = vpop.f32.mrf.mxu3  ;;  %v2148_v40 = vpop.f32.mrf.mxu2 }
 0x321   :  { %v2211_v22 = vadd.f32 %v2210_v12, %v2146_v42  ;;  %v2083_v36 = vpop.f32.mrf.mxu1  ;;  %v2275_v41 = vpop.f32.mrf.mxu0  ;;  %v1595_v12 = vld [vmem:[#allocation2 + $0x111] sm:$0xff] }
 0x322   :  { %v2084_v57 = vadd.f32 %v4570_v48, %v2083_v36 }
 0x323   :  { %v4683_v33 = vadd.f32 %v2275_v41, %v2211_v22  ;;  %v4704_v22 = vld [vmem:[#allocation2 + $0x122] sm:$0xff] }
 0x324   :  { %2342 = vmatmul.f32.gmra.mxu1 %v1592_v18  ;;  %2534 = vmatmul.f32.gmra.mxu0 %v1592_v18  ;;  %v2149_v55 = vadd.f32 %v2148_v40, %v2084_v57 }
 0x325   :  { %2472 = vmatmul.f32.gmra.mxu3 %v4499_v10  ;;  %2410 = vmatmul.f32.gmra.mxu2 %v4501_v26 }
 0x328   :  { %v2213_v47 = vpop.f32.mrf.mxu3  ;;  %v2151_v19 = vpop.f32.mrf.mxu2 }
 0x329   :  { %v2214_v8 = vadd.f32 %v2213_v47, %v2149_v55  ;;  %v2086_v38 = vpop.f32.mrf.mxu1  ;;  %v2278_v43 = vpop.f32.mrf.mxu0 }
 0x32a   :  { %v2087_v62 = vadd.f32 %v4570_v48, %v2086_v38 }
 0x32b   :  { %v4691_v32 = vadd.f32 %v2278_v43, %v2214_v8 }
 0x32c   :  { %2345 = vmatmul.f32.gmra.mxu1 %v1593_v52  ;;  %2537 = vmatmul.f32.gmra.mxu0 %v1593_v52  ;;  %v2152_v10 = vadd.f32 %v2151_v19, %v2087_v62 }
 0x32d   :  { %2475 = vmatmul.f32.gmra.mxu3 %v4526_v50  ;;  %2413 = vmatmul.f32.gmra.mxu2 %v4528_v28 }
 0x330   :  { %v2216_v29 = vpop.f32.mrf.mxu3  ;;  %v2154_v17 = vpop.f32.mrf.mxu2 }
 0x331   :  { %v2217_v13 = vadd.f32 %v2216_v29, %v2152_v10  ;;  %v2089_v16 = vpop.f32.mrf.mxu1  ;;  %v2281_v0 = vpop.f32.mrf.mxu0 }
 0x332   :  { %v2090_v20 = vadd.f32 %v4570_v48, %v2089_v16 }
 0x333   :  { %v4696_v25 = vadd.f32 %v2281_v0, %v2217_v13 }
 0x334   :  { %2348 = vmatmul.f32.gmra.mxu1 %v1594_v3  ;;  %2540 = vmatmul.f32.gmra.mxu0 %v1594_v3  ;;  %v2155_v50 = vadd.f32 %v2154_v17, %v2090_v20  ;;  %v1709_v17 = vld [vmem:[#allocation2 + $0x22] sm:$0xff] }
 0x335   :  { %2478 = vmatmul.f32.gmra.mxu3 %v4541_v54  ;;  %2416 = vmatmul.f32.gmra.mxu2 %v4543_v15  ;;  %v2051_v54 = vadd.f32 %v4570_v48, %v4554_v46 }
 0x337   :  { %v2116_v58 = vadd.f32 %v4548_v49, %v2051_v54 }
 0x338   :  { %v2219_v7 = vpop.f32.mrf.mxu3  ;;  %v2157_v59 = vpop.f32.mrf.mxu2 }
 0x339   :  { %v2220_v31 = vadd.f32 %v2219_v7, %v2155_v50  ;;  %v2092_v35 = vpop.f32.mrf.mxu1  ;;  %v2284_v5 = vpop.f32.mrf.mxu0  ;;  %v2181_v19 = vadd.f32 %v4565_v53, %v2116_v58  ;;  %v2249_v53 = vadd.f32 %v4585_v39, %v4582_v37  ;;  %v1711_v39 = vld [vmem:[#allocation2 + $0x42] sm:$0xff] }
 0x33a   :  { %v2093_v24 = vadd.f32 %v4570_v48, %v2092_v35 }
 0x33b   :  { %v4701_v42 = vadd.f32 %v2284_v5, %v2220_v31  ;;  %v2246_v62 = vadd.f32 %v4573_v63, %v2181_v19  ;;  %v1710_v31 = vld [vmem:[#allocation2 + $0x32] sm:$0xff] }
 0x33c   :  { %2351 = vmatmul.f32.gmra.mxu1 %v1595_v12  ;;  %2543 = vmatmul.f32.gmra.mxu0 %v1595_v12  ;;  %v2158_v40 = vadd.f32 %v2157_v59, %v2093_v24  ;;  %v2252_v24 = vadd.f32 %v4597_v51, %v4594_v34  ;;  %v1712_v51 = vld [vmem:[#allocation2 + $0x52] sm:$0xff] }
 0x33d   :  { %2481 = vmatmul.f32.gmra.mxu3 %v4556_v27  ;;  %2419 = vmatmul.f32.gmra.mxu2 %v4704_v22  ;;  %v1596_v27 = vld [vmem:[#allocation2 + $0x121] sm:$0xff] }
 0x340   :  { %v2222_v36 = vpop.f32.mrf.mxu3  ;;  %v2160_v41 = vpop.f32.mrf.mxu2 }
 0x341   :  { %v2223_v57 = vadd.f32 %v2222_v36, %v2158_v40  ;;  %v2095_v18 = vpop.f32.mrf.mxu1  ;;  %v2287_v47 = vpop.f32.mrf.mxu0 }
 0x342   :  { %v2096_v55 = vadd.f32 %v4570_v48, %v2095_v18  ;;  %v1692_v48 = vld [vmem:[#allocation2 + $0x131] sm:$0xff]  ;;  %v2255_v18 = vadd.f32 %v4609_v61, %v4606_v23  ;;  %v1713_v23 = vld [vmem:[#allocation2 + $0x62] sm:$0xff] }
 0x343   :  { %v4711_v8 = vadd.f32 %v2287_v47, %v2223_v57 }
 0x344   :  { %2354 = vmatmul.f32.gmra.mxu1 %v1596_v27  ;;  %2546 = vmatmul.f32.gmra.mxu0 %v1596_v27  ;;  %v2161_v46 = vadd.f32 %v2160_v41, %v2096_v55 }
 0x345   :  { %2484 = vmatmul.f32.gmra.mxu3 %v4318_v6 }
 0x348   :  { %v2225_v38 = vpop.f32.mrf.mxu3  ;;  %v2375_v52 = vpop.f32.mrf.mxu2 }
 0x349   :  { %v2226_v43 = vadd.f32 %v2225_v38, %v2161_v46  ;;  %v2310_v10 = vpop.f32.mrf.mxu1  ;;  %v2290_v49 = vpop.f32.mrf.mxu0 }
 0x34a   :  { %v2311_v29 = vadd.f32 %v2310_v10, %v2246_v62  ;;  %v2258_v62 = vadd.f32 %v4621_v21, %v4618_v4  ;;  %v1716_v21 = vld [vmem:[#allocation2 + $0x92] sm:$0xff] }
 0x34b   :  { %v4716_v13 = vadd.f32 %v2290_v49, %v2226_v43 }
 0x34c   :  { %2569 = vmatmul.f32.vlgmr.msra.gmra.mxu1 %v1709_v17  ;;  %2549 = vmatmul.f32.gmra.mxu0 %v1692_v48  ;;  %v2376_v16 = vadd.f32 %v2375_v52, %v2311_v29 }
 0x350   :  { %v2440_v6 = vpop.f32.mrf.mxu3  ;;  %v2378_v0 = vpop.f32.mrf.mxu2 }
 0x351   :  { %v2441_v20 = vadd.f32 %v2440_v6, %v2376_v16  ;;  %v2313_v3 = vpop.f32.mrf.mxu1  ;;  %v2505_v50 = vpop.f32.mrf.mxu0 }
 0x352   :  { %v2314_v63 = vadd.f32 %v2313_v3, %v2249_v53 }
 0x353   :  { %v4720_v7 = vadd.f32 %v2505_v50, %v2441_v20 }
 0x354   :  { %2572 = vmatmul.f32.gmra.mxu1 %v1710_v31  ;;  %v2379_v59 = vadd.f32 %v2378_v0, %v2314_v63  ;;  %v1714_v0 = vld [vmem:[#allocation2 + $0x72] sm:$0xff]  ;;  %v1717_v31 = vld [vmem:[#allocation2 + $0xc2] sm:$0xff] }
 0x358   :  { %v2443_v35 = vpop.f32.mrf.mxu3  ;;  %v2381_v12 = vpop.f32.mrf.mxu2 }
 0x359   :  { %v2444_v5 = vadd.f32 %v2443_v35, %v2379_v59  ;;  %v2316_v54 = vpop.f32.mrf.mxu1  ;;  %v2508_v36 = vpop.f32.mrf.mxu0 }
 0x35a   :  { %v2317_v40 = vadd.f32 %v2316_v54, %v2252_v24  ;;  %v1718_v24 = vld [vmem:[#allocation2 + $0xd2] sm:$0xff] }
 0x35b   :  { %v4724_v37 = vadd.f32 %v2508_v36, %v2444_v5 }
 0x35c   :  { %2575 = vmatmul.f32.gmra.mxu1 %v1711_v39  ;;  %v2382_v57 = vadd.f32 %v2381_v12, %v2317_v40 }
 0x360   :  { %v2446_v41 = vpop.f32.mrf.mxu3  ;;  %v2384_v47 = vpop.f32.mrf.mxu2 }
 0x361   :  { %v2447_v58 = vadd.f32 %v2446_v41, %v2382_v57  ;;  %v2319_v55 = vpop.f32.mrf.mxu1  ;;  %v2511_v19 = vpop.f32.mrf.mxu0 }
 0x362   :  { %v2320_v27 = vadd.f32 %v2319_v55, %v2255_v18 }
 0x363   :  { %v4728_v34 = vadd.f32 %v2511_v19, %v2447_v58 }
 0x364   :  { %2578 = vmatmul.f32.gmra.mxu1 %v1712_v51  ;;  %v2385_v46 = vadd.f32 %v2384_v47, %v2320_v27 }
 0x368   :  { %v2449_v38 = vpop.f32.mrf.mxu3  ;;  %v2387_v61 = vpop.f32.mrf.mxu2 }
 0x369   :  { %v2450_v43 = vadd.f32 %v2449_v38, %v2385_v46  ;;  %v2322_v52 = vpop.f32.mrf.mxu1  ;;  %v2514_v49 = vpop.f32.mrf.mxu0 }
 0x36a   :  { %v2323_v10 = vadd.f32 %v2322_v52, %v2258_v62 }
 0x36b   :  { %v2515_v29 = vadd.f32 %v2514_v49, %v2450_v43 }
 0x36c   :  { %2581 = vmatmul.f32.gmra.mxu1 %v1713_v23  ;;  %v2388_v48 = vadd.f32 %v2387_v61, %v2323_v10  ;;  %v2264_v23 = vadd.f32 %v4647_v45, %v4644_v30 }
 0x370   :  { %v2452_v17 = vpop.f32.mrf.mxu3 }
 0x371   :  { %v2453_v16 = vadd.f32 %v2452_v17, %v2388_v48  ;;  %v2325_v6 = vpop.f32.mrf.mxu1  ;;  %v2517_v53 = vpop.f32.mrf.mxu0 }
 0x373   :  { %v2518_v20 = vadd.f32 %v2517_v53, %v2453_v16 }
 0x374   :  { %2584 = vmatmul.f32.gmra.mxu1 %v1714_v0 }
 0x378   :  { %v2455_v58 = vpop.f32.mrf.mxu3 }
 0x379   :  { %v4732_v3 = vpop.f32.mrf.mxu1 }
 0x37a   :  { %v2329_v17 = vadd.f32 %v4732_v3, %v2264_v23 }
 0x37c   :  { %2587 = vmatmul.f32.gmra.mxu1 %v4637_v9  ;;  %v1719_v9 = vld [vmem:[#allocation2 + $0xe2] sm:$0xff] }
 0x380   :  { %v2458_v19 = vpop.f32.mrf.mxu3 }
 0x381   :  { %v4735_v4 = vpop.f32.mrf.mxu1 }
 0x384   :  { %2590 = vmatmul.f32.gmra.mxu1 %v1716_v21 }
 0x388   :  { %v2461_v52 = vpop.f32.mrf.mxu3 }
 0x389   :  { %v2334_v63 = vpop.f32.mrf.mxu1 }
 0x38a   :  { %v4738_v50 = vadd.f32 %v2334_v63, %v4667_v14 }
 0x38c   :  { %2593 = vmatmul.f32.gmra.mxu1 %v1717_v31 }
 0x390   :  { %v2464_v0 = vpop.f32.mrf.mxu3 }
 0x391   :  { %v2337_v59 = vpop.f32.mrf.mxu1 }
 0x392   :  { %v4741_v35 = vadd.f32 %v2337_v59, %v4675_v44 }
 0x394   :  { %2596 = vmatmul.f32.gmra.mxu1 %v1718_v24 }
 0x399   :  { %v2340_v5 = vpop.f32.mrf.mxu1 }
 0x39a   :  { %v4744_v12 = vadd.f32 %v2340_v5, %v4683_v33 }
 0x39c   :  { %2599 = vmatmul.f32.gmra.mxu1 %v1719_v9 }
 0x3a1   :  { %v2343_v54 = vpop.f32.mrf.mxu1 }
 0x3a2   :  { %v4747_v40 = vadd.f32 %v2343_v54, %v4691_v32 }
 0x3a4   :  { %2602 = vmatmul.f32.gmra.mxu1 %v4501_v26  ;;  %v1724_v26 = vld [vmem:[#allocation2 + $0x132] sm:$0xff] }
 0x3a9   :  { %v2346_v14 = vpop.f32.mrf.mxu1 }
 0x3aa   :  { %v4751_v36 = vadd.f32 %v2346_v14, %v4696_v25  ;;  %v2467_v14 = vpop.f32.mrf.mxu3 }
 0x3ac   :  { %2605 = vmatmul.f32.gmra.mxu1 %v4528_v28 }
 0x3b1   :  { %v2349_v44 = vpop.f32.mrf.mxu1 }
 0x3b2   :  { %v4755_v39 = vadd.f32 %v2349_v44, %v4701_v42 }
 0x3b4   :  { %2608 = vmatmul.f32.gmra.mxu1 %v4543_v15  ;;  %v2390_v15 = vpop.f32.mrf.mxu2 }
 0x3b9   :  { %v2352_v33 = vpop.f32.mrf.mxu1 }
 0x3ba   :  { %v4759_v57 = vadd.f32 %v2352_v33, %v4711_v8 }
 0x3bc   :  { %2611 = vmatmul.f32.gmra.mxu1 %v4704_v22  ;;  %v2520_v22 = vpop.f32.mrf.mxu0  ;;  %v2393_v27 = vpop.f32.mrf.mxu2 }
 0x3c1   :  { %v2355_v32 = vpop.f32.mrf.mxu1 }
 0x3c2   :  { %v4763_v41 = vadd.f32 %v2355_v32, %v4716_v13 }
 0x3c4   :  { %2614 = vmatmul.f32.gmra.mxu1 %v1724_v26  ;;  %v2523_v46 = vpop.f32.mrf.mxu0  ;;  %v2396_v43 = vpop.f32.mrf.mxu2 }
 0x3c9   :  { %v2570_v25 = vpop.f32.mrf.mxu1 }
 0x3ca   :  { %v4766_v28 = vadd.f32 %v2570_v25, %v4720_v7 }
 0x3cc   :  { %v2526_v48 = vpop.f32.mrf.mxu0  ;;  %v2399_v53 = vpop.f32.mrf.mxu2 }
 0x3d1   :  { %v2573_v42 = vpop.f32.mrf.mxu1 }
 0x3d2   :  { %v4769_v18 = vadd.f32 %v2573_v42, %v4724_v37  ;;  %v2261_v37 = vadd.f32 %v4633_v1, %v4630_v2  ;;  %v2394_v1 = vadd.f32 %v2393_v27, %v2329_v17  ;;  %v2470_v42 = vpop.f32.mrf.mxu3 }
 0x3d4   :  { %v2618_v8 = vadd.f32 %v4769_v18, %v4766_v28  ;;  %v2326_v62 = vadd.f32 %v2325_v6, %v2261_v37  ;;  %v2459_v21 = vadd.f32 %v2458_v19, %v2394_v1  ;;  %v2529_v45 = vpop.f32.mrf.mxu0  ;;  %v2402_v9 = vpop.f32.mrf.mxu2 }
 0x3d6   :  { %v2391_v49 = vadd.f32 %v2390_v15, %v2326_v62  ;;  %v2524_v31 = vadd.f32 %v2523_v46, %v2459_v21 }
 0x3d8   :  { %v2456_v61 = vadd.f32 %v2455_v58, %v2391_v49  ;;  %v2403_v58 = vadd.f32 %v2402_v9, %v4741_v35 }
 0x3d9   :  { %v2576_v55 = vpop.f32.mrf.mxu1 }
 0x3da   :  { %v4774_v47 = vadd.f32 %v2576_v55, %v4728_v34  ;;  %v2521_v16 = vadd.f32 %v2520_v22, %v2456_v61 }
 0x3dc   :  { %v2619_v13 = vadd.f32 %v2618_v8, %v4774_v47  ;;  %v2532_v33 = vpop.f32.mrf.mxu0  ;;  %v2405_v25 = vpop.f32.mrf.mxu2 }
 0x3dd   :  { %v2406_v37 = vadd.f32 %v2405_v25, %v4744_v12 }
 0x3df   :  { %v2471_v62 = vadd.f32 %v2470_v42, %v2406_v37 }
 0x3e1   :  { %v2579_v7 = vpop.f32.mrf.mxu1 }
 0x3e2   :  { %v4777_v51 = vadd.f32 %v2579_v7, %v2515_v29 }
 0x3e4   :  { %v2620_v38 = vadd.f32 %v2619_v13, %v4777_v51  ;;  %v2535_v55 = vpop.f32.mrf.mxu0  ;;  %v2468_v13 = vadd.f32 %v2467_v14, %v2403_v58  ;;  %v2408_v7 = vpop.f32.mrf.mxu2 }
 0x3e5   :  { %v2409_v49 = vadd.f32 %v2408_v7, %v4747_v40 }
 0x3e6   :  { %v2533_v19 = vadd.f32 %v2532_v33, %v2468_v13 }
 0x3e9   :  { %v2582_v10 = vpop.f32.mrf.mxu1 }
 0x3ea   :  { %v4782_v34 = vadd.f32 %v2582_v10, %v2518_v20  ;;  %v2267_v20 = vadd.f32 %v4659_v56, %v4656_v11  ;;  %v2400_v11 = vadd.f32 %v2399_v53, %v4738_v50  ;;  %v2473_v50 = vpop.f32.mrf.mxu3  ;;  %v2536_v10 = vadd.f32 %v2535_v55, %v2471_v62 }
 0x3ec   :  { %v2621_v29 = vadd.f32 %v2620_v38, %v4782_v34  ;;  %v2332_v30 = vadd.f32 %v4735_v4, %v2267_v20  ;;  %v2465_v26 = vadd.f32 %v2464_v0, %v2400_v11  ;;  %v2411_v23 = vpop.f32.mrf.mxu2 }
 0x3ed   :  { %v2412_v12 = vadd.f32 %v2411_v23, %v4751_v36 }
 0x3ee   :  { %v2397_v24 = vadd.f32 %v2396_v43, %v2332_v30  ;;  %v2530_v15 = vadd.f32 %v2529_v45, %v2465_v26 }
 0x3f0   :  { %v2462_v5 = vadd.f32 %v2461_v52, %v2397_v24  ;;  %v2538_v52 = vpop.f32.mrf.mxu0 }
 0x3f1   :  { %v2585_v2 = vpop.f32.mrf.mxu1 }
 0x3f2   :  { %v4788_v6 = vadd.f32 %v2585_v2, %v2521_v16  ;;  %v2527_v44 = vadd.f32 %v2526_v48, %v2462_v5  ;;  %v2474_v48 = vadd.f32 %v2473_v50, %v2409_v49 }
 0x3f4   :  { %v2622_v63 = vadd.f32 %v2621_v29, %v4788_v6  ;;  %v2476_v29 = vpop.f32.mrf.mxu3  ;;  %v2539_v2 = vadd.f32 %v2538_v52, %v2474_v48  ;;  %v2414_v20 = vpop.f32.mrf.mxu2 }
 0x3f5   :  { %v2477_v0 = vadd.f32 %v2476_v29, %v2412_v12  ;;  %v2415_v40 = vadd.f32 %v2414_v20, %v4755_v39 }
 0x3f8   :  { %v2541_v16 = vpop.f32.mrf.mxu0 }
 0x3f9   :  { %v2588_v59 = vpop.f32.mrf.mxu1  ;;  %v2542_v30 = vadd.f32 %v2541_v16, %v2477_v0 }
 0x3fa   :  { %v4794_v3 = vadd.f32 %v2588_v59, %v2524_v31 }
 0x3fc   :  { %v2623_v54 = vadd.f32 %v2622_v63, %v4794_v3  ;;  %v2479_v63 = vpop.f32.mrf.mxu3  ;;  %v2417_v9 = vpop.f32.mrf.mxu2 }
 0x3fd   :  { %v2480_v24 = vadd.f32 %v2479_v63, %v2415_v40  ;;  %v2418_v33 = vadd.f32 %v2417_v9, %v4759_v57 }
 0x400   :  { %v2544_v45 = vpop.f32.mrf.mxu0 }
 0x401   :  { %v2591_v32 = vpop.f32.mrf.mxu1  ;;  %v2545_v14 = vadd.f32 %v2544_v45, %v2480_v24 }
 0x402   :  { %v4798_v56 = vadd.f32 %v2591_v32, %v2527_v44 }
 0x404   :  { %v2624_v4 = vadd.f32 %v2623_v54, %v4798_v56  ;;  %v2482_v54 = vpop.f32.mrf.mxu3  ;;  %v2420_v25 = vpop.f32.mrf.mxu2 }
 0x405   :  { %v2483_v11 = vadd.f32 %v2482_v54, %v2418_v33 }
 0x408   :  { %v2547_v32 = vpop.f32.mrf.mxu0 }
 0x409   :  { %v2594_v8 = vpop.f32.mrf.mxu1 }
 0x40a   :  { %v4802_v22 = vadd.f32 %v2594_v8, %v2530_v15  ;;  %v2421_v8 = vadd.f32 %v2420_v25, %v4763_v41 }
 0x40c   :  { %v2625_v27 = vadd.f32 %v2624_v4, %v4802_v22  ;;  %v2548_v4 = vadd.f32 %v2547_v32, %v2483_v11  ;;  %v2485_v42 = vpop.f32.mrf.mxu3 }
 0x40d   :  { %v2486_v58 = vadd.f32 %v2485_v42, %v2421_v8 }
 0x410   :  { %v2550_v13 = vpop.f32.mrf.mxu0 }
 0x411   :  { %v2597_v46 = vpop.f32.mrf.mxu1 }
 0x412   :  { %v4806_v38 = vadd.f32 %v2597_v46, %v2533_v19 }
 0x414   :  { %v2626_v43 = vadd.f32 %v2625_v27, %v4806_v38  ;;  %v2551_v27 = vadd.f32 %v2550_v13, %v2486_v58 }
 0x419   :  { %v2600_v35 = vpop.f32.mrf.mxu1 }
 0x41a   :  { %v2601_v61 = vadd.f32 %v2600_v35, %v2536_v10 }
 0x41c   :  { %v2627_v17 = vadd.f32 %v2626_v43, %v2601_v61 }
 0x421   :  { %v2603_v1 = vpop.f32.mrf.mxu1 }
 0x422   :  { %v2604_v53 = vadd.f32 %v2603_v1, %v2539_v2 }
 0x424   :  { %v2628_v21 = vadd.f32 %v2627_v17, %v2604_v53 }
 0x429   :  { %v2606_v31 = vpop.f32.mrf.mxu1 }
 0x42a   :  { %v2607_v59 = vadd.f32 %v2606_v31, %v2542_v30 }
 0x42c   :  { %v2629_v5 = vadd.f32 %v2628_v21, %v2607_v59 }
 0x431   :  { %v2609_v44 = vpop.f32.mrf.mxu1 }
 0x432   :  { %v2610_v36 = vadd.f32 %v2609_v44, %v2545_v14 }
 0x434   :  { %v2630_v26 = vadd.f32 %v2629_v5, %v2610_v36 }
 0x439   :  { %v2612_v15 = vpop.f32.mrf.mxu1 }
 0x43a   :  { %v2613_v39 = vadd.f32 %v2612_v15, %v2548_v4 }
 0x43c   :  { %v2631_v55 = vadd.f32 %v2630_v26, %v2613_v39 }
 0x441   :  { %v2615_v19 = vpop.f32.mrf.mxu1 }
 0x442   :  { %v2616_v7 = vadd.f32 %v2615_v19, %v2551_v27 }
 0x444   :  { %v2632_v50 = vadd.f32 %v2631_v55, %v2616_v7 }
 0x446   :  { %v2633_v46 = vrot.slane %v2632_v50, 4 }
 0x448   :  { %v2634_v57 = vadd.f32 %v2633_v46, %v2632_v50 }
 0x44a   :  { %v2635_v37 = vrot.slane %v2634_v57, 2 }
 0x44c   :  { %v2636_v62 = vadd.f32 %v2635_v37, %v2634_v57 }
 0x44e   :  { %v2637_v43 = vrot.slane %v2636_v62, 1 }
 0x450   :  { %v2638_v52 = vadd.f32 %v2637_v43, %v2636_v62 }
 0x452   :  { %v2639_v10 = vmul.f32 %v2638_v52, %v3866_v60 }
 0x454   :  { %v4816_v35 = vsub.f32 %v4766_v28, %v2639_v10  ;;  %v4819_v41 = vsub.f32 %v4769_v18, %v2639_v10  ;;  %v4822_v49 = vsub.f32 %v4774_v47, %v2639_v10  ;;  %v4825_v23 = vsub.f32 %v4777_v51, %v2639_v10 }
 0x455   :  { %v4828_v29 = vsub.f32 %v4782_v34, %v2639_v10  ;;  %v4831_v48 = vsub.f32 %v4788_v6, %v2639_v10  ;;  %v4834_v17 = vsub.f32 %v4794_v3, %v2639_v10  ;;  %v4837_v28 = vsub.f32 %v4798_v56, %v2639_v10 }
 0x456   :  { %v4840_v18 = vsub.f32 %v4802_v22, %v2639_v10  ;;  %v4843_v47 = vsub.f32 %v4806_v38, %v2639_v10  ;;  %v4845_v51 = vsub.f32 %v2601_v61, %v2639_v10  ;;  %v4847_v16 = vsub.f32 %v2604_v53, %v2639_v10 }
 0x457   :  { %v4849_v34 = vsub.f32 %v2607_v59, %v2639_v10  ;;  %v4851_v6 = vsub.f32 %v2610_v36, %v2639_v10  ;;  %v4853_v2 = vsub.f32 %v2613_v39, %v2639_v10  ;;  %v4855_v3 = vsub.f32 %v2616_v7, %v2639_v10 }
 0x458   :  { %v2656_v56 = vmul.f32 %v4816_v35, %v4816_v35  ;;  %v2657_v22 = vmul.f32 %v4819_v41, %v4819_v41  ;;  %v2658_v38 = vmul.f32 %v4822_v49, %v4822_v49  ;;  %v2659_v1 = vmul.f32 %v4825_v23, %v4825_v23 }
 0x459   :  { %v2660_v53 = vmul.f32 %v4828_v29, %v4828_v29  ;;  %v2661_v20 = vmul.f32 %v4831_v48, %v4831_v48  ;;  %v2662_v63 = vmul.f32 %v4834_v17, %v4834_v17  ;;  %v2663_v45 = vmul.f32 %v4837_v28, %v4837_v28 }
 0x45a   :  { %v2672_v61 = vadd.f32 %v2657_v22, %v2656_v56  ;;  %v2664_v40 = vmul.f32 %v4840_v18, %v4840_v18  ;;  %v2665_v24 = vmul.f32 %v4843_v47, %v4843_v47  ;;  %v2666_v9 = vmul.f32 %v4845_v51, %v4845_v51 }
 0x45b   :  { %v2667_v14 = vmul.f32 %v4847_v16, %v4847_v16  ;;  %v2668_v33 = vmul.f32 %v4849_v34, %v4849_v34  ;;  %v2669_v32 = vmul.f32 %v4851_v6, %v4851_v6  ;;  %v2670_v26 = vmul.f32 %v4853_v2, %v4853_v2 }
 0x45c   :  { %v2673_v12 = vadd.f32 %v2672_v61, %v2658_v38  ;;  %v2671_v25 = vmul.f32 %v4855_v3, %v4855_v3  ;;  %v2835_v38 = vld [vmem:[%s4967_s7] ss:$0 sm:$0xff] }
 0x45e   :  { %v2674_v0 = vadd.f32 %v2673_v12, %v2659_v1 }
 0x460   :  { %v2675_v21 = vadd.f32 %v2674_v0, %v2660_v53 }
 0x462   :  { %v2676_v30 = vadd.f32 %v2675_v21, %v2661_v20 }
 0x464   :  { %v2677_v31 = vadd.f32 %v2676_v30, %v2662_v63 }
 0x466   :  { %v2678_v59 = vadd.f32 %v2677_v31, %v2663_v45 }
 0x468   :  { %v2679_v5 = vadd.f32 %v2678_v59, %v2664_v40 }
 0x46a   :  { %v2680_v54 = vadd.f32 %v2679_v5, %v2665_v24 }
 0x46c   :  { %v2681_v44 = vadd.f32 %v2680_v54, %v2666_v9 }
 0x46e   :  { %v2682_v36 = vadd.f32 %v2681_v44, %v2667_v14 }
 0x470   :  { %v2683_v11 = vadd.f32 %v2682_v36, %v2668_v33 }
 0x472   :  { %v2684_v4 = vadd.f32 %v2683_v11, %v2669_v32 }
 0x474   :  { %v2685_v42 = vadd.f32 %v2684_v4, %v2670_v26 }
 0x476   :  { %v2686_v15 = vadd.f32 %v2685_v42, %v2671_v25 }
 0x478   :  { %v2687_v8 = vrot.slane %v2686_v15, 4 }
 0x47a   :  { %v2688_v39 = vadd.f32 %v2687_v8, %v2686_v15 }
 0x47c   :  { %v2689_v58 = vrot.slane %v2688_v39, 2 }
 0x47e   :  { %v2690_v55 = vadd.f32 %v2689_v58, %v2688_v39 }
 0x480   :  { %v2691_v13 = vrot.slane %v2690_v55, 1 }
 0x482   :  { %v2692_v27 = vadd.f32 %v2691_v13, %v2690_v55 }
 0x484   :  { %v2693_v19 = vmul.f32 %v2692_v27, %v3866_v60 }
 0x486   :  { %v2694_v7 = vadd.f32 1e-05, %v2693_v19 }
 0x488   :  { %2841 = vrsqrt.f32 %v2694_v7  ;;  %vm2701_vm5 = vweird.f32 %v2694_v7 }
 0x48e   :  { %v2842_v50 = vpop.eup %2841 }
 0x48f   :  { %v2696_v46 = vmul.f32 %v2842_v50, %v2694_v7  ;;  %vm2702_vm4 = vweird.f32 %v2842_v50 }
 0x490   :  { %vm2703_vm6 = vmor %vm2701_vm5, %vm2702_vm4 }
 0x491   :  { %v2697_v57 = vmul.f32 %v2842_v50, %v2696_v46 }
 0x493   :  { %v2698_v37 = vmul.f32 0.5, %v2697_v57 }
 0x495   :  { %v2699_v62 = vsub.f32 1.5, %v2698_v37 }
 0x497   :  { %v2700_v43 = vmul.f32 %v2842_v50, %v2699_v62 }
 0x499   :  { %v2704_v52 = vsel %vm2703_vm6, %v2842_v50, %v2700_v43 }
 0x49a   :  { %v2705_v10 = vmul.f32 %v2704_v52, %v4816_v35  ;;  %v2706_v56 = vmul.f32 %v2704_v52, %v4819_v41  ;;  %v2707_v22 = vmul.f32 %v2704_v52, %v4822_v49  ;;  %v2708_v60 = vmul.f32 %v2704_v52, %v4825_v23 }
 0x49b   :  { %v2709_v61 = vmul.f32 %v2704_v52, %v4828_v29  ;;  %v2710_v1 = vmul.f32 %v2704_v52, %v4831_v48  ;;  %v2711_v12 = vmul.f32 %v2704_v52, %v4834_v17  ;;  %v2712_v53 = vmul.f32 %v2704_v52, %v4837_v28  ;;  %v2836_v28 = vld [vmem:[%s4968_s8] ss:$0 sm:$0xff] }
 0x49c   :  { %v2713_v35 = vmul.f32 %v2704_v52, %v4840_v18  ;;  %v2714_v41 = vmul.f32 %v2704_v52, %v4843_v47  ;;  %v2715_v49 = vmul.f32 %v2704_v52, %v4845_v51  ;;  %v2716_v23 = vmul.f32 %v2704_v52, %v4847_v16 }
 0x49d   :  { %v2717_v0 = vmul.f32 %v2704_v52, %v4849_v34  ;;  %v2718_v20 = vmul.f32 %v2704_v52, %v4851_v6  ;;  %v2719_v29 = vmul.f32 %v2704_v52, %v4853_v2  ;;  %v2720_v48 = vmul.f32 %v2704_v52, %v4855_v3 }
 0x49e   :  { %v2725_v21 = vmul.f32 %v2835_v38, %v2705_v10  ;;  %v2726_v17 = vmul.f32 %v2835_v38, %v2706_v56  ;;  %v2727_v63 = vmul.f32 %v2835_v38, %v2707_v22  ;;  %v2728_v18 = vmul.f32 %v2835_v38, %v2708_v60 }
 0x49f   :  { %v2729_v47 = vmul.f32 %v2835_v38, %v2709_v61  ;;  %v2730_v51 = vmul.f32 %v2835_v38, %v2710_v1  ;;  %v2731_v30 = vmul.f32 %v2835_v38, %v2711_v12  ;;  %v2732_v31 = vmul.f32 %v2835_v38, %v2712_v53 }
 0x4a0   :  { %v2745_v16 = vadd.f32 %v2836_v28, %v2725_v21  ;;  %v2746_v45 = vadd.f32 %v2836_v28, %v2726_v17  ;;  %v2747_v34 = vadd.f32 %v2836_v28, %v2727_v63  ;;  %v2748_v6 = vadd.f32 %v2836_v28, %v2728_v18 }
 0x4a1   :  { %v2733_v40 = vmul.f32 %v2835_v38, %v2713_v35  ;;  %v2749_v2 = vadd.f32 %v2836_v28, %v2729_v47  ;;  %v2734_v59 = vmul.f32 %v2835_v38, %v2714_v41  ;;  %v2735_v3 = vmul.f32 %v2835_v38, %v2715_v49 }
 0x4a2   :  { %v2750_v24 = vadd.f32 %v2836_v28, %v2730_v51  ;;  %v2751_v5 = vadd.f32 %v2836_v28, %v2731_v30  ;;  %v2761_v9 = vmax.f32 %v2745_v16, 0.0  ;;  %v2762_v54 = vmax.f32 %v2746_v45, 0.0 }
 0x4a3   :  { %v2763_v14 = vmax.f32 %v2747_v34, 0.0  ;;  %v2736_v44 = vmul.f32 %v2835_v38, %v2716_v23  ;;  %v2752_v33 = vadd.f32 %v2836_v28, %v2732_v31  ;;  %v2764_v36 = vmax.f32 %v2748_v6, 0.0 }
 0x4a4   :  { %v2737_v32 = vmul.f32 %v2835_v38, %v2717_v0  ;;  %v2753_v11 = vadd.f32 %v2836_v28, %v2733_v40  ;;  %v2765_v26 = vmax.f32 %v2749_v2, 0.0  ;;  %2777 = vst [vmem:[%s4969_s9] sm:$0xff] %v2761_v9  ;;  %v2738_v4 = vmul.f32 %v2835_v38, %v2718_v20 }
 0x4a5   :  { %v2754_v25 = vadd.f32 %v2836_v28, %v2734_v59  ;;  %v2766_v42 = vmax.f32 %v2750_v24, 0.0  ;;  %2778 = vst [vmem:[%s4969_s9 + $0x8] sm:$0xff] %v2762_v54  ;;  %v2739_v15 = vmul.f32 %v2835_v38, %v2719_v29  ;;  %v2755_v8 = vadd.f32 %v2836_v28, %v2735_v3 }
 0x4a6   :  { %v2767_v39 = vmax.f32 %v2751_v5, 0.0  ;;  %2779 = vst [vmem:[%s4969_s9 + $0x10] sm:$0xff] %v2763_v14  ;;  %v2740_v58 = vmul.f32 %v2835_v38, %v2720_v48  ;;  %v2756_v55 = vadd.f32 %v2836_v28, %v2736_v44  ;;  %v2768_v13 = vmax.f32 %v2752_v33, 0.0 }
 0x4a7   :  { %2780 = vst [vmem:[%s4969_s9 + $0x18] sm:$0xff] %v2764_v36  ;;  %v2757_v27 = vadd.f32 %v2836_v28, %v2737_v32  ;;  %v2769_v19 = vmax.f32 %v2753_v11, 0.0  ;;  %v2758_v7 = vadd.f32 %v2836_v28, %v2738_v4  ;;  %v2770_v50 = vmax.f32 %v2754_v25, 0.0 }
 0x4a8   :  { %2781 = vst [vmem:[%s4969_s9 + $0x20] sm:$0xff] %v2765_v26  ;;  %v2759_v46 = vadd.f32 %v2836_v28, %v2739_v15  ;;  %v2771_v57 = vmax.f32 %v2755_v8, 0.0  ;;  %v2760_v37 = vadd.f32 %v2836_v28, %v2740_v58  ;;  %v2772_v62 = vmax.f32 %v2756_v55, 0.0 }
 0x4a9   :  { %2782 = vst [vmem:[%s4969_s9 + $0x28] sm:$0xff] %v2766_v42  ;;  %v2773_v43 = vmax.f32 %v2757_v27, 0.0  ;;  %v2774_v52 = vmax.f32 %v2758_v7, 0.0 }
 0x4aa   :  { %2783 = vst [vmem:[%s4969_s9 + $0x30] sm:$0xff] %v2767_v39  ;;  %v2775_v10 = vmax.f32 %v2759_v46, 0.0  ;;  %v2776_v56 = vmax.f32 %v2760_v37, 0.0 }
 0x4ab   :  { %2784 = vst [vmem:[%s4969_s9 + $0x38] sm:$0xff] %v2768_v13 }
 0x4ac   :  { %2785 = vst [vmem:[%s4969_s9 + $0x40] sm:$0xff] %v2769_v19 }
 0x4ad   :  { %2786 = vst [vmem:[%s4969_s9 + $0x48] sm:$0xff] %v2770_v50 }
 0x4ae   :  { %2787 = vst [vmem:[%s4969_s9 + $0x50] sm:$0xff] %v2771_v57 }
 0x4af   :  { %2788 = vst [vmem:[%s4969_s9 + $0x58] sm:$0xff] %v2772_v62 }
 0x4b0   :  { %2789 = vst [vmem:[%s4969_s9 + $0x60] sm:$0xff] %v2773_v43 }
 0x4b1   :  { %2790 = vst [vmem:[%s4969_s9 + $0x68] sm:$0xff] %v2774_v52 }
 0x4b2   :  { %2791 = vst [vmem:[%s4969_s9 + $0x70] sm:$0xff] %v2775_v10 }
 0x4b3   :  { %2792 = vst [vmem:[%s4969_s9 + $0x78] sm:$0xff] %v2776_v56 }

</bundles_post_ra>
